<compile_context>
chip_gen: v7x
topology: tpu7x:2x2x1
jax: 0.10.0
libtpu: 0.0.40
codegen_flags: <defaults>
</compile_context>

<pallas_src>
import math

import jax
import jax.numpy as jnp
import numpy as np
from jax import lax
from jax.experimental import pallas as pl
from jax.experimental.pallas import tpu as pltpu

# ----- module hyper-parameters (SpatialAttention(d_model=4, kernel_size=21)) -----
D_MODEL = 4
H = 16
W = 16                                                     # power of two (bit trick below)
N = 2
NC = N * D_MODEL                                           # 8 rows  = one full sublane tile
S = H * W                                                  # 256 lanes = two full lane tiles
K_SIZE = 21
DILATION = 3
DK = 2 * DILATION - 1                                      # 5   (conv0 kernel)
DP = (DK - 1) // 2                                         # 2   (conv0 padding)
DDK = K_SIZE // DILATION + (K_SIZE // DILATION % 2 - 1)    # 7   (conv_spatial kernel)
DDP = DILATION * (DDK - 1) // 2                            # 9   (conv_spatial padding)

# static invariants the kernel relies on (per review correctness concerns)
assert W & (W - 1) == 0, "W must be a power of two for the lane->column bit trick"
assert (K_SIZE // DILATION) % 2 == 1, "dd_k formula assumes odd kernel_size // dilation"

# ----- packed parameter-slab column layout:  slab shape (NC, P_COLS) -----
T0 = DK * DK                       # 25 conv0 taps
TS = DDK * DDK                     # 49 conv_spatial taps
COL_T0 = 0
COL_TS = COL_T0 + T0               # 25
COL_W1 = COL_TS + TS               # 74  proj_1  block-diag (NC cols)
COL_C1F = COL_W1 + NC              # 82  conv1 f block-diag
COL_C1G = COL_C1F + NC             # 90  conv1 g block-diag
COL_W2 = COL_C1G + NC              # 98  proj_2  block-diag
COL_B = COL_W2 + NC                # 106 biases: b_p1, b_c0, b_cs, b_c1f, b_c1g, b_p2
P_COLS = COL_B + 6                 # 112 -> fits in one (8,128) vreg tile


# ----- exact-erf GELU (PyTorch nn.GELU() default), using only Pallas-lowerable ops -----
_ERF_P = 0.3275911
_ERF_A = (0.254829592, -0.284496736, 1.421413741, -1.453152027, 1.061405429)


def _erf_approx(z):
    # Abramowitz & Stegun 7.1.26, |abs error| <= 1.5e-7 (negligible vs the 1e-3 tolerance).
    a1, a2, a3, a4, a5 = _ERF_A
    az = jnp.abs(z)
    t = 1.0 / (1.0 + _ERF_P * az)
    poly = ((((a5 * t + a4) * t + a3) * t + a2) * t + a1) * t
    e = 1.0 - poly * jnp.exp(-az * az)
    return jnp.where(z < 0.0, -e, e)


def _gelu_exact(v):
    return 0.5 * v * (1.0 + _erf_approx(v * (1.0 / math.sqrt(2.0))))


# --------------------------------- the kernel ---------------------------------
def spatial_attention_kernel(x_ref, prm_ref, o_ref):
    nc, s = x_ref.shape
    x = x_ref[...].astype(jnp.float32)            # (NC, S) lane-dense, batch-packed
    prm = prm_ref[...].astype(jnp.float32)        # whole parameter slab, loaded once

    # slab views (static lane slices of the register-resident slab)
    taps0 = prm[:, COL_T0:COL_T0 + T0]            # (NC, 25)
    tapss = prm[:, COL_TS:COL_TS + TS]            # (NC, 49)
    w_p1 = prm[:, COL_W1:COL_W1 + nc]             # (NC, NC) block-diag over batch
    w_c1f = prm[:, COL_C1F:COL_C1F + nc]
    w_c1g = prm[:, COL_C1G:COL_C1G + nc]
    w_p2 = prm[:, COL_W2:COL_W2 + nc]
    b_p1 = prm[:, COL_B + 0:COL_B + 1]            # (NC, 1) per-row biases
    b_c0 = prm[:, COL_B + 1:COL_B + 2]
    b_cs = prm[:, COL_B + 2:COL_B + 3]
    b_c1f = prm[:, COL_B + 3:COL_B + 4]
    b_c1g = prm[:, COL_B + 4:COL_B + 5]
    b_p2 = prm[:, COL_B + 5:COL_B + 6]

    # lane -> image-column index (W is a power of two, asserted at module scope)
    w_idx = lax.broadcasted_iota(jnp.int32, (1, s), 1) & (W - 1)

    def depthwise(v, taps, bias_col, k, dil):
        # "Same" zero-padded depthwise kxk conv (dilation `dil`) on the flattened lane axis.
        # v: (NC, S); taps: (NC, k*k) tap-column table; bias_col: (NC, 1).
        p = dil * (k - 1) // 2
        maxoff = p * W + p                        # largest |flattened tap offset|
        lpad = ((maxoff + 127) // 128) * 128      # lane-tile aligned zero extension
        assert lpad >= maxoff                     # invariant that makes the row mask redundant
        zpad = jnp.zeros((nc, lpad), jnp.float32)
        vp = jnp.concatenate([zpad, v, zpad], axis=1)
        acc = jnp.zeros((nc, s), jnp.float32) + bias_col
        for kx in range(k):
            ox = kx * dil - p
            # Column mask only: any out-of-range row lands in the zero extension already,
            # so no row mask is needed (see assert above). Mask applied once per kx, after
            # summing over ky (select distributes over the sum).
            col_ok = (w_idx + ox >= 0) & (w_idx + ox < W)
            part = None
            for ky in range(k):
                off = (ky * dil - p) * W + ox
                win = lax.slice_in_dim(vp, lpad + off, lpad + off + s, axis=1)
                term = taps[:, ky * k + kx:ky * k + kx + 1] * win
                part = term if part is None else part + term
            acc = acc + jnp.where(col_ok, part, 0.0)
        return acc

    # proj_1 (1x1) as a block-diagonal MXU matmul over the batch-packed slab, then exact GELU.
    a = jnp.dot(w_p1, x, preferred_element_type=jnp.float32) + b_p1
    a = _gelu_exact(a)

    # depthwise 5x5 then dilated 7x7 (Large-Kernel-Attention decomposition)
    a = depthwise(a, taps0, b_c0, DK, 1)
    a = depthwise(a, tapss, b_cs, DDK, DILATION)

    # conv1 (1x1, C->2C) produced as two full (NC, S) slabs (f rows, g rows) -> full-tile gate.
    f = jnp.dot(w_c1f, a, preferred_element_type=jnp.float32) + b_c1f
    g = jnp.dot(w_c1g, a, preferred_element_type=jnp.float32) + b_c1g
    attn = jax.nn.sigmoid(g) * f

    # proj_2 (1x1) + residual shortcut; single full-slab store.
    out = jnp.dot(w_p2, attn, preferred_element_type=jnp.float32) + b_p2 + x
    o_ref[...] = out.astype(o_ref.dtype)


# --------------------------------- wrapper ---------------------------------
def _pack_params(params, n, c):
    """Pack all 10 parameter tensors into one (n*c, P_COLS) slab (one VMEM tile)."""
    (w_p1, b_p1, w_c0, b_c0, w_cs, b_cs, w_c1, b_c1, w_p2, b_p2) = params

    def dw_cols(wconv, k):            # (c,1,k,k) -> (n*c, k*k): tap column t = ky*k+kx
        return jnp.tile(wconv[:, 0].reshape(c, k * k), (n, 1))

    def blockdiag(w2d):               # (c,c) 1x1 weight -> (n*c, n*c) batch block-diagonal
        return jnp.kron(jnp.eye(n, dtype=w2d.dtype), w2d)

    def col(vec_c):                   # (c,) -> (n*c, 1) per-row bias column
        return jnp.tile(vec_c, (n,))[:, None]

    slab = jnp.concatenate([
        dw_cols(w_c0, DK), dw_cols(w_cs, DDK),
        blockdiag(w_p1[:, :, 0, 0]),
        blockdiag(w_c1[:c, :, 0, 0]), blockdiag(w_c1[c:, :, 0, 0]),
        blockdiag(w_p2[:, :, 0, 0]),
        col(b_p1), col(b_c0), col(b_cs), col(b_c1[:c]), col(b_c1[c:]), col(b_p2),
    ], axis=1)
    return slab.astype(jnp.float32)


@jax.jit
def spatial_attention(x, params):
    n, c, h, w = x.shape
    assert (h, w) == (H, W) and (n, c) == (N, D_MODEL)
    nc = n * c
    prm = _pack_params(params, n, c)                      # (nc, 112)
    # TODO(synk): if this module is stacked per layer, fuse several layers into one pallas_call
    # (or cross-call prefetch the next layer's slab) to amortize the fixed launch/DMA cost.
    out_flat = pl.pallas_call(
        spatial_attention_kernel,
        out_shape=jax.ShapeDtypeStruct((nc, h * w), x.dtype),
        in_specs=[pl.BlockSpec(memory_space=pltpu.MemorySpace.VMEM),
                  pl.BlockSpec(memory_space=pltpu.MemorySpace.VMEM)],
        out_specs=pl.BlockSpec(memory_space=pltpu.MemorySpace.VMEM),
        compiler_params=pltpu.CompilerParams(vmem_limit_bytes=32 * 1024 * 1024),
    )(x.reshape(nc, h * w), prm)
    return out_flat.reshape(n, c, h, w)


# ---------------- deterministic parameter init (PyTorch Conv2d shapes) ----------------
def init_params(key, c):
    ks = jax.random.split(key, 10)

    def u(k, shape, fan_in):
        bound = 1.0 / math.sqrt(fan_in)
        return jax.random.uniform(k, shape, jnp.float32, -bound, bound)

    w_p1 = u(ks[0], (c, c, 1, 1), c)
    b_p1 = u(ks[1], (c,), c)
    w_c0 = u(ks[2], (c, 1, DK, DK), DK * DK)          # depthwise (groups=c)
    b_c0 = u(ks[3], (c,), DK * DK)
    w_cs = u(ks[4], (c, 1, DDK, DDK), DDK * DDK)      # depthwise dilated
    b_cs = u(ks[5], (c,), DDK * DDK)
    w_c1 = u(ks[6], (2 * c, c, 1, 1), c)
    b_c1 = u(ks[7], (2 * c,), c)
    w_p2 = u(ks[8], (c, c, 1, 1), c)
    b_p2 = u(ks[9], (c,), c)
    return (w_p1, b_p1, w_c0, b_c0, w_cs, b_cs, w_c1, b_c1, w_p2, b_p2)


# ---------------- pure-JAX reference (mirrors the PyTorch forward) ----------------
def _conv2d(x, w, b, *, padding=0, dilation=1, groups=1):
    out = lax.conv_general_dilated(
        x, w, window_strides=(1, 1),
        padding=[(padding, padding), (padding, padding)],
        rhs_dilation=(dilation, dilation),
        dimension_numbers=("NCHW", "OIHW", "NCHW"),
        feature_group_count=groups)
    return out + b.reshape(1, -1, 1, 1)


def reference_forward(x, params):
    (w_p1, b_p1, w_c0, b_c0, w_cs, b_cs, w_c1, b_c1, w_p2, b_p2) = params
    c = x.shape[1]
    shortcut = x
    h = _conv2d(x, w_p1, b_p1)
    h = jax.nn.gelu(h, approximate=False)
    a = _conv2d(h, w_c0, b_c0, padding=DP, groups=c)
    a = _conv2d(a, w_cs, b_cs, padding=DDP, dilation=DILATION, groups=c)
    fg = _conv2d(a, w_c1, b_c1)
    f_x, g_x = fg[:, :c], fg[:, c:]
    a = jax.nn.sigmoid(g_x) * f_x
    h = _conv2d(a, w_p2, b_p2)
    return h + shortcut


if __name__ == "__main__":
    key = jax.random.PRNGKey(0)
    kx, kp = jax.random.split(key)
    x = jax.random.normal(kx, (N, D_MODEL, H, W), jnp.float32)
    params = init_params(kp, D_MODEL)

    out = jax.block_until_ready(spatial_attention(x, params))

    ref = reference_forward(x, params)
    np.testing.assert_allclose(np.asarray(out), np.asarray(ref), rtol=1e-3, atol=1e-3)
    print("KERNEL_OK")
</pallas_src>

<mosaic_0001>
module attributes {stable_mosaic.version = 11 : i64} {
  func.func @spatial_attention_kernel(%arg0: memref<8x256xf32, #tpu.memory_space<vmem>>, %arg1: memref<8x112xf32, #tpu.memory_space<vmem>>, %arg2: memref<8x256xf32, #tpu.memory_space<vmem>>) attributes {dimension_semantics = [], scalar_prefetch = 0 : i64, scratch_operands = 0 : i64, tpu.core_type = #tpu.core_type<tc>} {
    %c0 = arith.constant 0 : index
    %c0_0 = arith.constant 0 : index
    %0 = vector.load %arg0[%c0, %c0_0] : memref<8x256xf32, #tpu.memory_space<vmem>>, vector<8x256xf32>
    %c0_1 = arith.constant 0 : index
    %c0_2 = arith.constant 0 : index
    %1 = vector.load %arg1[%c0_1, %c0_2] : memref<8x112xf32, #tpu.memory_space<vmem>>, vector<8x112xf32>
    %2 = vector.extract_strided_slice %1 {offsets = [0, 0], sizes = [8, 25], strides = [1, 1]} : vector<8x112xf32> to vector<8x25xf32>
    %3 = vector.extract_strided_slice %1 {offsets = [0, 25], sizes = [8, 49], strides = [1, 1]} : vector<8x112xf32> to vector<8x49xf32>
    %4 = vector.extract_strided_slice %1 {offsets = [0, 74], sizes = [8, 8], strides = [1, 1]} : vector<8x112xf32> to vector<8x8xf32>
    %5 = vector.extract_strided_slice %1 {offsets = [0, 82], sizes = [8, 8], strides = [1, 1]} : vector<8x112xf32> to vector<8x8xf32>
    %6 = vector.extract_strided_slice %1 {offsets = [0, 90], sizes = [8, 8], strides = [1, 1]} : vector<8x112xf32> to vector<8x8xf32>
    %7 = vector.extract_strided_slice %1 {offsets = [0, 98], sizes = [8, 8], strides = [1, 1]} : vector<8x112xf32> to vector<8x8xf32>
    %8 = vector.extract_strided_slice %1 {offsets = [0, 106], sizes = [8, 1], strides = [1, 1]} : vector<8x112xf32> to vector<8x1xf32>
    %9 = vector.extract_strided_slice %1 {offsets = [0, 107], sizes = [8, 1], strides = [1, 1]} : vector<8x112xf32> to vector<8x1xf32>
    %10 = vector.extract_strided_slice %1 {offsets = [0, 108], sizes = [8, 1], strides = [1, 1]} : vector<8x112xf32> to vector<8x1xf32>
    %11 = vector.extract_strided_slice %1 {offsets = [0, 109], sizes = [8, 1], strides = [1, 1]} : vector<8x112xf32> to vector<8x1xf32>
    %12 = vector.extract_strided_slice %1 {offsets = [0, 110], sizes = [8, 1], strides = [1, 1]} : vector<8x112xf32> to vector<8x1xf32>
    %13 = vector.extract_strided_slice %1 {offsets = [0, 111], sizes = [8, 1], strides = [1, 1]} : vector<8x112xf32> to vector<8x1xf32>
    %14 = tpu.iota {dimensions = array<i32: 1>} : vector<1x256xi32>
    %c15_i32 = arith.constant 15 : i32
    %15 = vector.broadcast %c15_i32 : i32 to vector<1x256xi32>
    %16 = arith.andi %14, %15 : vector<1x256xi32>
    %cst = arith.constant dense<0.000000e+00> : vector<8x256xf32>
    %17 = tpu.matmul %4, %0, %cst {dimension_numbers = #tpu.dot_dimension_numbers<[1], [0], [0], [1], [0, 0, 1, 1], [], []>} : vector<8x8xf32>, vector<8x256xf32>, vector<8x256xf32> -> vector<8x256xf32>
    %18 = vector.broadcast %8 : vector<8x1xf32> to vector<8x256xf32>
    %19 = arith.addf %17, %18 : vector<8x256xf32>
    %cst_3 = arith.constant 5.000000e-01 : f32
    %20 = vector.broadcast %cst_3 : f32 to vector<8x256xf32>
    %21 = arith.mulf %20, %19 : vector<8x256xf32>
    %cst_4 = arith.constant 0.707106769 : f32
    %22 = vector.broadcast %cst_4 : f32 to vector<8x256xf32>
    %23 = arith.mulf %19, %22 : vector<8x256xf32>
    %24 = math.absf %23 : vector<8x256xf32>
    %cst_5 = arith.constant 0.327591091 : f32
    %25 = vector.broadcast %cst_5 : f32 to vector<8x256xf32>
    %26 = arith.mulf %25, %24 : vector<8x256xf32>
    %cst_6 = arith.constant 1.000000e+00 : f32
    %27 = vector.broadcast %cst_6 : f32 to vector<8x256xf32>
    %28 = arith.addf %27, %26 : vector<8x256xf32>
    %cst_7 = arith.constant 1.000000e+00 : f32
    %29 = vector.broadcast %cst_7 : f32 to vector<8x256xf32>
    %30 = arith.divf %29, %28 : vector<8x256xf32>
    %cst_8 = arith.constant 1.06140542 : f32
    %31 = vector.broadcast %cst_8 : f32 to vector<8x256xf32>
    %32 = arith.mulf %31, %30 : vector<8x256xf32>
    %cst_9 = arith.constant -1.45315206 : f32
    %33 = vector.broadcast %cst_9 : f32 to vector<8x256xf32>
    %34 = arith.addf %32, %33 : vector<8x256xf32>
    %35 = arith.mulf %34, %30 : vector<8x256xf32>
    %cst_10 = arith.constant 1.42141378 : f32
    %36 = vector.broadcast %cst_10 : f32 to vector<8x256xf32>
    %37 = arith.addf %35, %36 : vector<8x256xf32>
    %38 = arith.mulf %37, %30 : vector<8x256xf32>
    %cst_11 = arith.constant -0.284496725 : f32
    %39 = vector.broadcast %cst_11 : f32 to vector<8x256xf32>
    %40 = arith.addf %38, %39 : vector<8x256xf32>
    %41 = arith.mulf %40, %30 : vector<8x256xf32>
    %cst_12 = arith.constant 0.254829586 : f32
    %42 = vector.broadcast %cst_12 : f32 to vector<8x256xf32>
    %43 = arith.addf %41, %42 : vector<8x256xf32>
    %44 = arith.mulf %43, %30 : vector<8x256xf32>
    %cst_13 = arith.constant 0.000000e+00 : f32
    %45 = vector.broadcast %cst_13 : f32 to vector<8x256xf32>
    %46 = arith.subf %45, %24 : vector<8x256xf32>
    %47 = arith.mulf %46, %24 : vector<8x256xf32>
    %48 = math.exp %47 : vector<8x256xf32>
    %49 = arith.mulf %44, %48 : vector<8x256xf32>
    %cst_14 = arith.constant 1.000000e+00 : f32
    %50 = vector.broadcast %cst_14 : f32 to vector<8x256xf32>
    %51 = arith.subf %50, %49 : vector<8x256xf32>
    %cst_15 = arith.constant 0.000000e+00 : f32
    %52 = vector.broadcast %cst_15 : f32 to vector<8x256xf32>
    %53 = arith.cmpf olt, %23, %52 : vector<8x256xf32>
    %cst_16 = arith.constant 0.000000e+00 : f32
    %54 = vector.broadcast %cst_16 : f32 to vector<8x256xf32>
    %55 = arith.subf %54, %51 : vector<8x256xf32>
    %56 = arith.select %53, %55, %51 : vector<8x256xi1>, vector<8x256xf32>
    %cst_17 = arith.constant 1.000000e+00 : f32
    %57 = vector.broadcast %cst_17 : f32 to vector<8x256xf32>
    %58 = arith.addf %57, %56 : vector<8x256xf32>
    %59 = arith.mulf %21, %58 : vector<8x256xf32>
    %cst_18 = arith.constant 0.000000e+00 : f32
    %60 = vector.broadcast %cst_18 : f32 to vector<8x128xf32>
    %61 = tpu.concatenate %60, %59, %60 in 1 : vector<8x128xf32>, vector<8x256xf32>, vector<8x128xf32> -> vector<8x512xf32>
    %cst_19 = arith.constant 0.000000e+00 : f32
    %62 = vector.broadcast %cst_19 : f32 to vector<8x256xf32>
    %63 = vector.broadcast %9 : vector<8x1xf32> to vector<8x256xf32>
    %64 = arith.addf %62, %63 : vector<8x256xf32>
    %c-2_i32 = arith.constant -2 : i32
    %65 = vector.broadcast %c-2_i32 : i32 to vector<1x256xi32>
    %66 = arith.addi %16, %65 : vector<1x256xi32>
    %c0_i32 = arith.constant 0 : i32
    %67 = vector.broadcast %c0_i32 : i32 to vector<1x256xi32>
    %68 = arith.cmpi sge, %66, %67 : vector<1x256xi32>
    %c-2_i32_20 = arith.constant -2 : i32
    %69 = vector.broadcast %c-2_i32_20 : i32 to vector<1x256xi32>
    %70 = arith.addi %16, %69 : vector<1x256xi32>
    %c16_i32 = arith.constant 16 : i32
    %71 = vector.broadcast %c16_i32 : i32 to vector<1x256xi32>
    %72 = arith.cmpi slt, %70, %71 : vector<1x256xi32>
    %73 = arith.andi %68, %72 : vector<1x256xi1>
    %74 = vector.extract_strided_slice %61 {offsets = [0, 94], sizes = [8, 256], strides = [1, 1]} : vector<8x512xf32> to vector<8x256xf32>
    %75 = vector.extract_strided_slice %2 {offsets = [0, 0], sizes = [8, 1], strides = [1, 1]} : vector<8x25xf32> to vector<8x1xf32>
    %76 = vector.broadcast %75 : vector<8x1xf32> to vector<8x256xf32>
    %77 = arith.mulf %76, %74 : vector<8x256xf32>
    %78 = vector.extract_strided_slice %61 {offsets = [0, 110], sizes = [8, 256], strides = [1, 1]} : vector<8x512xf32> to vector<8x256xf32>
    %79 = vector.extract_strided_slice %2 {offsets = [0, 5], sizes = [8, 1], strides = [1, 1]} : vector<8x25xf32> to vector<8x1xf32>
    %80 = vector.broadcast %79 : vector<8x1xf32> to vector<8x256xf32>
    %81 = arith.mulf %80, %78 : vector<8x256xf32>
    %82 = arith.addf %77, %81 : vector<8x256xf32>
    %83 = vector.extract_strided_slice %61 {offsets = [0, 126], sizes = [8, 256], strides = [1, 1]} : vector<8x512xf32> to vector<8x256xf32>
    %84 = vector.extract_strided_slice %2 {offsets = [0, 10], sizes = [8, 1], strides = [1, 1]} : vector<8x25xf32> to vector<8x1xf32>
    %85 = vector.broadcast %84 : vector<8x1xf32> to vector<8x256xf32>
    %86 = arith.mulf %85, %83 : vector<8x256xf32>
    %87 = arith.addf %82, %86 : vector<8x256xf32>
    %88 = vector.extract_strided_slice %61 {offsets = [0, 142], sizes = [8, 256], strides = [1, 1]} : vector<8x512xf32> to vector<8x256xf32>
    %89 = vector.extract_strided_slice %2 {offsets = [0, 15], sizes = [8, 1], strides = [1, 1]} : vector<8x25xf32> to vector<8x1xf32>
    %90 = vector.broadcast %89 : vector<8x1xf32> to vector<8x256xf32>
    %91 = arith.mulf %90, %88 : vector<8x256xf32>
    %92 = arith.addf %87, %91 : vector<8x256xf32>
    %93 = vector.extract_strided_slice %61 {offsets = [0, 158], sizes = [8, 256], strides = [1, 1]} : vector<8x512xf32> to vector<8x256xf32>
    %94 = vector.extract_strided_slice %2 {offsets = [0, 20], sizes = [8, 1], strides = [1, 1]} : vector<8x25xf32> to vector<8x1xf32>
    %95 = vector.broadcast %94 : vector<8x1xf32> to vector<8x256xf32>
    %96 = arith.mulf %95, %93 : vector<8x256xf32>
    %97 = arith.addf %92, %96 : vector<8x256xf32>
    %cst_21 = arith.constant 0.000000e+00 : f32
    %98 = vector.shape_cast %73 : vector<1x256xi1> to vector<1x256xi1>
    %99 = vector.broadcast %98 : vector<1x256xi1> to vector<8x256xi1>
    %100 = vector.broadcast %cst_21 : f32 to vector<8x256xf32>
    %101 = arith.select %99, %97, %100 : vector<8x256xi1>, vector<8x256xf32>
    %102 = arith.addf %64, %101 : vector<8x256xf32>
    %c-1_i32 = arith.constant -1 : i32
    %103 = vector.broadcast %c-1_i32 : i32 to vector<1x256xi32>
    %104 = arith.addi %16, %103 : vector<1x256xi32>
    %c0_i32_22 = arith.constant 0 : i32
    %105 = vector.broadcast %c0_i32_22 : i32 to vector<1x256xi32>
    %106 = arith.cmpi sge, %104, %105 : vector<1x256xi32>
    %c-1_i32_23 = arith.constant -1 : i32
    %107 = vector.broadcast %c-1_i32_23 : i32 to vector<1x256xi32>
    %108 = arith.addi %16, %107 : vector<1x256xi32>
    %c16_i32_24 = arith.constant 16 : i32
    %109 = vector.broadcast %c16_i32_24 : i32 to vector<1x256xi32>
    %110 = arith.cmpi slt, %108, %109 : vector<1x256xi32>
    %111 = arith.andi %106, %110 : vector<1x256xi1>
    %112 = vector.extract_strided_slice %61 {offsets = [0, 95], sizes = [8, 256], strides = [1, 1]} : vector<8x512xf32> to vector<8x256xf32>
    %113 = vector.extract_strided_slice %2 {offsets = [0, 1], sizes = [8, 1], strides = [1, 1]} : vector<8x25xf32> to vector<8x1xf32>
    %114 = vector.broadcast %113 : vector<8x1xf32> to vector<8x256xf32>
    %115 = arith.mulf %114, %112 : vector<8x256xf32>
    %116 = vector.extract_strided_slice %61 {offsets = [0, 111], sizes = [8, 256], strides = [1, 1]} : vector<8x512xf32> to vector<8x256xf32>
    %117 = vector.extract_strided_slice %2 {offsets = [0, 6], sizes = [8, 1], strides = [1, 1]} : vector<8x25xf32> to vector<8x1xf32>
    %118 = vector.broadcast %117 : vector<8x1xf32> to vector<8x256xf32>
    %119 = arith.mulf %118, %116 : vector<8x256xf32>
    %120 = arith.addf %115, %119 : vector<8x256xf32>
    %121 = vector.extract_strided_slice %61 {offsets = [0, 127], sizes = [8, 256], strides = [1, 1]} : vector<8x512xf32> to vector<8x256xf32>
    %122 = vector.extract_strided_slice %2 {offsets = [0, 11], sizes = [8, 1], strides = [1, 1]} : vector<8x25xf32> to vector<8x1xf32>
    %123 = vector.broadcast %122 : vector<8x1xf32> to vector<8x256xf32>
    %124 = arith.mulf %123, %121 : vector<8x256xf32>
    %125 = arith.addf %120, %124 : vector<8x256xf32>
    %126 = vector.extract_strided_slice %61 {offsets = [0, 143], sizes = [8, 256], strides = [1, 1]} : vector<8x512xf32> to vector<8x256xf32>
    %127 = vector.extract_strided_slice %2 {offsets = [0, 16], sizes = [8, 1], strides = [1, 1]} : vector<8x25xf32> to vector<8x1xf32>
    %128 = vector.broadcast %127 : vector<8x1xf32> to vector<8x256xf32>
    %129 = arith.mulf %128, %126 : vector<8x256xf32>
    %130 = arith.addf %125, %129 : vector<8x256xf32>
    %131 = vector.extract_strided_slice %61 {offsets = [0, 159], sizes = [8, 256], strides = [1, 1]} : vector<8x512xf32> to vector<8x256xf32>
    %132 = vector.extract_strided_slice %2 {offsets = [0, 21], sizes = [8, 1], strides = [1, 1]} : vector<8x25xf32> to vector<8x1xf32>
    %133 = vector.broadcast %132 : vector<8x1xf32> to vector<8x256xf32>
    %134 = arith.mulf %133, %131 : vector<8x256xf32>
    %135 = arith.addf %130, %134 : vector<8x256xf32>
    %cst_25 = arith.constant 0.000000e+00 : f32
    %136 = vector.shape_cast %111 : vector<1x256xi1> to vector<1x256xi1>
    %137 = vector.broadcast %136 : vector<1x256xi1> to vector<8x256xi1>
    %138 = vector.broadcast %cst_25 : f32 to vector<8x256xf32>
    %139 = arith.select %137, %135, %138 : vector<8x256xi1>, vector<8x256xf32>
    %140 = arith.addf %102, %139 : vector<8x256xf32>
    %c0_i32_26 = arith.constant 0 : i32
    %141 = vector.broadcast %c0_i32_26 : i32 to vector<1x256xi32>
    %142 = arith.addi %16, %141 : vector<1x256xi32>
    %c0_i32_27 = arith.constant 0 : i32
    %143 = vector.broadcast %c0_i32_27 : i32 to vector<1x256xi32>
    %144 = arith.cmpi sge, %142, %143 : vector<1x256xi32>
    %c0_i32_28 = arith.constant 0 : i32
    %145 = vector.broadcast %c0_i32_28 : i32 to vector<1x256xi32>
    %146 = arith.addi %16, %145 : vector<1x256xi32>
    %c16_i32_29 = arith.constant 16 : i32
    %147 = vector.broadcast %c16_i32_29 : i32 to vector<1x256xi32>
    %148 = arith.cmpi slt, %146, %147 : vector<1x256xi32>
    %149 = arith.andi %144, %148 : vector<1x256xi1>
    %150 = vector.extract_strided_slice %61 {offsets = [0, 96], sizes = [8, 256], strides = [1, 1]} : vector<8x512xf32> to vector<8x256xf32>
    %151 = vector.extract_strided_slice %2 {offsets = [0, 2], sizes = [8, 1], strides = [1, 1]} : vector<8x25xf32> to vector<8x1xf32>
    %152 = vector.broadcast %151 : vector<8x1xf32> to vector<8x256xf32>
    %153 = arith.mulf %152, %150 : vector<8x256xf32>
    %154 = vector.extract_strided_slice %61 {offsets = [0, 112], sizes = [8, 256], strides = [1, 1]} : vector<8x512xf32> to vector<8x256xf32>
    %155 = vector.extract_strided_slice %2 {offsets = [0, 7], sizes = [8, 1], strides = [1, 1]} : vector<8x25xf32> to vector<8x1xf32>
    %156 = vector.broadcast %155 : vector<8x1xf32> to vector<8x256xf32>
    %157 = arith.mulf %156, %154 : vector<8x256xf32>
    %158 = arith.addf %153, %157 : vector<8x256xf32>
    %159 = vector.extract_strided_slice %61 {offsets = [0, 128], sizes = [8, 256], strides = [1, 1]} : vector<8x512xf32> to vector<8x256xf32>
    %160 = vector.extract_strided_slice %2 {offsets = [0, 12], sizes = [8, 1], strides = [1, 1]} : vector<8x25xf32> to vector<8x1xf32>
    %161 = vector.broadcast %160 : vector<8x1xf32> to vector<8x256xf32>
    %162 = arith.mulf %161, %159 : vector<8x256xf32>
    %163 = arith.addf %158, %162 : vector<8x256xf32>
    %164 = vector.extract_strided_slice %61 {offsets = [0, 144], sizes = [8, 256], strides = [1, 1]} : vector<8x512xf32> to vector<8x256xf32>
    %165 = vector.extract_strided_slice %2 {offsets = [0, 17], sizes = [8, 1], strides = [1, 1]} : vector<8x25xf32> to vector<8x1xf32>
    %166 = vector.broadcast %165 : vector<8x1xf32> to vector<8x256xf32>
    %167 = arith.mulf %166, %164 : vector<8x256xf32>
    %168 = arith.addf %163, %167 : vector<8x256xf32>
    %169 = vector.extract_strided_slice %61 {offsets = [0, 160], sizes = [8, 256], strides = [1, 1]} : vector<8x512xf32> to vector<8x256xf32>
    %170 = vector.extract_strided_slice %2 {offsets = [0, 22], sizes = [8, 1], strides = [1, 1]} : vector<8x25xf32> to vector<8x1xf32>
    %171 = vector.broadcast %170 : vector<8x1xf32> to vector<8x256xf32>
    %172 = arith.mulf %171, %169 : vector<8x256xf32>
    %173 = arith.addf %168, %172 : vector<8x256xf32>
    %cst_30 = arith.constant 0.000000e+00 : f32
    %174 = vector.shape_cast %149 : vector<1x256xi1> to vector<1x256xi1>
    %175 = vector.broadcast %174 : vector<1x256xi1> to vector<8x256xi1>
    %176 = vector.broadcast %cst_30 : f32 to vector<8x256xf32>
    %177 = arith.select %175, %173, %176 : vector<8x256xi1>, vector<8x256xf32>
    %178 = arith.addf %140, %177 : vector<8x256xf32>
    %c1_i32 = arith.constant 1 : i32
    %179 = vector.broadcast %c1_i32 : i32 to vector<1x256xi32>
    %180 = arith.addi %16, %179 : vector<1x256xi32>
    %c0_i32_31 = arith.constant 0 : i32
    %181 = vector.broadcast %c0_i32_31 : i32 to vector<1x256xi32>
    %182 = arith.cmpi sge, %180, %181 : vector<1x256xi32>
    %c1_i32_32 = arith.constant 1 : i32
    %183 = vector.broadcast %c1_i32_32 : i32 to vector<1x256xi32>
    %184 = arith.addi %16, %183 : vector<1x256xi32>
    %c16_i32_33 = arith.constant 16 : i32
    %185 = vector.broadcast %c16_i32_33 : i32 to vector<1x256xi32>
    %186 = arith.cmpi slt, %184, %185 : vector<1x256xi32>
    %187 = arith.andi %182, %186 : vector<1x256xi1>
    %188 = vector.extract_strided_slice %61 {offsets = [0, 97], sizes = [8, 256], strides = [1, 1]} : vector<8x512xf32> to vector<8x256xf32>
    %189 = vector.extract_strided_slice %2 {offsets = [0, 3], sizes = [8, 1], strides = [1, 1]} : vector<8x25xf32> to vector<8x1xf32>
    %190 = vector.broadcast %189 : vector<8x1xf32> to vector<8x256xf32>
    %191 = arith.mulf %190, %188 : vector<8x256xf32>
    %192 = vector.extract_strided_slice %61 {offsets = [0, 113], sizes = [8, 256], strides = [1, 1]} : vector<8x512xf32> to vector<8x256xf32>
    %193 = vector.extract_strided_slice %2 {offsets = [0, 8], sizes = [8, 1], strides = [1, 1]} : vector<8x25xf32> to vector<8x1xf32>
    %194 = vector.broadcast %193 : vector<8x1xf32> to vector<8x256xf32>
    %195 = arith.mulf %194, %192 : vector<8x256xf32>
    %196 = arith.addf %191, %195 : vector<8x256xf32>
    %197 = vector.extract_strided_slice %61 {offsets = [0, 129], sizes = [8, 256], strides = [1, 1]} : vector<8x512xf32> to vector<8x256xf32>
    %198 = vector.extract_strided_slice %2 {offsets = [0, 13], sizes = [8, 1], strides = [1, 1]} : vector<8x25xf32> to vector<8x1xf32>
    %199 = vector.broadcast %198 : vector<8x1xf32> to vector<8x256xf32>
    %200 = arith.mulf %199, %197 : vector<8x256xf32>
    %201 = arith.addf %196, %200 : vector<8x256xf32>
    %202 = vector.extract_strided_slice %61 {offsets = [0, 145], sizes = [8, 256], strides = [1, 1]} : vector<8x512xf32> to vector<8x256xf32>
    %203 = vector.extract_strided_slice %2 {offsets = [0, 18], sizes = [8, 1], strides = [1, 1]} : vector<8x25xf32> to vector<8x1xf32>
    %204 = vector.broadcast %203 : vector<8x1xf32> to vector<8x256xf32>
    %205 = arith.mulf %204, %202 : vector<8x256xf32>
    %206 = arith.addf %201, %205 : vector<8x256xf32>
    %207 = vector.extract_strided_slice %61 {offsets = [0, 161], sizes = [8, 256], strides = [1, 1]} : vector<8x512xf32> to vector<8x256xf32>
    %208 = vector.extract_strided_slice %2 {offsets = [0, 23], sizes = [8, 1], strides = [1, 1]} : vector<8x25xf32> to vector<8x1xf32>
    %209 = vector.broadcast %208 : vector<8x1xf32> to vector<8x256xf32>
    %210 = arith.mulf %209, %207 : vector<8x256xf32>
    %211 = arith.addf %206, %210 : vector<8x256xf32>
    %cst_34 = arith.constant 0.000000e+00 : f32
    %212 = vector.shape_cast %187 : vector<1x256xi1> to vector<1x256xi1>
    %213 = vector.broadcast %212 : vector<1x256xi1> to vector<8x256xi1>
    %214 = vector.broadcast %cst_34 : f32 to vector<8x256xf32>
    %215 = arith.select %213, %211, %214 : vector<8x256xi1>, vector<8x256xf32>
    %216 = arith.addf %178, %215 : vector<8x256xf32>
    %c2_i32 = arith.constant 2 : i32
    %217 = vector.broadcast %c2_i32 : i32 to vector<1x256xi32>
    %218 = arith.addi %16, %217 : vector<1x256xi32>
    %c0_i32_35 = arith.constant 0 : i32
    %219 = vector.broadcast %c0_i32_35 : i32 to vector<1x256xi32>
    %220 = arith.cmpi sge, %218, %219 : vector<1x256xi32>
    %c2_i32_36 = arith.constant 2 : i32
    %221 = vector.broadcast %c2_i32_36 : i32 to vector<1x256xi32>
    %222 = arith.addi %16, %221 : vector<1x256xi32>
    %c16_i32_37 = arith.constant 16 : i32
    %223 = vector.broadcast %c16_i32_37 : i32 to vector<1x256xi32>
    %224 = arith.cmpi slt, %222, %223 : vector<1x256xi32>
    %225 = arith.andi %220, %224 : vector<1x256xi1>
    %226 = vector.extract_strided_slice %61 {offsets = [0, 98], sizes = [8, 256], strides = [1, 1]} : vector<8x512xf32> to vector<8x256xf32>
    %227 = vector.extract_strided_slice %2 {offsets = [0, 4], sizes = [8, 1], strides = [1, 1]} : vector<8x25xf32> to vector<8x1xf32>
    %228 = vector.broadcast %227 : vector<8x1xf32> to vector<8x256xf32>
    %229 = arith.mulf %228, %226 : vector<8x256xf32>
    %230 = vector.extract_strided_slice %61 {offsets = [0, 114], sizes = [8, 256], strides = [1, 1]} : vector<8x512xf32> to vector<8x256xf32>
    %231 = vector.extract_strided_slice %2 {offsets = [0, 9], sizes = [8, 1], strides = [1, 1]} : vector<8x25xf32> to vector<8x1xf32>
    %232 = vector.broadcast %231 : vector<8x1xf32> to vector<8x256xf32>
    %233 = arith.mulf %232, %230 : vector<8x256xf32>
    %234 = arith.addf %229, %233 : vector<8x256xf32>
    %235 = vector.extract_strided_slice %61 {offsets = [0, 130], sizes = [8, 256], strides = [1, 1]} : vector<8x512xf32> to vector<8x256xf32>
    %236 = vector.extract_strided_slice %2 {offsets = [0, 14], sizes = [8, 1], strides = [1, 1]} : vector<8x25xf32> to vector<8x1xf32>
    %237 = vector.broadcast %236 : vector<8x1xf32> to vector<8x256xf32>
    %238 = arith.mulf %237, %235 : vector<8x256xf32>
    %239 = arith.addf %234, %238 : vector<8x256xf32>
    %240 = vector.extract_strided_slice %61 {offsets = [0, 146], sizes = [8, 256], strides = [1, 1]} : vector<8x512xf32> to vector<8x256xf32>
    %241 = vector.extract_strided_slice %2 {offsets = [0, 19], sizes = [8, 1], strides = [1, 1]} : vector<8x25xf32> to vector<8x1xf32>
    %242 = vector.broadcast %241 : vector<8x1xf32> to vector<8x256xf32>
    %243 = arith.mulf %242, %240 : vector<8x256xf32>
    %244 = arith.addf %239, %243 : vector<8x256xf32>
    %245 = vector.extract_strided_slice %61 {offsets = [0, 162], sizes = [8, 256], strides = [1, 1]} : vector<8x512xf32> to vector<8x256xf32>
    %246 = vector.extract_strided_slice %2 {offsets = [0, 24], sizes = [8, 1], strides = [1, 1]} : vector<8x25xf32> to vector<8x1xf32>
    %247 = vector.broadcast %246 : vector<8x1xf32> to vector<8x256xf32>
    %248 = arith.mulf %247, %245 : vector<8x256xf32>
    %249 = arith.addf %244, %248 : vector<8x256xf32>
    %cst_38 = arith.constant 0.000000e+00 : f32
    %250 = vector.shape_cast %225 : vector<1x256xi1> to vector<1x256xi1>
    %251 = vector.broadcast %250 : vector<1x256xi1> to vector<8x256xi1>
    %252 = vector.broadcast %cst_38 : f32 to vector<8x256xf32>
    %253 = arith.select %251, %249, %252 : vector<8x256xi1>, vector<8x256xf32>
    %254 = arith.addf %216, %253 : vector<8x256xf32>
    %cst_39 = arith.constant 0.000000e+00 : f32
    %255 = vector.broadcast %cst_39 : f32 to vector<8x256xf32>
    %256 = tpu.concatenate %255, %254, %255 in 1 : vector<8x256xf32>, vector<8x256xf32>, vector<8x256xf32> -> vector<8x768xf32>
    %cst_40 = arith.constant 0.000000e+00 : f32
    %257 = vector.broadcast %cst_40 : f32 to vector<8x256xf32>
    %258 = vector.broadcast %10 : vector<8x1xf32> to vector<8x256xf32>
    %259 = arith.addf %257, %258 : vector<8x256xf32>
    %c-9_i32 = arith.constant -9 : i32
    %260 = vector.broadcast %c-9_i32 : i32 to vector<1x256xi32>
    %261 = arith.addi %16, %260 : vector<1x256xi32>
    %c0_i32_41 = arith.constant 0 : i32
    %262 = vector.broadcast %c0_i32_41 : i32 to vector<1x256xi32>
    %263 = arith.cmpi sge, %261, %262 : vector<1x256xi32>
    %c-9_i32_42 = arith.constant -9 : i32
    %264 = vector.broadcast %c-9_i32_42 : i32 to vector<1x256xi32>
    %265 = arith.addi %16, %264 : vector<1x256xi32>
    %c16_i32_43 = arith.constant 16 : i32
    %266 = vector.broadcast %c16_i32_43 : i32 to vector<1x256xi32>
    %267 = arith.cmpi slt, %265, %266 : vector<1x256xi32>
    %268 = arith.andi %263, %267 : vector<1x256xi1>
    %269 = vector.extract_strided_slice %256 {offsets = [0, 103], sizes = [8, 256], strides = [1, 1]} : vector<8x768xf32> to vector<8x256xf32>
    %270 = vector.extract_strided_slice %3 {offsets = [0, 0], sizes = [8, 1], strides = [1, 1]} : vector<8x49xf32> to vector<8x1xf32>
    %271 = vector.broadcast %270 : vector<8x1xf32> to vector<8x256xf32>
    %272 = arith.mulf %271, %269 : vector<8x256xf32>
    %273 = vector.extract_strided_slice %256 {offsets = [0, 151], sizes = [8, 256], strides = [1, 1]} : vector<8x768xf32> to vector<8x256xf32>
    %274 = vector.extract_strided_slice %3 {offsets = [0, 7], sizes = [8, 1], strides = [1, 1]} : vector<8x49xf32> to vector<8x1xf32>
    %275 = vector.broadcast %274 : vector<8x1xf32> to vector<8x256xf32>
    %276 = arith.mulf %275, %273 : vector<8x256xf32>
    %277 = arith.addf %272, %276 : vector<8x256xf32>
    %278 = vector.extract_strided_slice %256 {offsets = [0, 199], sizes = [8, 256], strides = [1, 1]} : vector<8x768xf32> to vector<8x256xf32>
    %279 = vector.extract_strided_slice %3 {offsets = [0, 14], sizes = [8, 1], strides = [1, 1]} : vector<8x49xf32> to vector<8x1xf32>
    %280 = vector.broadcast %279 : vector<8x1xf32> to vector<8x256xf32>
    %281 = arith.mulf %280, %278 : vector<8x256xf32>
    %282 = arith.addf %277, %281 : vector<8x256xf32>
    %283 = vector.extract_strided_slice %256 {offsets = [0, 247], sizes = [8, 256], strides = [1, 1]} : vector<8x768xf32> to vector<8x256xf32>
    %284 = vector.extract_strided_slice %3 {offsets = [0, 21], sizes = [8, 1], strides = [1, 1]} : vector<8x49xf32> to vector<8x1xf32>
    %285 = vector.broadcast %284 : vector<8x1xf32> to vector<8x256xf32>
    %286 = arith.mulf %285, %283 : vector<8x256xf32>
    %287 = arith.addf %282, %286 : vector<8x256xf32>
    %288 = vector.extract_strided_slice %256 {offsets = [0, 295], sizes = [8, 256], strides = [1, 1]} : vector<8x768xf32> to vector<8x256xf32>
    %289 = vector.extract_strided_slice %3 {offsets = [0, 28], sizes = [8, 1], strides = [1, 1]} : vector<8x49xf32> to vector<8x1xf32>
    %290 = vector.broadcast %289 : vector<8x1xf32> to vector<8x256xf32>
    %291 = arith.mulf %290, %288 : vector<8x256xf32>
    %292 = arith.addf %287, %291 : vector<8x256xf32>
    %293 = vector.extract_strided_slice %256 {offsets = [0, 343], sizes = [8, 256], strides = [1, 1]} : vector<8x768xf32> to vector<8x256xf32>
    %294 = vector.extract_strided_slice %3 {offsets = [0, 35], sizes = [8, 1], strides = [1, 1]} : vector<8x49xf32> to vector<8x1xf32>
    %295 = vector.broadcast %294 : vector<8x1xf32> to vector<8x256xf32>
    %296 = arith.mulf %295, %293 : vector<8x256xf32>
    %297 = arith.addf %292, %296 : vector<8x256xf32>
    %298 = vector.extract_strided_slice %256 {offsets = [0, 391], sizes = [8, 256], strides = [1, 1]} : vector<8x768xf32> to vector<8x256xf32>
    %299 = vector.extract_strided_slice %3 {offsets = [0, 42], sizes = [8, 1], strides = [1, 1]} : vector<8x49xf32> to vector<8x1xf32>
    %300 = vector.broadcast %299 : vector<8x1xf32> to vector<8x256xf32>
    %301 = arith.mulf %300, %298 : vector<8x256xf32>
    %302 = arith.addf %297, %301 : vector<8x256xf32>
    %cst_44 = arith.constant 0.000000e+00 : f32
    %303 = vector.shape_cast %268 : vector<1x256xi1> to vector<1x256xi1>
    %304 = vector.broadcast %303 : vector<1x256xi1> to vector<8x256xi1>
    %305 = vector.broadcast %cst_44 : f32 to vector<8x256xf32>
    %306 = arith.select %304, %302, %305 : vector<8x256xi1>, vector<8x256xf32>
    %307 = arith.addf %259, %306 : vector<8x256xf32>
    %c-6_i32 = arith.constant -6 : i32
    %308 = vector.broadcast %c-6_i32 : i32 to vector<1x256xi32>
    %309 = arith.addi %16, %308 : vector<1x256xi32>
    %c0_i32_45 = arith.constant 0 : i32
    %310 = vector.broadcast %c0_i32_45 : i32 to vector<1x256xi32>
    %311 = arith.cmpi sge, %309, %310 : vector<1x256xi32>
    %c-6_i32_46 = arith.constant -6 : i32
    %312 = vector.broadcast %c-6_i32_46 : i32 to vector<1x256xi32>
    %313 = arith.addi %16, %312 : vector<1x256xi32>
    %c16_i32_47 = arith.constant 16 : i32
    %314 = vector.broadcast %c16_i32_47 : i32 to vector<1x256xi32>
    %315 = arith.cmpi slt, %313, %314 : vector<1x256xi32>
    %316 = arith.andi %311, %315 : vector<1x256xi1>
    %317 = vector.extract_strided_slice %256 {offsets = [0, 106], sizes = [8, 256], strides = [1, 1]} : vector<8x768xf32> to vector<8x256xf32>
    %318 = vector.extract_strided_slice %3 {offsets = [0, 1], sizes = [8, 1], strides = [1, 1]} : vector<8x49xf32> to vector<8x1xf32>
    %319 = vector.broadcast %318 : vector<8x1xf32> to vector<8x256xf32>
    %320 = arith.mulf %319, %317 : vector<8x256xf32>
    %321 = vector.extract_strided_slice %256 {offsets = [0, 154], sizes = [8, 256], strides = [1, 1]} : vector<8x768xf32> to vector<8x256xf32>
    %322 = vector.extract_strided_slice %3 {offsets = [0, 8], sizes = [8, 1], strides = [1, 1]} : vector<8x49xf32> to vector<8x1xf32>
    %323 = vector.broadcast %322 : vector<8x1xf32> to vector<8x256xf32>
    %324 = arith.mulf %323, %321 : vector<8x256xf32>
    %325 = arith.addf %320, %324 : vector<8x256xf32>
    %326 = vector.extract_strided_slice %256 {offsets = [0, 202], sizes = [8, 256], strides = [1, 1]} : vector<8x768xf32> to vector<8x256xf32>
    %327 = vector.extract_strided_slice %3 {offsets = [0, 15], sizes = [8, 1], strides = [1, 1]} : vector<8x49xf32> to vector<8x1xf32>
    %328 = vector.broadcast %327 : vector<8x1xf32> to vector<8x256xf32>
    %329 = arith.mulf %328, %326 : vector<8x256xf32>
    %330 = arith.addf %325, %329 : vector<8x256xf32>
    %331 = vector.extract_strided_slice %256 {offsets = [0, 250], sizes = [8, 256], strides = [1, 1]} : vector<8x768xf32> to vector<8x256xf32>
    %332 = vector.extract_strided_slice %3 {offsets = [0, 22], sizes = [8, 1], strides = [1, 1]} : vector<8x49xf32> to vector<8x1xf32>
    %333 = vector.broadcast %332 : vector<8x1xf32> to vector<8x256xf32>
    %334 = arith.mulf %333, %331 : vector<8x256xf32>
    %335 = arith.addf %330, %334 : vector<8x256xf32>
    %336 = vector.extract_strided_slice %256 {offsets = [0, 298], sizes = [8, 256], strides = [1, 1]} : vector<8x768xf32> to vector<8x256xf32>
    %337 = vector.extract_strided_slice %3 {offsets = [0, 29], sizes = [8, 1], strides = [1, 1]} : vector<8x49xf32> to vector<8x1xf32>
    %338 = vector.broadcast %337 : vector<8x1xf32> to vector<8x256xf32>
    %339 = arith.mulf %338, %336 : vector<8x256xf32>
    %340 = arith.addf %335, %339 : vector<8x256xf32>
    %341 = vector.extract_strided_slice %256 {offsets = [0, 346], sizes = [8, 256], strides = [1, 1]} : vector<8x768xf32> to vector<8x256xf32>
    %342 = vector.extract_strided_slice %3 {offsets = [0, 36], sizes = [8, 1], strides = [1, 1]} : vector<8x49xf32> to vector<8x1xf32>
    %343 = vector.broadcast %342 : vector<8x1xf32> to vector<8x256xf32>
    %344 = arith.mulf %343, %341 : vector<8x256xf32>
    %345 = arith.addf %340, %344 : vector<8x256xf32>
    %346 = vector.extract_strided_slice %256 {offsets = [0, 394], sizes = [8, 256], strides = [1, 1]} : vector<8x768xf32> to vector<8x256xf32>
    %347 = vector.extract_strided_slice %3 {offsets = [0, 43], sizes = [8, 1], strides = [1, 1]} : vector<8x49xf32> to vector<8x1xf32>
    %348 = vector.broadcast %347 : vector<8x1xf32> to vector<8x256xf32>
    %349 = arith.mulf %348, %346 : vector<8x256xf32>
    %350 = arith.addf %345, %349 : vector<8x256xf32>
    %cst_48 = arith.constant 0.000000e+00 : f32
    %351 = vector.shape_cast %316 : vector<1x256xi1> to vector<1x256xi1>
    %352 = vector.broadcast %351 : vector<1x256xi1> to vector<8x256xi1>
    %353 = vector.broadcast %cst_48 : f32 to vector<8x256xf32>
    %354 = arith.select %352, %350, %353 : vector<8x256xi1>, vector<8x256xf32>
    %355 = arith.addf %307, %354 : vector<8x256xf32>
    %c-3_i32 = arith.constant -3 : i32
    %356 = vector.broadcast %c-3_i32 : i32 to vector<1x256xi32>
    %357 = arith.addi %16, %356 : vector<1x256xi32>
    %c0_i32_49 = arith.constant 0 : i32
    %358 = vector.broadcast %c0_i32_49 : i32 to vector<1x256xi32>
    %359 = arith.cmpi sge, %357, %358 : vector<1x256xi32>
    %c-3_i32_50 = arith.constant -3 : i32
    %360 = vector.broadcast %c-3_i32_50 : i32 to vector<1x256xi32>
    %361 = arith.addi %16, %360 : vector<1x256xi32>
    %c16_i32_51 = arith.constant 16 : i32
    %362 = vector.broadcast %c16_i32_51 : i32 to vector<1x256xi32>
    %363 = arith.cmpi slt, %361, %362 : vector<1x256xi32>
    %364 = arith.andi %359, %363 : vector<1x256xi1>
    %365 = vector.extract_strided_slice %256 {offsets = [0, 109], sizes = [8, 256], strides = [1, 1]} : vector<8x768xf32> to vector<8x256xf32>
    %366 = vector.extract_strided_slice %3 {offsets = [0, 2], sizes = [8, 1], strides = [1, 1]} : vector<8x49xf32> to vector<8x1xf32>
    %367 = vector.broadcast %366 : vector<8x1xf32> to vector<8x256xf32>
    %368 = arith.mulf %367, %365 : vector<8x256xf32>
    %369 = vector.extract_strided_slice %256 {offsets = [0, 157], sizes = [8, 256], strides = [1, 1]} : vector<8x768xf32> to vector<8x256xf32>
    %370 = vector.extract_strided_slice %3 {offsets = [0, 9], sizes = [8, 1], strides = [1, 1]} : vector<8x49xf32> to vector<8x1xf32>
    %371 = vector.broadcast %370 : vector<8x1xf32> to vector<8x256xf32>
    %372 = arith.mulf %371, %369 : vector<8x256xf32>
    %373 = arith.addf %368, %372 : vector<8x256xf32>
    %374 = vector.extract_strided_slice %256 {offsets = [0, 205], sizes = [8, 256], strides = [1, 1]} : vector<8x768xf32> to vector<8x256xf32>
    %375 = vector.extract_strided_slice %3 {offsets = [0, 16], sizes = [8, 1], strides = [1, 1]} : vector<8x49xf32> to vector<8x1xf32>
    %376 = vector.broadcast %375 : vector<8x1xf32> to vector<8x256xf32>
    %377 = arith.mulf %376, %374 : vector<8x256xf32>
    %378 = arith.addf %373, %377 : vector<8x256xf32>
    %379 = vector.extract_strided_slice %256 {offsets = [0, 253], sizes = [8, 256], strides = [1, 1]} : vector<8x768xf32> to vector<8x256xf32>
    %380 = vector.extract_strided_slice %3 {offsets = [0, 23], sizes = [8, 1], strides = [1, 1]} : vector<8x49xf32> to vector<8x1xf32>
    %381 = vector.broadcast %380 : vector<8x1xf32> to vector<8x256xf32>
    %382 = arith.mulf %381, %379 : vector<8x256xf32>
    %383 = arith.addf %378, %382 : vector<8x256xf32>
    %384 = vector.extract_strided_slice %256 {offsets = [0, 301], sizes = [8, 256], strides = [1, 1]} : vector<8x768xf32> to vector<8x256xf32>
    %385 = vector.extract_strided_slice %3 {offsets = [0, 30], sizes = [8, 1], strides = [1, 1]} : vector<8x49xf32> to vector<8x1xf32>
    %386 = vector.broadcast %385 : vector<8x1xf32> to vector<8x256xf32>
    %387 = arith.mulf %386, %384 : vector<8x256xf32>
    %388 = arith.addf %383, %387 : vector<8x256xf32>
    %389 = vector.extract_strided_slice %256 {offsets = [0, 349], sizes = [8, 256], strides = [1, 1]} : vector<8x768xf32> to vector<8x256xf32>
    %390 = vector.extract_strided_slice %3 {offsets = [0, 37], sizes = [8, 1], strides = [1, 1]} : vector<8x49xf32> to vector<8x1xf32>
    %391 = vector.broadcast %390 : vector<8x1xf32> to vector<8x256xf32>
    %392 = arith.mulf %391, %389 : vector<8x256xf32>
    %393 = arith.addf %388, %392 : vector<8x256xf32>
    %394 = vector.extract_strided_slice %256 {offsets = [0, 397], sizes = [8, 256], strides = [1, 1]} : vector<8x768xf32> to vector<8x256xf32>
    %395 = vector.extract_strided_slice %3 {offsets = [0, 44], sizes = [8, 1], strides = [1, 1]} : vector<8x49xf32> to vector<8x1xf32>
    %396 = vector.broadcast %395 : vector<8x1xf32> to vector<8x256xf32>
    %397 = arith.mulf %396, %394 : vector<8x256xf32>
    %398 = arith.addf %393, %397 : vector<8x256xf32>
    %cst_52 = arith.constant 0.000000e+00 : f32
    %399 = vector.shape_cast %364 : vector<1x256xi1> to vector<1x256xi1>
    %400 = vector.broadcast %399 : vector<1x256xi1> to vector<8x256xi1>
    %401 = vector.broadcast %cst_52 : f32 to vector<8x256xf32>
    %402 = arith.select %400, %398, %401 : vector<8x256xi1>, vector<8x256xf32>
    %403 = arith.addf %355, %402 : vector<8x256xf32>
    %c0_i32_53 = arith.constant 0 : i32
    %404 = vector.broadcast %c0_i32_53 : i32 to vector<1x256xi32>
    %405 = arith.addi %16, %404 : vector<1x256xi32>
    %c0_i32_54 = arith.constant 0 : i32
    %406 = vector.broadcast %c0_i32_54 : i32 to vector<1x256xi32>
    %407 = arith.cmpi sge, %405, %406 : vector<1x256xi32>
    %c0_i32_55 = arith.constant 0 : i32
    %408 = vector.broadcast %c0_i32_55 : i32 to vector<1x256xi32>
    %409 = arith.addi %16, %408 : vector<1x256xi32>
    %c16_i32_56 = arith.constant 16 : i32
    %410 = vector.broadcast %c16_i32_56 : i32 to vector<1x256xi32>
    %411 = arith.cmpi slt, %409, %410 : vector<1x256xi32>
    %412 = arith.andi %407, %411 : vector<1x256xi1>
    %413 = vector.extract_strided_slice %256 {offsets = [0, 112], sizes = [8, 256], strides = [1, 1]} : vector<8x768xf32> to vector<8x256xf32>
    %414 = vector.extract_strided_slice %3 {offsets = [0, 3], sizes = [8, 1], strides = [1, 1]} : vector<8x49xf32> to vector<8x1xf32>
    %415 = vector.broadcast %414 : vector<8x1xf32> to vector<8x256xf32>
    %416 = arith.mulf %415, %413 : vector<8x256xf32>
    %417 = vector.extract_strided_slice %256 {offsets = [0, 160], sizes = [8, 256], strides = [1, 1]} : vector<8x768xf32> to vector<8x256xf32>
    %418 = vector.extract_strided_slice %3 {offsets = [0, 10], sizes = [8, 1], strides = [1, 1]} : vector<8x49xf32> to vector<8x1xf32>
    %419 = vector.broadcast %418 : vector<8x1xf32> to vector<8x256xf32>
    %420 = arith.mulf %419, %417 : vector<8x256xf32>
    %421 = arith.addf %416, %420 : vector<8x256xf32>
    %422 = vector.extract_strided_slice %256 {offsets = [0, 208], sizes = [8, 256], strides = [1, 1]} : vector<8x768xf32> to vector<8x256xf32>
    %423 = vector.extract_strided_slice %3 {offsets = [0, 17], sizes = [8, 1], strides = [1, 1]} : vector<8x49xf32> to vector<8x1xf32>
    %424 = vector.broadcast %423 : vector<8x1xf32> to vector<8x256xf32>
    %425 = arith.mulf %424, %422 : vector<8x256xf32>
    %426 = arith.addf %421, %425 : vector<8x256xf32>
    %427 = vector.extract_strided_slice %256 {offsets = [0, 256], sizes = [8, 256], strides = [1, 1]} : vector<8x768xf32> to vector<8x256xf32>
    %428 = vector.extract_strided_slice %3 {offsets = [0, 24], sizes = [8, 1], strides = [1, 1]} : vector<8x49xf32> to vector<8x1xf32>
    %429 = vector.broadcast %428 : vector<8x1xf32> to vector<8x256xf32>
    %430 = arith.mulf %429, %427 : vector<8x256xf32>
    %431 = arith.addf %426, %430 : vector<8x256xf32>
    %432 = vector.extract_strided_slice %256 {offsets = [0, 304], sizes = [8, 256], strides = [1, 1]} : vector<8x768xf32> to vector<8x256xf32>
    %433 = vector.extract_strided_slice %3 {offsets = [0, 31], sizes = [8, 1], strides = [1, 1]} : vector<8x49xf32> to vector<8x1xf32>
    %434 = vector.broadcast %433 : vector<8x1xf32> to vector<8x256xf32>
    %435 = arith.mulf %434, %432 : vector<8x256xf32>
    %436 = arith.addf %431, %435 : vector<8x256xf32>
    %437 = vector.extract_strided_slice %256 {offsets = [0, 352], sizes = [8, 256], strides = [1, 1]} : vector<8x768xf32> to vector<8x256xf32>
    %438 = vector.extract_strided_slice %3 {offsets = [0, 38], sizes = [8, 1], strides = [1, 1]} : vector<8x49xf32> to vector<8x1xf32>
    %439 = vector.broadcast %438 : vector<8x1xf32> to vector<8x256xf32>
    %440 = arith.mulf %439, %437 : vector<8x256xf32>
    %441 = arith.addf %436, %440 : vector<8x256xf32>
    %442 = vector.extract_strided_slice %256 {offsets = [0, 400], sizes = [8, 256], strides = [1, 1]} : vector<8x768xf32> to vector<8x256xf32>
    %443 = vector.extract_strided_slice %3 {offsets = [0, 45], sizes = [8, 1], strides = [1, 1]} : vector<8x49xf32> to vector<8x1xf32>
    %444 = vector.broadcast %443 : vector<8x1xf32> to vector<8x256xf32>
    %445 = arith.mulf %444, %442 : vector<8x256xf32>
    %446 = arith.addf %441, %445 : vector<8x256xf32>
    %cst_57 = arith.constant 0.000000e+00 : f32
    %447 = vector.shape_cast %412 : vector<1x256xi1> to vector<1x256xi1>
    %448 = vector.broadcast %447 : vector<1x256xi1> to vector<8x256xi1>
    %449 = vector.broadcast %cst_57 : f32 to vector<8x256xf32>
    %450 = arith.select %448, %446, %449 : vector<8x256xi1>, vector<8x256xf32>
    %451 = arith.addf %403, %450 : vector<8x256xf32>
    %c3_i32 = arith.constant 3 : i32
    %452 = vector.broadcast %c3_i32 : i32 to vector<1x256xi32>
    %453 = arith.addi %16, %452 : vector<1x256xi32>
    %c0_i32_58 = arith.constant 0 : i32
    %454 = vector.broadcast %c0_i32_58 : i32 to vector<1x256xi32>
    %455 = arith.cmpi sge, %453, %454 : vector<1x256xi32>
    %c3_i32_59 = arith.constant 3 : i32
    %456 = vector.broadcast %c3_i32_59 : i32 to vector<1x256xi32>
    %457 = arith.addi %16, %456 : vector<1x256xi32>
    %c16_i32_60 = arith.constant 16 : i32
    %458 = vector.broadcast %c16_i32_60 : i32 to vector<1x256xi32>
    %459 = arith.cmpi slt, %457, %458 : vector<1x256xi32>
    %460 = arith.andi %455, %459 : vector<1x256xi1>
    %461 = vector.extract_strided_slice %256 {offsets = [0, 115], sizes = [8, 256], strides = [1, 1]} : vector<8x768xf32> to vector<8x256xf32>
    %462 = vector.extract_strided_slice %3 {offsets = [0, 4], sizes = [8, 1], strides = [1, 1]} : vector<8x49xf32> to vector<8x1xf32>
    %463 = vector.broadcast %462 : vector<8x1xf32> to vector<8x256xf32>
    %464 = arith.mulf %463, %461 : vector<8x256xf32>
    %465 = vector.extract_strided_slice %256 {offsets = [0, 163], sizes = [8, 256], strides = [1, 1]} : vector<8x768xf32> to vector<8x256xf32>
    %466 = vector.extract_strided_slice %3 {offsets = [0, 11], sizes = [8, 1], strides = [1, 1]} : vector<8x49xf32> to vector<8x1xf32>
    %467 = vector.broadcast %466 : vector<8x1xf32> to vector<8x256xf32>
    %468 = arith.mulf %467, %465 : vector<8x256xf32>
    %469 = arith.addf %464, %468 : vector<8x256xf32>
    %470 = vector.extract_strided_slice %256 {offsets = [0, 211], sizes = [8, 256], strides = [1, 1]} : vector<8x768xf32> to vector<8x256xf32>
    %471 = vector.extract_strided_slice %3 {offsets = [0, 18], sizes = [8, 1], strides = [1, 1]} : vector<8x49xf32> to vector<8x1xf32>
    %472 = vector.broadcast %471 : vector<8x1xf32> to vector<8x256xf32>
    %473 = arith.mulf %472, %470 : vector<8x256xf32>
    %474 = arith.addf %469, %473 : vector<8x256xf32>
    %475 = vector.extract_strided_slice %256 {offsets = [0, 259], sizes = [8, 256], strides = [1, 1]} : vector<8x768xf32> to vector<8x256xf32>
    %476 = vector.extract_strided_slice %3 {offsets = [0, 25], sizes = [8, 1], strides = [1, 1]} : vector<8x49xf32> to vector<8x1xf32>
    %477 = vector.broadcast %476 : vector<8x1xf32> to vector<8x256xf32>
    %478 = arith.mulf %477, %475 : vector<8x256xf32>
    %479 = arith.addf %474, %478 : vector<8x256xf32>
    %480 = vector.extract_strided_slice %256 {offsets = [0, 307], sizes = [8, 256], strides = [1, 1]} : vector<8x768xf32> to vector<8x256xf32>
    %481 = vector.extract_strided_slice %3 {offsets = [0, 32], sizes = [8, 1], strides = [1, 1]} : vector<8x49xf32> to vector<8x1xf32>
    %482 = vector.broadcast %481 : vector<8x1xf32> to vector<8x256xf32>
    %483 = arith.mulf %482, %480 : vector<8x256xf32>
    %484 = arith.addf %479, %483 : vector<8x256xf32>
    %485 = vector.extract_strided_slice %256 {offsets = [0, 355], sizes = [8, 256], strides = [1, 1]} : vector<8x768xf32> to vector<8x256xf32>
    %486 = vector.extract_strided_slice %3 {offsets = [0, 39], sizes = [8, 1], strides = [1, 1]} : vector<8x49xf32> to vector<8x1xf32>
    %487 = vector.broadcast %486 : vector<8x1xf32> to vector<8x256xf32>
    %488 = arith.mulf %487, %485 : vector<8x256xf32>
    %489 = arith.addf %484, %488 : vector<8x256xf32>
    %490 = vector.extract_strided_slice %256 {offsets = [0, 403], sizes = [8, 256], strides = [1, 1]} : vector<8x768xf32> to vector<8x256xf32>
    %491 = vector.extract_strided_slice %3 {offsets = [0, 46], sizes = [8, 1], strides = [1, 1]} : vector<8x49xf32> to vector<8x1xf32>
    %492 = vector.broadcast %491 : vector<8x1xf32> to vector<8x256xf32>
    %493 = arith.mulf %492, %490 : vector<8x256xf32>
    %494 = arith.addf %489, %493 : vector<8x256xf32>
    %cst_61 = arith.constant 0.000000e+00 : f32
    %495 = vector.shape_cast %460 : vector<1x256xi1> to vector<1x256xi1>
    %496 = vector.broadcast %495 : vector<1x256xi1> to vector<8x256xi1>
    %497 = vector.broadcast %cst_61 : f32 to vector<8x256xf32>
    %498 = arith.select %496, %494, %497 : vector<8x256xi1>, vector<8x256xf32>
    %499 = arith.addf %451, %498 : vector<8x256xf32>
    %c6_i32 = arith.constant 6 : i32
    %500 = vector.broadcast %c6_i32 : i32 to vector<1x256xi32>
    %501 = arith.addi %16, %500 : vector<1x256xi32>
    %c0_i32_62 = arith.constant 0 : i32
    %502 = vector.broadcast %c0_i32_62 : i32 to vector<1x256xi32>
    %503 = arith.cmpi sge, %501, %502 : vector<1x256xi32>
    %c6_i32_63 = arith.constant 6 : i32
    %504 = vector.broadcast %c6_i32_63 : i32 to vector<1x256xi32>
    %505 = arith.addi %16, %504 : vector<1x256xi32>
    %c16_i32_64 = arith.constant 16 : i32
    %506 = vector.broadcast %c16_i32_64 : i32 to vector<1x256xi32>
    %507 = arith.cmpi slt, %505, %506 : vector<1x256xi32>
    %508 = arith.andi %503, %507 : vector<1x256xi1>
    %509 = vector.extract_strided_slice %256 {offsets = [0, 118], sizes = [8, 256], strides = [1, 1]} : vector<8x768xf32> to vector<8x256xf32>
    %510 = vector.extract_strided_slice %3 {offsets = [0, 5], sizes = [8, 1], strides = [1, 1]} : vector<8x49xf32> to vector<8x1xf32>
    %511 = vector.broadcast %510 : vector<8x1xf32> to vector<8x256xf32>
    %512 = arith.mulf %511, %509 : vector<8x256xf32>
    %513 = vector.extract_strided_slice %256 {offsets = [0, 166], sizes = [8, 256], strides = [1, 1]} : vector<8x768xf32> to vector<8x256xf32>
    %514 = vector.extract_strided_slice %3 {offsets = [0, 12], sizes = [8, 1], strides = [1, 1]} : vector<8x49xf32> to vector<8x1xf32>
    %515 = vector.broadcast %514 : vector<8x1xf32> to vector<8x256xf32>
    %516 = arith.mulf %515, %513 : vector<8x256xf32>
    %517 = arith.addf %512, %516 : vector<8x256xf32>
    %518 = vector.extract_strided_slice %256 {offsets = [0, 214], sizes = [8, 256], strides = [1, 1]} : vector<8x768xf32> to vector<8x256xf32>
    %519 = vector.extract_strided_slice %3 {offsets = [0, 19], sizes = [8, 1], strides = [1, 1]} : vector<8x49xf32> to vector<8x1xf32>
    %520 = vector.broadcast %519 : vector<8x1xf32> to vector<8x256xf32>
    %521 = arith.mulf %520, %518 : vector<8x256xf32>
    %522 = arith.addf %517, %521 : vector<8x256xf32>
    %523 = vector.extract_strided_slice %256 {offsets = [0, 262], sizes = [8, 256], strides = [1, 1]} : vector<8x768xf32> to vector<8x256xf32>
    %524 = vector.extract_strided_slice %3 {offsets = [0, 26], sizes = [8, 1], strides = [1, 1]} : vector<8x49xf32> to vector<8x1xf32>
    %525 = vector.broadcast %524 : vector<8x1xf32> to vector<8x256xf32>
    %526 = arith.mulf %525, %523 : vector<8x256xf32>
    %527 = arith.addf %522, %526 : vector<8x256xf32>
    %528 = vector.extract_strided_slice %256 {offsets = [0, 310], sizes = [8, 256], strides = [1, 1]} : vector<8x768xf32> to vector<8x256xf32>
    %529 = vector.extract_strided_slice %3 {offsets = [0, 33], sizes = [8, 1], strides = [1, 1]} : vector<8x49xf32> to vector<8x1xf32>
    %530 = vector.broadcast %529 : vector<8x1xf32> to vector<8x256xf32>
    %531 = arith.mulf %530, %528 : vector<8x256xf32>
    %532 = arith.addf %527, %531 : vector<8x256xf32>
    %533 = vector.extract_strided_slice %256 {offsets = [0, 358], sizes = [8, 256], strides = [1, 1]} : vector<8x768xf32> to vector<8x256xf32>
    %534 = vector.extract_strided_slice %3 {offsets = [0, 40], sizes = [8, 1], strides = [1, 1]} : vector<8x49xf32> to vector<8x1xf32>
    %535 = vector.broadcast %534 : vector<8x1xf32> to vector<8x256xf32>
    %536 = arith.mulf %535, %533 : vector<8x256xf32>
    %537 = arith.addf %532, %536 : vector<8x256xf32>
    %538 = vector.extract_strided_slice %256 {offsets = [0, 406], sizes = [8, 256], strides = [1, 1]} : vector<8x768xf32> to vector<8x256xf32>
    %539 = vector.extract_strided_slice %3 {offsets = [0, 47], sizes = [8, 1], strides = [1, 1]} : vector<8x49xf32> to vector<8x1xf32>
    %540 = vector.broadcast %539 : vector<8x1xf32> to vector<8x256xf32>
    %541 = arith.mulf %540, %538 : vector<8x256xf32>
    %542 = arith.addf %537, %541 : vector<8x256xf32>
    %cst_65 = arith.constant 0.000000e+00 : f32
    %543 = vector.shape_cast %508 : vector<1x256xi1> to vector<1x256xi1>
    %544 = vector.broadcast %543 : vector<1x256xi1> to vector<8x256xi1>
    %545 = vector.broadcast %cst_65 : f32 to vector<8x256xf32>
    %546 = arith.select %544, %542, %545 : vector<8x256xi1>, vector<8x256xf32>
    %547 = arith.addf %499, %546 : vector<8x256xf32>
    %c9_i32 = arith.constant 9 : i32
    %548 = vector.broadcast %c9_i32 : i32 to vector<1x256xi32>
    %549 = arith.addi %16, %548 : vector<1x256xi32>
    %c0_i32_66 = arith.constant 0 : i32
    %550 = vector.broadcast %c0_i32_66 : i32 to vector<1x256xi32>
    %551 = arith.cmpi sge, %549, %550 : vector<1x256xi32>
    %c9_i32_67 = arith.constant 9 : i32
    %552 = vector.broadcast %c9_i32_67 : i32 to vector<1x256xi32>
    %553 = arith.addi %16, %552 : vector<1x256xi32>
    %c16_i32_68 = arith.constant 16 : i32
    %554 = vector.broadcast %c16_i32_68 : i32 to vector<1x256xi32>
    %555 = arith.cmpi slt, %553, %554 : vector<1x256xi32>
    %556 = arith.andi %551, %555 : vector<1x256xi1>
    %557 = vector.extract_strided_slice %256 {offsets = [0, 121], sizes = [8, 256], strides = [1, 1]} : vector<8x768xf32> to vector<8x256xf32>
    %558 = vector.extract_strided_slice %3 {offsets = [0, 6], sizes = [8, 1], strides = [1, 1]} : vector<8x49xf32> to vector<8x1xf32>
    %559 = vector.broadcast %558 : vector<8x1xf32> to vector<8x256xf32>
    %560 = arith.mulf %559, %557 : vector<8x256xf32>
    %561 = vector.extract_strided_slice %256 {offsets = [0, 169], sizes = [8, 256], strides = [1, 1]} : vector<8x768xf32> to vector<8x256xf32>
    %562 = vector.extract_strided_slice %3 {offsets = [0, 13], sizes = [8, 1], strides = [1, 1]} : vector<8x49xf32> to vector<8x1xf32>
    %563 = vector.broadcast %562 : vector<8x1xf32> to vector<8x256xf32>
    %564 = arith.mulf %563, %561 : vector<8x256xf32>
    %565 = arith.addf %560, %564 : vector<8x256xf32>
    %566 = vector.extract_strided_slice %256 {offsets = [0, 217], sizes = [8, 256], strides = [1, 1]} : vector<8x768xf32> to vector<8x256xf32>
    %567 = vector.extract_strided_slice %3 {offsets = [0, 20], sizes = [8, 1], strides = [1, 1]} : vector<8x49xf32> to vector<8x1xf32>
    %568 = vector.broadcast %567 : vector<8x1xf32> to vector<8x256xf32>
    %569 = arith.mulf %568, %566 : vector<8x256xf32>
    %570 = arith.addf %565, %569 : vector<8x256xf32>
    %571 = vector.extract_strided_slice %256 {offsets = [0, 265], sizes = [8, 256], strides = [1, 1]} : vector<8x768xf32> to vector<8x256xf32>
    %572 = vector.extract_strided_slice %3 {offsets = [0, 27], sizes = [8, 1], strides = [1, 1]} : vector<8x49xf32> to vector<8x1xf32>
    %573 = vector.broadcast %572 : vector<8x1xf32> to vector<8x256xf32>
    %574 = arith.mulf %573, %571 : vector<8x256xf32>
    %575 = arith.addf %570, %574 : vector<8x256xf32>
    %576 = vector.extract_strided_slice %256 {offsets = [0, 313], sizes = [8, 256], strides = [1, 1]} : vector<8x768xf32> to vector<8x256xf32>
    %577 = vector.extract_strided_slice %3 {offsets = [0, 34], sizes = [8, 1], strides = [1, 1]} : vector<8x49xf32> to vector<8x1xf32>
    %578 = vector.broadcast %577 : vector<8x1xf32> to vector<8x256xf32>
    %579 = arith.mulf %578, %576 : vector<8x256xf32>
    %580 = arith.addf %575, %579 : vector<8x256xf32>
    %581 = vector.extract_strided_slice %256 {offsets = [0, 361], sizes = [8, 256], strides = [1, 1]} : vector<8x768xf32> to vector<8x256xf32>
    %582 = vector.extract_strided_slice %3 {offsets = [0, 41], sizes = [8, 1], strides = [1, 1]} : vector<8x49xf32> to vector<8x1xf32>
    %583 = vector.broadcast %582 : vector<8x1xf32> to vector<8x256xf32>
    %584 = arith.mulf %583, %581 : vector<8x256xf32>
    %585 = arith.addf %580, %584 : vector<8x256xf32>
    %586 = vector.extract_strided_slice %256 {offsets = [0, 409], sizes = [8, 256], strides = [1, 1]} : vector<8x768xf32> to vector<8x256xf32>
    %587 = vector.extract_strided_slice %3 {offsets = [0, 48], sizes = [8, 1], strides = [1, 1]} : vector<8x49xf32> to vector<8x1xf32>
    %588 = vector.broadcast %587 : vector<8x1xf32> to vector<8x256xf32>
    %589 = arith.mulf %588, %586 : vector<8x256xf32>
    %590 = arith.addf %585, %589 : vector<8x256xf32>
    %cst_69 = arith.constant 0.000000e+00 : f32
    %591 = vector.shape_cast %556 : vector<1x256xi1> to vector<1x256xi1>
    %592 = vector.broadcast %591 : vector<1x256xi1> to vector<8x256xi1>
    %593 = vector.broadcast %cst_69 : f32 to vector<8x256xf32>
    %594 = arith.select %592, %590, %593 : vector<8x256xi1>, vector<8x256xf32>
    %595 = arith.addf %547, %594 : vector<8x256xf32>
    %cst_70 = arith.constant dense<0.000000e+00> : vector<8x256xf32>
    %596 = tpu.matmul %5, %595, %cst_70 {dimension_numbers = #tpu.dot_dimension_numbers<[1], [0], [0], [1], [0, 0, 1, 1], [], []>} : vector<8x8xf32>, vector<8x256xf32>, vector<8x256xf32> -> vector<8x256xf32>
    %597 = vector.broadcast %11 : vector<8x1xf32> to vector<8x256xf32>
    %598 = arith.addf %596, %597 : vector<8x256xf32>
    %cst_71 = arith.constant dense<0.000000e+00> : vector<8x256xf32>
    %599 = tpu.matmul %6, %595, %cst_71 {dimension_numbers = #tpu.dot_dimension_numbers<[1], [0], [0], [1], [0, 0, 1, 1], [], []>} : vector<8x8xf32>, vector<8x256xf32>, vector<8x256xf32> -> vector<8x256xf32>
    %600 = vector.broadcast %12 : vector<8x1xf32> to vector<8x256xf32>
    %601 = arith.addf %599, %600 : vector<8x256xf32>
    %602 = arith.negf %601 : vector<8x256xf32>
    %603 = math.exp %602 : vector<8x256xf32>
    %cst_72 = arith.constant 1.000000e+00 : f32
    %604 = vector.broadcast %cst_72 : f32 to vector<8x256xf32>
    %605 = arith.addf %604, %603 : vector<8x256xf32>
    %606 = arith.divf %604, %605 : vector<8x256xf32>
    %607 = arith.mulf %606, %598 : vector<8x256xf32>
    %cst_73 = arith.constant dense<0.000000e+00> : vector<8x256xf32>
    %608 = tpu.matmul %7, %607, %cst_73 {dimension_numbers = #tpu.dot_dimension_numbers<[1], [0], [0], [1], [0, 0, 1, 1], [], []>} : vector<8x8xf32>, vector<8x256xf32>, vector<8x256xf32> -> vector<8x256xf32>
    %609 = vector.broadcast %13 : vector<8x1xf32> to vector<8x256xf32>
    %610 = arith.addf %608, %609 : vector<8x256xf32>
    %611 = arith.addf %610, %0 : vector<8x256xf32>
    %c0_74 = arith.constant 0 : index
    %c0_75 = arith.constant 0 : index
    %612 = vector.load %arg2[%c0_74, %c0_75] : memref<8x256xf32, #tpu.memory_space<vmem>>, vector<8x256xf32>
    tpu.vector_store %arg2[%c0_74, %c0_75], %611 {strides = array<i32>} : memref<8x256xf32, #tpu.memory_space<vmem>>, vector<8x256xf32>,
    return
  }
}

</mosaic_0001>

<bundles_post_ra>
// kernel: tile.64
= control target key start
LH: loop header
LB: loop body
LE: loop exit
PB: predicated region body
PF: predicated region fallthrough
CT: control target
= control target key end

     0   :  { %s22_s0 = inlined_call_operand.vmem [shape: f32[4], index: 0, kind: input, shape index: {}]   ;;  %s23_s1 = inlined_call_operand.vmem [shape: f32[2,4], index: 1, kind: output, shape index: {}]  }
   0x1   :  { %v4_v0 = vld [vmem:[%s22_s0] ss:$0 sm:$0xff] }
   0x2   :  { %5 = vst [vmem:[%s23_s1] sm:$0x3] %v4_v0 }

// kernel: tile.3
= control target key start
LH: loop header
LB: loop body
LE: loop exit
PB: predicated region body
PF: predicated region fallthrough
CT: control target
= control target key end

     0   :  { %s34_s8 = smov 125   ;;  %vm7_vm0 = vcmask 7168   ;;  %s35_s11 = smov 126   ;;  %s61_s0 = inlined_call_operand.vmem [shape: f32[2,4], index: 0, kind: input, shape index: {}]   ;;  %s62_s1 = inlined_call_operand.vmem [shape: f32[8,1], index: 1, kind: output, shape index: {}]  }
   0x1   :  { %v4_v0 = vld [vmem:[%s61_s0] sm:$0x3]  ;;  %s33_s0 = smov 127  }
   0x2   :  { %5 = vst [vmem:[#allocation0] sm:$0x3] %v4_v0 }
   0x9   :  { %v9_v1 = vld [vmem:[#allocation0] sm:$0x3]  }
   0xa   :  { %v21_v2 = vld [vmem:[#allocation0] sm:$0x3]   ;;  %10 = vrot.lane.b32.xlu0 %v9_v1, %s33_s0 }
   0xb   :  { %22 = vrot.lane.b32.xlu1 %v21_v2, %s34_s8  ;;  %v6_v3 = vld [vmem:[#allocation0] sm:$0x3]  }
   0xc   :  { %v15_v4 = vld [vmem:[#allocation0] sm:$0x3]   ;;  %8 = vst.msk [vmem:[%s62_s1] ss:$4 sm:$0x3] %vm7_vm0, %v6_v3  }
   0xe   :  { %16 = vrot.lane.b32.xlu0 %v15_v4, %s35_s11 }
  0x7c   :  { %v11_v5 = vpop.permute.xlu0 %10  }
  0x7d   :  { %v23_v6 = vpop.permute.xlu1 %22   ;;  %27 = vst.msk [vmem:[%s62_s1 + $0x1] ss:$4 sm:$0x3] %vm7_vm0, %v11_v5  }
  0x7e   :  { %29 = vst.msk [vmem:[%s62_s1 + $0x3] ss:$4 sm:$0x3] %vm7_vm0, %v23_v6  }
  0x80   :  { %v17_v7 = vpop.permute.xlu0 %16  }
  0x81   :  { %28 = vst.msk [vmem:[%s62_s1 + $0x2] ss:$4 sm:$0x3] %vm7_vm0, %v17_v7  }

// kernel: spatial_attention.1
= control target key start
LH: loop header
LB: loop body
LE: loop exit
PB: predicated region body
PF: predicated region fallthrough
CT: control target
= control target key end

     0   :  { %v2499_v0 = vmov 5   ;;  %v2500_v2 = vmov 106   ;;  %s2501_s13 = smov 54   ;;  %v2502_v5 = vmov 10   ;;  %v4071_v6 = vmov 0.0   ;;  %s2537_s16 = smov 112   ;;  %s4068_s1 = inlined_call_operand.vmem [shape: f32[8,112], index: 1, kind: input, shape index: {}]   ;;  %s4069_s0 = inlined_call_operand.vmem [shape: f32[8,256], index: 0, kind: input, shape index: {}]   ;;  %s4070_s2 = inlined_call_operand.vmem [shape: f32[8,256], index: 2, kind: output, shape index: {}]  }
   0x1   :  { %2400 = vset.pattern.permute.xlu1 %v2499_v0  ;;  %v2617_v1 = vld [vmem:[%s4068_s1] sm:$0xff]  ;;  %2399 = vset.pattern.permute.xlu0 %v2500_v2  ;;  %v12_v3 = vld [vmem:[%s4069_s0 + $0x8] sm:$0xff]  ;;  %v2504_v7 = vmov 15   ;;  %v2505_v8 = vmov 6   ;;  %v2506_v9 = vmov 20   ;;  %v2507_v10 = vmov 11  }
   0x2   :  { %175 = vperm.xlu1 %2400, %v2617_v1   ;;  %24 = vrot.lane.b32.xlu0 %v2617_v1, %s2501_s13  ;;  %v11_v4 = vld [vmem:[%s4069_s0] sm:$0xff]  ;;  %v2508_v11 = vmov 12   ;;  %v2509_v12 = vmov 7   ;;  %v2510_v13 = vmov 9   ;;  %v2511_v14 = vmov 16   ;;  %s2538_s17 = smov 96  }
   0x3   :  { %29 = vmatprep.subr.mxu0 %v12_v3  ;;  %93 = vmatprep.mubr.f32.mxu0 %v4071_v6  ;;  %v2512_v15 = vmov 14   ;;  %v2513_v16 = vmov 8   ;;  %v2514_v17 = vmov 19   ;;  %v2515_v18 = vmov 21   ;;  %s2539_s18 = smov 80   ;;  %s2540_s19 = smov 64  }
   0x4   :  { %30 = vmatpush1.msra.mxu0 %v11_v4  ;;  %2106 = vmatprep.mubr.f32.mxu1 %v4071_v6  ;;  %v2516_v19 = vmov 1   ;;  %v2517_v20 = vmov 13   ;;  %v2518_v21 = vmov 107   ;;  %v2519_v22 = vmov 17   ;;  %s2567_s20 = smov 32   ;;  %s2582_s21 = smov 16  }
   0x5   :  { %v2520_v23 = vmov 33   ;;  %v2521_v24 = vmov 18   ;;  %v2522_v25 = vmov 40   ;;  %v2523_v26 = vmov 22   ;;  %s2583_s22 = smov 34   ;;  %s2584_s23 = smov 33  }
   0x6   :  { %2401 = vset.pattern.permute.xlu1 %v2502_v5  ;;  %21 = vperm.xlu0 %2399, %v2617_v1   ;;  %v2524_v27 = vmov 23   ;;  %v2525_v28 = vmov 47   ;;  %v2526_v29 = vmov 24   ;;  %v2527_v30 = vmov 0   ;;  %s2585_s24 = smov 30   ;;  %s2586_s25 = smov 31  }
   0x7   :  { %200 = vperm.xlu1 %2401, %v2617_v1   ;;  %v2528_v31 = vmov 2   ;;  %v2529_v32 = vmov 3   ;;  %v2530_v33 = vmov 4   ;;  %v2531_v34 = vmov 32   ;;  %s2589_s28 = smov 25   ;;  %s2590_s29 = smov 19  }
   0x8   :  { %v2532_v35 = vmov 39   ;;  %v2533_v36 = vmov 46   ;;  %v2534_v37 = vmov 34   ;;  %v2535_v38 = vmov 53   ;;  %s2591_s30 = smov 10   ;;  %s2592_s3 = smov 22  }
   0x9   :  { %vm26_vm0 = vcmask 64512   ;;  %v2536_v40 = vmov 41   ;;  %vm190_vm3 = vcmask 916480   ;;  %vm215_vm4 = vcmask 785408   ;;  %s2593_s4 = smov 7   ;;  %s2596_s5 = smov 46  }
   0xa   :  { %2403 = vset.pattern.permute.xlu0 %v2504_v7  ;;  %vm240_vm5 = vcmask 654336   ;;  %vm265_vm6 = vcmask 523264   ;;  %vm287_vm7 = vcmask 277504   ;;  %vm420_vm10 = vcmask 269312   ;;  %s2597_s6 = smov 38  }
   0xb   :  { %2402 = vset.pattern.permute.xlu1 %v2505_v8  ;;  %225 = vperm.xlu0 %2403, %v2617_v1   ;;  %vm546_vm11 = vcmask 261120   ;;  %vm679_vm15 = vcmask 252928  }
   0xc   :  { %312 = vperm.xlu1 %2402, %v2617_v1  }
   0xf   :  { %2406 = vset.pattern.permute.xlu0 %v2506_v9 }
  0x10   :  { %2404 = vset.pattern.permute.xlu1 %v2507_v10  ;;  %250 = vperm.xlu0 %2406, %v2617_v1  }
  0x11   :  { %336 = vperm.xlu1 %2404, %v2617_v1  }
  0x14   :  { %2409 = vset.pattern.permute.xlu0 %v2508_v11 }
  0x15   :  { %2405 = vset.pattern.permute.xlu1 %v2509_v12  ;;  %467 = vperm.xlu0 %2409, %v2617_v1  }
  0x16   :  { %443 = vperm.xlu1 %2405, %v2617_v1  }
  0x19   :  { %2412 = vset.pattern.permute.xlu0 %v2510_v13 }
  0x1a   :  { %2407 = vset.pattern.permute.xlu1 %v2511_v14  ;;  %704 = vperm.xlu0 %2412, %v2617_v1  }
  0x1b   :  { %360 = vperm.xlu1 %2407, %v2617_v1  }
  0x1e   :  { %2415 = vset.pattern.permute.xlu0 %v2512_v15 }
  0x1f   :  { %2408 = vset.pattern.permute.xlu1 %v2513_v16  ;;  %728 = vperm.xlu0 %2415, %v2617_v1  }
  0x20   :  { %571 = vperm.xlu1 %2408, %v2617_v1  }
  0x23   :  { %2418 = vset.pattern.permute.xlu0 %v2514_v17 }
  0x24   :  { %2410 = vset.pattern.permute.xlu1 %v2515_v18  ;;  %752 = vperm.xlu0 %2418, %v2617_v1   ;;  %v2541_v18 = vmov 60  }
  0x25   :  { %384 = vperm.xlu1 %2410, %v2617_v1  }
  0x28   :  { %2421 = vset.pattern.permute.xlu0 %v2516_v19  ;;  %v2542_v19 = vmov 35  }
  0x29   :  { %2411 = vset.pattern.permute.xlu1 %v2517_v20  ;;  %305 = vperm.xlu0 %2421, %v2617_v1  }
  0x2a   :  { %595 = vperm.xlu1 %2411, %v2617_v1  }
  0x2d   :  { %2425 = vset.pattern.permute.xlu0 %v2518_v21  ;;  %v2543_v21 = vmov 36  }
  0x2e   :  { %2413 = vset.pattern.permute.xlu1 %v2519_v22  ;;  %155 = vperm.xlu0 %2425, %v2617_v1   ;;  %v2544_v22 = vmov 54  }
  0x2f   :  { %486 = vperm.xlu1 %2413, %v2617_v1  }
  0x32   :  { %2428 = vset.pattern.permute.xlu0 %v2520_v23  ;;  %v2545_v23 = vmov 61  }
  0x33   :  { %2414 = vset.pattern.permute.xlu1 %v2521_v24  ;;  %1017 = vperm.xlu0 %2428, %v2617_v1   ;;  %v2546_v24 = vmov 48  }
  0x34   :  { %619 = vperm.xlu1 %2414, %v2617_v1  }
  0x37   :  { %2430 = vset.pattern.permute.xlu0 %v2522_v25  ;;  %v2547_v25 = vmov 37  }
  0x38   :  { %2416 = vset.pattern.permute.xlu1 %v2523_v26  ;;  %1041 = vperm.xlu0 %2430, %v2617_v1   ;;  %v2548_v26 = vmov 42  }
  0x39   :  { %510 = vperm.xlu1 %2416, %v2617_v1  }
  0x3c   :  { %2433 = vset.pattern.permute.xlu0 %v2525_v28  ;;  %v2550_v28 = vmov 67  }
  0x3d   :  { %2417 = vset.pattern.permute.xlu1 %v2524_v27  ;;  %v2549_v27 = vmov 62  }
  0x3e   :  { %643 = vperm.xlu1 %2417, %v2617_v1  }
  0x42   :  { %2419 = vset.pattern.permute.xlu1 %v2526_v29  ;;  %v2551_v29 = vmov 38  }
  0x43   :  { %776 = vperm.xlu1 %2419, %v2617_v1  }
  0x47   :  { %2420 = vset.pattern.permute.xlu1 %v2527_v30 }
  0x48   :  { %168 = vperm.xlu1 %2420, %v2617_v1  }
  0x4c   :  { %2422 = vset.pattern.permute.xlu1 %v2528_v31  ;;  %v2552_v31 = vmov 55  }
  0x4d   :  { %436 = vperm.xlu1 %2422, %v2617_v1  }
  0x51   :  { %2423 = vset.pattern.permute.xlu1 %v2529_v32  ;;  %v2553_v32 = vmov 57  }
  0x52   :  { %564 = vperm.xlu1 %2423, %v2617_v1  }
  0x56   :  { %2424 = vset.pattern.permute.xlu1 %v2530_v33  ;;  %v2554_v33 = vmov 43  }
  0x57   :  { %697 = vperm.xlu1 %2424, %v2617_v1  }
  0x5b   :  { %2426 = vset.pattern.permute.xlu1 %v2531_v34 }
  0x5c   :  { %841 = vperm.xlu1 %2426, %v2617_v1  }
  0x60   :  { %2427 = vset.pattern.permute.xlu1 %v2532_v35  ;;  %v2555_v35 = vmov 63  }
  0x61   :  { %865 = vperm.xlu1 %2427, %v2617_v1  }
  0x65   :  { %2429 = vset.pattern.permute.xlu1 %v2533_v36  ;;  %v2556_v36 = vmov 49  }
  0x66   :  { %889 = vperm.xlu1 %2429, %v2617_v1  }
  0x6a   :  { %2431 = vset.pattern.permute.xlu1 %v2534_v37  ;;  %v2557_v37 = vmov 52  }
  0x6b   :  { %1192 = vperm.xlu1 %2431, %v2617_v1  }
  0x6f   :  { %2432 = vset.pattern.permute.xlu1 %v2535_v38 }
  0x70   :  { %913 = vperm.xlu1 %2432, %v2617_v1  }
  0x74   :  { %v25_v39 = vpop.permute.xlu0 %24  ;;  %2434 = vset.pattern.permute.xlu1 %v2536_v40  ;;  %v2559_v40 = vmov 65  }
  0x75   :  { %2293 = vmatmul.mubr.msk.f32.vlgmr.msra.gmra.mrb[0].mxu0 %vm26_vm0, %v25_v39  ;;  %v2558_v39 = vmov 68  }
  0x76   :  { %2185 = vmatprep.mubr.f32.mxu0 %v4071_v6 }
  0x81   :  { %v2664_v41 = vpop.permute.xlu1 %175 }
  0x82   :  { %v178_v42 = vmul.f32 0.0, %v2664_v41 }
  0x84   :  { %184 = vrot.lane.b32.xlu0 %v178_v42, %s2537_s16 }
  0x85   :  { %v2668_v43 = vpop.permute.xlu0 %21 }
  0x86   :  { %v2670_v44 = vpop.permute.xlu1 %200 }
  0x87   :  { %v203_v45 = vmul.f32 0.0, %v2670_v44 }
  0x89   :  { %209 = vrot.lane.b32.xlu0 %v203_v45, %s2538_s17 }
  0x8a   :  { %v2674_v46 = vpop.permute.xlu0 %225 }
  0x8b   :  { %v2676_v47 = vpop.permute.xlu1 %312  ;;  %v230_v48 = vmul.f32 0.0, %v2674_v46 }
  0x8c   :  { %v315_v49 = vmul.f32 0.0, %v2676_v47 }
  0x8d   :  { %238 = vrot.lane.b32.xlu0 %v230_v48, %s2539_s18  ;;  %v2560_v48 = vmov 50  }
  0x8e   :  { %321 = vrot.lane.b32.xlu1 %v315_v49, %s2537_s16  ;;  %v2561_v49 = vmov 66  }
  0x8f   :  { %v2684_v51 = vpop.permute.xlu0 %250 }
  0x90   :  { %v2682_v50 = vpop.permute.xlu1 %336  ;;  %v255_v53 = vmul.f32 0.0, %v2684_v51 }
  0x91   :  { %v339_v52 = vmul.f32 0.0, %v2682_v50 }
  0x93   :  { %345 = vrot.lane.b32.xlu1 %v339_v52, %s2538_s17 }
  0x94   :  { %v2698_v58 = vpop.permute.xlu0 %467 }
  0x95   :  { %v2689_v54 = vpop.permute.xlu1 %443 }
  0x96   :  { %v446_v55 = vmul.f32 0.0, %v2689_v54 }
  0x97   :  { %263 = vrot.lane.b32.xlu1 %v255_v53, %s2540_s19  ;;  %v2562_v53 = vmov 44  }
  0x98   :  { %452 = vrot.lane.b32.xlu0 %v446_v55, %s2537_s16 }
  0x99   :  { %v2706_v62 = vpop.permute.xlu0 %704 }
  0x9a   :  { %v2694_v56 = vpop.permute.xlu1 %360  ;;  %v707_v0 = vmul.f32 0.0, %v2706_v62 }
  0x9b   :  { %v365_v57 = vmul.f32 0.0, %v2694_v56 }
  0x9d   :  { %373 = vrot.lane.b32.xlu0 %v365_v57, %s2539_s18  ;;  %v2563_v57 = vmov 26  }
  0x9e   :  { %v2718_v5 = vpop.permute.xlu0 %728 }
  0x9f   :  { %v2700_v59 = vpop.permute.xlu1 %571  ;;  %v733_v8 = vmul.f32 0.0, %v2718_v5 }
  0xa0   :  { %v574_v60 = vmul.f32 0.0, %v2700_v59 }
  0xa2   :  { %580 = vrot.lane.b32.xlu1 %v574_v60, %s2537_s16 }
  0xa3   :  { %v2730_v12 = vpop.permute.xlu0 %752 }
  0xa4   :  { %v2704_v61 = vpop.permute.xlu1 %384  ;;  %v757_v14 = vmul.f32 0.0, %v2730_v12 }
  0xa5   :  { %v389_v63 = vmul.f32 0.0, %v2704_v61 }
  0xa7   :  { %397 = vrot.lane.b32.xlu0 %v389_v63, %s2540_s19 }
  0xa8   :  { %v2773_v45 = vpop.permute.xlu0 %305 }
  0xa9   :  { %v2711_v2 = vpop.permute.xlu1 %595 }
  0xaa   :  { %v600_v3 = vmul.f32 0.0, %v2711_v2 }
  0xab   :  { %713 = vrot.lane.b32.xlu0 %v707_v0, %s2537_s16  ;;  %v2564_v0 = vmov 56  }
  0xac   :  { %608 = vrot.lane.b32.xlu1 %v600_v3, %s2538_s17 }
  0xad   :  { %v2779_v55 = vpop.permute.xlu0 %155 }
  0xae   :  { %v2716_v4 = vpop.permute.xlu1 %486  ;;  %4170 = vst [vmem:[#allocation3_spill] sm:$0xff] %v2779_v55 }
  0xaf   :  { %v491_v7 = vmul.f32 0.0, %v2716_v4 }
  0xb1   :  { %499 = vrot.lane.b32.xlu1 %v491_v7, %s2539_s18 }
  0xb2   :  { %v2789_v7 = vpop.permute.xlu0 %1017 }
  0xb3   :  { %v2723_v9 = vpop.permute.xlu1 %619  ;;  %4172 = vst [vmem:[#allocation5_spill] sm:$0xff] %v2789_v7 }
  0xb4   :  { %v624_v10 = vmul.f32 0.0, %v2723_v9 }
  0xb5   :  { %741 = vrot.lane.b32.xlu1 %v733_v8, %s2538_s17  ;;  %v2565_v8 = vmov 30  }
  0xb6   :  { %632 = vrot.lane.b32.xlu0 %v624_v10, %s2539_s18  ;;  %v2566_v10 = vmov 69  }
  0xb8   :  { %v2728_v11 = vpop.permute.xlu1 %510 }
  0xb9   :  { %v515_v13 = vmul.f32 0.0, %v2728_v11 }
  0xbb   :  { %523 = vrot.lane.b32.xlu0 %v515_v13, %s2540_s19 }
  0xbd   :  { %v2735_v15 = vpop.permute.xlu1 %643 }
  0xbe   :  { %v648_v16 = vmul.f32 0.0, %v2735_v15 }
  0xbf   :  { %765 = vrot.lane.b32.xlu0 %v757_v14, %s2539_s18  ;;  %v2795_v14 = vpop.permute.xlu0 %1041 }
  0xc0   :  { %656 = vrot.lane.b32.xlu1 %v648_v16, %s2540_s19  ;;  %4174 = vst [vmem:[#allocation7_spill] sm:$0xff] %v2795_v14  ;;  %v1044_v16 = vmul.f32 0.0, %v2795_v14 }
  0xc2   :  { %v2742_v17 = vpop.permute.xlu1 %776 }
  0xc3   :  { %1065 = vperm.xlu0 %2433, %v2617_v1   ;;  %v781_v20 = vmul.f32 0.0, %v2742_v17 }
  0xc4   :  { %1216 = vperm.xlu1 %2434, %v2617_v1  }
  0xc7   :  { %2436 = vset.pattern.permute.xlu0 %v2541_v18  ;;  %v2757_v30 = vpop.permute.xlu1 %168  ;;  %v2568_v18 = vmov 51  }
  0xc8   :  { %2435 = vset.pattern.permute.xlu1 %v2542_v19  ;;  %937 = vperm.xlu0 %2436, %v2617_v1  }
  0xc9   :  { %1359 = vperm.xlu1 %2435, %v2617_v1  }
  0xcc   :  { %2439 = vset.pattern.permute.xlu0 %v2543_v21  ;;  %v2761_v34 = vpop.permute.xlu1 %436 }
  0xcd   :  { %789 = vrot.lane.b32.xlu1 %v781_v20, %s2540_s19  ;;  %1524 = vperm.xlu0 %2439, %v2617_v1   ;;  %v2569_v20 = vmov 31  }
  0xce   :  { %2437 = vset.pattern.permute.xlu1 %v2544_v22  ;;  %v2570_v22 = vmov 45  }
  0xd1   :  { %1089 = vperm.xlu1 %2437, %v2617_v1   ;;  %2442 = vset.pattern.permute.xlu0 %v2545_v23  ;;  %v2766_v38 = vpop.permute.xlu1 %564 }
  0xd2   :  { %1113 = vperm.xlu0 %2442, %v2617_v1  }
  0xd5   :  { %2438 = vset.pattern.permute.xlu1 %v2546_v24  ;;  %v2571_v24 = vmov 64  }
  0xd6   :  { %1240 = vperm.xlu1 %2438, %v2617_v1   ;;  %2445 = vset.pattern.permute.xlu0 %v2547_v25  ;;  %v2771_v42 = vpop.permute.xlu1 %697 }
  0xd7   :  { %1699 = vperm.xlu0 %2445, %v2617_v1  }
  0xda   :  { %2440 = vset.pattern.permute.xlu1 %v2548_v26 }
  0xdb   :  { %1383 = vperm.xlu1 %2440, %v2617_v1   ;;  %2448 = vset.pattern.permute.xlu0 %v2549_v27  ;;  %v2777_v52 = vpop.permute.xlu1 %841 }
  0xdc   :  { %1288 = vperm.xlu0 %2448, %v2617_v1   ;;  %4169 = vst [vmem:[#allocation2_spill] sm:$0xff] %v2777_v52  ;;  %v844_v60 = vmul.f32 0.0, %v2777_v52 }
  0xdf   :  { %2441 = vset.pattern.permute.xlu1 %v2550_v28  ;;  %v2572_v28 = vmov 58  }
  0xe0   :  { %962 = vperm.xlu1 %2441, %v2617_v1   ;;  %2451 = vset.pattern.permute.xlu0 %v2551_v29  ;;  %v2784_v63 = vpop.permute.xlu1 %865  ;;  %v2573_v29 = vmov 70  }
  0xe1   :  { %1874 = vperm.xlu0 %2451, %v2617_v1   ;;  %4171 = vst [vmem:[#allocation4_spill] sm:$0xff] %v2784_v63  ;;  %v868_v3 = vmul.f32 0.0, %v2784_v63 }
  0xe4   :  { %2443 = vset.pattern.permute.xlu1 %v2552_v31 }
  0xe5   :  { %1264 = vperm.xlu1 %2443, %v2617_v1   ;;  %2454 = vset.pattern.permute.xlu0 %v2553_v32  ;;  %v2793_v13 = vpop.permute.xlu1 %889 }
  0xe6   :  { %1596 = vperm.xlu0 %2454, %v2617_v1   ;;  %4173 = vst [vmem:[#allocation6_spill] sm:$0xff] %v2793_v13 }
  0xe9   :  { %2444 = vset.pattern.permute.xlu1 %v2554_v33 }
  0xea   :  { %1548 = vperm.xlu1 %2444, %v2617_v1   ;;  %2457 = vset.pattern.permute.xlu0 %v2555_v35  ;;  %v2800_v19 = vpop.permute.xlu1 %1192  ;;  %v2574_v35 = vmov 71  }
  0xeb   :  { %1450 = vperm.xlu0 %2457, %v2617_v1   ;;  %4175 = vst [vmem:[#allocation8_spill] sm:$0xff] %v2800_v19 }
  0xee   :  { %2446 = vset.pattern.permute.xlu1 %v2556_v36 }
  0xef   :  { %1407 = vperm.xlu1 %2446, %v2617_v1   ;;  %2460 = vset.pattern.permute.xlu0 %v2557_v37  ;;  %v2807_v23 = vpop.permute.xlu1 %913  ;;  %v2575_v37 = vmov 59  }
  0xf0   :  { %1922 = vperm.xlu0 %2460, %v2617_v1   ;;  %4176 = vst [vmem:[#allocation9_spill] sm:$0xff] %v2807_v23 }
  0xf3   :  { %2447 = vset.pattern.permute.xlu1 %v2558_v39 }
  0xf4   :  { %1137 = vperm.xlu1 %2447, %v2617_v1   ;;  %2463 = vset.pattern.permute.xlu0 %v2559_v40 }
  0xf5   :  { %1795 = vperm.xlu0 %2463, %v2617_v1  }
  0xf6   :  { %v2803_v21 = vpop.permute.xlu0 %184 }
  0xf8   :  { %2449 = vset.pattern.permute.xlu1 %v2560_v48 }
  0xf9   :  { %1572 = vperm.xlu1 %2449, %v2617_v1   ;;  %2466 = vset.pattern.permute.xlu0 %v2561_v49 }
  0xfa   :  { %1970 = vperm.xlu0 %2466, %v2617_v1  }
  0xfb   :  { %v2809_v25 = vpop.permute.xlu0 %209 }
  0xfd   :  { %2450 = vset.pattern.permute.xlu1 %v2562_v53  ;;  %v2576_v53 = vmov 72  }
  0xfe   :  { %1723 = vperm.xlu1 %2450, %v2617_v1   ;;  %2469 = vset.pattern.permute.xlu0 %v2563_v57  ;;  %v2577_v57 = vmov 73  }
  0xff   :  { %1011 = vperm.xlu0 %2469, %v2617_v1   ;;  %v2814_v27 = vpop.permute.xlu0 %238 }
 0x100   :  { %v2812_v26 = vpop.permute.xlu1 %321 }
 0x102   :  { %2452 = vset.pattern.permute.xlu1 %v2564_v0 }
 0x103   :  { %1426 = vperm.xlu1 %2452, %v2617_v1   ;;  %850 = vrot.lane.b32.xlu0 %v844_v60, %s2539_s18 }
 0x104   :  { %2473 = vset.pattern.permute.xlu0 %v2565_v8  ;;  %v2578_v8 = vmov 25  }
 0x105   :  { %v2817_v31 = vpop.permute.xlu1 %345 }
 0x107   :  { %2453 = vset.pattern.permute.xlu1 %v2566_v10  ;;  %874 = vrot.lane.b32.xlu0 %v868_v3, %s2567_s20 }
 0x108   :  { %1312 = vperm.xlu1 %2453, %v2617_v1  }
 0x109   :  { %v2822_v33 = vpop.permute.xlu1 %263 }
 0x10a   :  { %v2819_v32 = vpop.permute.xlu0 %452 }
 0x10b   :  { %1693 = vperm.xlu0 %2473, %v2617_v1  }
 0x10c   :  { %2455 = vset.pattern.permute.xlu1 %v2568_v18 }
 0x10d   :  { %1747 = vperm.xlu1 %2455, %v2617_v1  }
 0x10f   :  { %1050 = vrot.lane.b32.xlu0 %v1044_v16, %s2567_s20  ;;  %v2825_v36 = vpop.permute.xlu0 %373  ;;  %v2579_v16 = vmov 27  }
 0x110   :  { %2474 = vset.pattern.permute.xlu0 %v2569_v20 }
 0x111   :  { %2456 = vset.pattern.permute.xlu1 %v2570_v22  ;;  %v2580_v22 = vmov 28  }
 0x112   :  { %1898 = vperm.xlu1 %2456, %v2617_v1  }
 0x113   :  { %1868 = vperm.xlu0 %2474, %v2617_v1  }
 0x114   :  { %v2827_v39 = vpop.permute.xlu1 %580 }
 0x116   :  { %2458 = vset.pattern.permute.xlu1 %v2571_v24 }
 0x117   :  { %1620 = vperm.xlu1 %2458, %v2617_v1  }
 0x119   :  { %v2829_v40 = vpop.permute.xlu0 %397 }
 0x11b   :  { %2459 = vset.pattern.permute.xlu1 %v2572_v28 }
 0x11c   :  { %1771 = vperm.xlu1 %2459, %v2617_v1  }
 0x11d   :  { %v2834_v49 = vpop.permute.xlu0 %713 }
 0x11e   :  { %v2832_v48 = vpop.permute.xlu1 %608 }
 0x120   :  { %2461 = vset.pattern.permute.xlu1 %v2573_v29 }
 0x121   :  { %1474 = vperm.xlu1 %2461, %v2617_v1  }
 0x123   :  { %v2837_v60 = vpop.permute.xlu1 %499 }
 0x125   :  { %2462 = vset.pattern.permute.xlu1 %v2574_v35  ;;  %v2581_v35 = vmov 29  }
 0x126   :  { %1644 = vperm.xlu1 %2462, %v2617_v1  }
 0x127   :  { %v2842_v3 = vpop.permute.xlu1 %741 }
 0x128   :  { %v2839_v0 = vpop.permute.xlu0 %632  ;;  %4177 = vst [vmem:[#allocation10_spill] sm:$0xff] %v2842_v3 }
 0x12a   :  { %2464 = vset.pattern.permute.xlu1 %v2575_v37 }
 0x12b   :  { %1946 = vperm.xlu1 %2464, %v2617_v1  }
 0x12d   :  { %v2845_v10 = vpop.permute.xlu0 %523 }
 0x12f   :  { %2465 = vset.pattern.permute.xlu1 %v2576_v53 }
 0x130   :  { %1819 = vperm.xlu1 %2465, %v2617_v1  }
 0x131   :  { %v2850_v20 = vpop.permute.xlu0 %765 }
 0x132   :  { %v2847_v18 = vpop.permute.xlu1 %656  ;;  %4179 = vst [vmem:[#allocation12_spill] sm:$0xff] %v2850_v20 }
 0x133   :  { %4178 = vst [vmem:[#allocation11_spill] sm:$0xff] %v2847_v18 }
 0x134   :  { %2467 = vset.pattern.permute.xlu1 %v2577_v57 }
 0x135   :  { %1994 = vperm.xlu1 %2467, %v2617_v1  }
 0x139   :  { %2468 = vset.pattern.permute.xlu1 %v2578_v8 }
 0x13a   :  { %835 = vperm.xlu1 %2468, %v2617_v1  }
 0x13e   :  { %2470 = vset.pattern.permute.xlu1 %v2579_v16 }
 0x13f   :  { %1186 = vperm.xlu1 %2470, %v2617_v1  }
 0x142   :  { %v2856_v29 = vpop.permute.xlu0 %1065 }
 0x143   :  { %2471 = vset.pattern.permute.xlu1 %v2580_v22  ;;  %v2852_v24 = vpop.permute.xlu1 %1216  ;;  %4181 = vst [vmem:[#allocation14_spill] sm:$0xff] %v2856_v29  ;;  %v1020_v22 = vmul.f32 0.0, %v2789_v7 }
 0x144   :  { %4180 = vst [vmem:[#allocation13_spill] sm:$0xff] %v2852_v24  ;;  %1353 = vperm.xlu1 %2471, %v2617_v1   ;;  %v1219_v28 = vmul.f32 0.0, %v2852_v24 }
 0x146   :  { %1225 = vrot.lane.b32.xlu0 %v1219_v28, %s2567_s20 }
 0x147   :  { %v2871_v28 = vpop.permute.xlu0 %937 }
 0x148   :  { %2472 = vset.pattern.permute.xlu1 %v2581_v35  ;;  %v2859_v37 = vpop.permute.xlu1 %1359  ;;  %v95_v53 = vpop.f32.mrb[0].mxu0 }
 0x149   :  { %4182 = vst [vmem:[#allocation15_spill] sm:$0xff] %v2859_v37  ;;  %v2862_v57 = vadd.f32 %v95_v53, %v2668_v43  ;;  %1518 = vperm.xlu1 %2472, %v2617_v1   ;;  %v97_v8 = vpop.f32.mrb[1].mxu0  ;;  %v1362_v16 = vmul.f32 0.0, %v2859_v37  ;;  %v1195_v1 = vmul.f32 0.0, %v2800_v19 }
 0x14a   :  { %v2886_v52 = vadd.f32 %v97_v8, %v2668_v43 }
 0x14b   :  { %v2868_v6 = vmul.f32 0.70710677, %v2862_v57  ;;  %1368 = vrot.lane.b32.xlu0 %v1362_v16, %s2539_s18  ;;  %v892_v16 = vmul.f32 0.0, %v2793_v13  ;;  %v942_v13 = vmul.f32 0.0, %v2871_v28 }
 0x14c   :  { %v2873_v35 = vpop.permute.xlu1 %789  ;;  %v2882_v63 = vpop.permute.xlu0 %1524 }
 0x14d   :  { %4183 = vst [vmem:[#allocation16_spill] sm:$0xff] %v2873_v35  ;;  %v104_v24 = vand.u32 2147483647, %v2868_v6  ;;  %1026 = vrot.lane.b32.xlu1 %v1020_v22, %s2539_s18  ;;  %v1527_v35 = vmul.f32 0.0, %v2882_v63  ;;  %vm144_vm1 = vcmp.lt.f32.partialorder %v2868_v6, 0.0  ;;  %v100_v6 = vmul.f32 0.5, %v2862_v57 }
 0x14f   :  { %v106_v53 = vmul.f32 0.3275911, %v104_v24 }
 0x150   :  { %v2878_v14 = vpop.permute.xlu1 %1089 }
 0x151   :  { %4184 = vst [vmem:[#allocation17_spill] sm:$0xff] %v2878_v14  ;;  %v108_v37 = vadd.f32 1.0, %v106_v53  ;;  %1201 = vrot.lane.b32.xlu1 %v1195_v1, %s2539_s18  ;;  %v1094_v7 = vmul.f32 0.0, %v2878_v14  ;;  %v918_v1 = vmul.f32 0.0, %v2807_v23  ;;  %v2895_v14 = vmul.f32 0.70710677, %v2886_v52  ;;  %v2897_v19 = vpop.permute.xlu0 %1113 }
 0x152   :  { %4186 = vst [vmem:[#allocation19_spill] sm:$0xff] %v2897_v19  ;;  %v1118_v43 = vmul.f32 0.0, %v2897_v19 }
 0x153   :  { %2480 = vrcp.f32 %v108_v37  ;;  %1102 = vrot.lane.b32.xlu0 %v1094_v7, %s2540_s19  ;;  %v132_v37 = vsub.f32 0.0, %v104_v24  ;;  %v1068_v7 = vmul.f32 0.0, %v2856_v29  ;;  %vm145_vm2 = vcmp.lt.f32.partialorder %v2895_v14, 0.0 }
 0x155   :  { %v2889_v22 = vpop.permute.xlu1 %1240  ;;  %898 = vrot.lane.b32.xlu1 %v892_v16, %s2537_s16  ;;  %v2906_v16 = vand.u32 2147483647, %v2895_v14  ;;  %v134_v23 = vmul.f32 %v132_v37, %v104_v24 }
 0x156   :  { %4185 = vst [vmem:[#allocation18_spill] sm:$0xff] %v2889_v22  ;;  %v1243_v53 = vmul.f32 0.0, %v2889_v22  ;;  %v2918_v24 = vpop.permute.xlu0 %1699 }
 0x157   :  { %v107_v19 = vmul.f32 0.3275911, %v2906_v16  ;;  %v136_v55 = vmul.f32 1.442695, %v134_v23  ;;  %4189 = vst [vmem:[#allocation22_spill] sm:$0xff] %v2918_v24 }
 0x158   :  { %1249 = vrot.lane.b32.xlu0 %v1243_v53, %s2537_s16 }
 0x159   :  { %926 = vrot.lane.b32.xlu1 %v918_v1, %s2540_s19  ;;  %v109_v20 = vadd.f32 1.0, %v107_v19  ;;  %2482 = vpow2.f32 %v136_v55 }
 0x15a   :  { %v2903_v8 = vpop.permute.xlu1 %1383 }
 0x15b   :  { %2484 = vrcp.f32 %v109_v20 }
 0x15c   :  { %1126 = vrot.lane.b32.xlu0 %v1118_v43, %s2582_s21 }
 0x15d   :  { %v2481_v22 = vpop.eup %2480  ;;  %1074 = vrot.lane.b32.xlu1 %v1068_v7, %s2537_s16  ;;  %v1386_v7 = vmul.f32 0.0, %v2903_v8 }
 0x15e   :  { %v114_v53 = vmul.f32 1.0614054, %v2481_v22 }
 0x15f   :  { %v2912_v29 = vpop.permute.xlu1 %962 }
 0x160   :  { %4187 = vst [vmem:[#allocation20_spill] sm:$0xff] %v2912_v29  ;;  %v116_v1 = vadd.f32 -1.4531521, %v114_v53 }
 0x161   :  { %950 = vrot.lane.b32.xlu1 %v942_v13, %s2582_s21 }
 0x162   :  { %v118_v18 = vmul.f32 %v2481_v22, %v116_v1  ;;  %v2927_v1 = vpop.permute.xlu0 %1288 }
 0x163   :  { %4191 = vst [vmem:[#allocation24_spill] sm:$0xff] %v2927_v1 }
 0x164   :  { %v120_v43 = vadd.f32 1.4214138, %v118_v18  ;;  %v2916_v3 = vpop.permute.xlu1 %1264  ;;  %v966_v18 = vmul.f32 0.0, %v2912_v29  ;;  %v1702_v29 = vmul.f32 0.0, %v2918_v24 }
 0x165   :  { %4188 = vst [vmem:[#allocation21_spill] sm:$0xff] %v2916_v3  ;;  %1533 = vrot.lane.b32.xlu1 %v1527_v35, %s2539_s18  ;;  %v1293_v35 = vmul.f32 0.0, %v2927_v1 }
 0x166   :  { %v122_v37 = vmul.f32 %v2481_v22, %v120_v43 }
 0x168   :  { %v124_v53 = vadd.f32 -0.28449672, %v122_v37  ;;  %v2483_v37 = vpop.eup %2482 }
 0x169   :  { %v2922_v23 = vpop.permute.xlu1 %1548  ;;  %1392 = vrot.lane.b32.xlu1 %v1386_v7, %s2567_s20  ;;  %v1269_v7 = vmul.f32 0.0, %v2916_v3 }
 0x16a   :  { %4190 = vst [vmem:[#allocation23_spill] sm:$0xff] %v2922_v23  ;;  %v126_v13 = vmul.f32 %v2481_v22, %v124_v53  ;;  %v1551_v19 = vmul.f32 0.0, %v2922_v23  ;;  %v2485_v23 = vpop.eup %2484 }
 0x16b   :  { %v115_v1 = vmul.f32 1.0614054, %v2485_v23 }
 0x16c   :  { %v128_v55 = vadd.f32 0.2548296, %v126_v13  ;;  %1557 = vrot.lane.b32.xlu0 %v1551_v19, %s2567_s20 }
 0x16d   :  { %971 = vrot.lane.b32.xlu1 %v966_v18, %s2538_s17 }
 0x16e   :  { %v130_v20 = vmul.f32 %v2481_v22, %v128_v55  ;;  %v2932_v43 = vpop.permute.xlu1 %1407  ;;  %v117_v55 = vadd.f32 -1.4531521, %v115_v1 }
 0x16f   :  { %4192 = vst [vmem:[#allocation25_spill] sm:$0xff] %v2932_v43 }
 0x170   :  { %v140_v53 = vmul.f32 %v2483_v37, %v130_v20  ;;  %1301 = vrot.lane.b32.xlu0 %v1293_v35, %s2582_s21  ;;  %v2945_v35 = vpop.permute.xlu0 %1874 }
 0x171   :  { %1277 = vrot.lane.b32.xlu1 %v1269_v7, %s2540_s19  ;;  %4195 = vst [vmem:[#allocation28_spill] sm:$0xff] %v2945_v35  ;;  %v119_v7 = vmul.f32 %v2485_v23, %v117_v55 }
 0x172   :  { %v142_v19 = vsub.f32 1.0, %v140_v53  ;;  %v1877_v53 = vmul.f32 0.0, %v2945_v35 }
 0x173   :  { %v2938_v13 = vpop.permute.xlu1 %1137 }
 0x174   :  { %4193 = vst [vmem:[#allocation26_spill] sm:$0xff] %v2938_v13  ;;  %v1141_v22 = vmul.f32 0.0, %v2938_v13  ;;  %v146_v18 = vsub.f32 0.0, %v142_v19  ;;  %v121_v13 = vadd.f32 1.4214138, %v119_v7  ;;  %v2954_v3 = vpop.permute.xlu0 %1596 }
 0x175   :  { %1708 = vrot.lane.b32.xlu1 %v1702_v29, %s2539_s18  ;;  %4197 = vst [vmem:[#allocation30_spill] sm:$0xff] %v2954_v3 }
 0x176   :  { %v148_v37 = vsel %vm144_vm1, %v146_v18, %v142_v19  ;;  %v1601_v19 = vmul.f32 0.0, %v2954_v3 }
 0x177   :  { %v150_v1 = vadd.f32 1.0, %v148_v37  ;;  %v123_v37 = vmul.f32 %v2485_v23, %v121_v13 }
 0x178   :  { %v2942_v43 = vpop.permute.xlu1 %1572 }
 0x179   :  { %4194 = vst [vmem:[#allocation27_spill] sm:$0xff] %v2942_v43  ;;  %1146 = vrot.lane.b32.xlu1 %v1141_v22, %s2538_s17  ;;  %v1577_v20 = vmul.f32 0.0, %v2942_v43  ;;  %v133_v22 = vsub.f32 0.0, %v2906_v16  ;;  %v2963_v55 = vmul.f32 %v150_v1, %v100_v6  ;;  %v125_v3 = vadd.f32 -0.28449672, %v123_v37 }
 0x17b   :  { %v135_v7 = vmul.f32 %v133_v22, %v2906_v16  ;;  %v204_v16 = vmul.f32 %v2670_v44, %v2963_v55  ;;  %v127_v13 = vmul.f32 %v2485_v23, %v125_v3  ;;  %v316_v6 = vmul.f32 %v2676_v47, %v2963_v55 }
 0x17c   :  { %v447_v22 = vmul.f32 %v2689_v54, %v2963_v55  ;;  %v253_v3 = vmul.f32 %v2684_v51, %v2963_v55  ;;  %v622_v14 = vmul.f32 %v2723_v9, %v2963_v55 }
 0x17d   :  { %v2950_v24 = vpop.permute.xlu1 %1723  ;;  %1585 = vrot.lane.b32.xlu1 %v1577_v20, %s2537_s16  ;;  %v138_v35 = vmul.f32 1.442695, %v135_v7  ;;  %v340_v7 = vmul.f32 %v2682_v50, %v2963_v55 }
 0x17e   :  { %4196 = vst [vmem:[#allocation29_spill] sm:$0xff] %v2950_v24  ;;  %v1726_v29 = vmul.f32 0.0, %v2950_v24  ;;  %v646_v24 = vmul.f32 %v2735_v15, %v2963_v55 }
 0x17f   :  { %2486 = vpow2.f32 %v138_v35 }
 0x180   :  { %1732 = vrot.lane.b32.xlu0 %v1726_v29, %s2567_s20  ;;  %v179_v29 = vmul.f32 %v2664_v41, %v2963_v55 }
 0x181   :  { %1883 = vrot.lane.b32.xlu1 %v1877_v53, %s2539_s18 }
 0x182   :  { %v2961_v18 = vpop.permute.xlu1 %1426 }
 0x183   :  { %4198 = vst [vmem:[#allocation31_spill] sm:$0xff] %v2961_v18  ;;  %v1431_v20 = vmul.f32 0.0, %v2961_v18 }
 0x185   :  { %1439 = vrot.lane.b32.xlu0 %v1431_v20, %s2540_s19  ;;  %1609 = vrot.lane.b32.xlu1 %v1601_v19, %s2540_s19  ;;  %v129_v19 = vadd.f32 0.2548296, %v127_v13  ;;  %v228_v20 = vmul.f32 %v2674_v46, %v2963_v55  ;;  %v598_v13 = vmul.f32 %v2711_v2, %v2963_v55 }
 0x187   :  { %v2969_v57 = vpop.permute.xlu1 %1312  ;;  %v131_v35 = vmul.f32 %v2485_v23, %v129_v19  ;;  %v708_v19 = vmul.f32 %v2706_v62, %v2963_v55 }
 0x188   :  { %4199 = vst [vmem:[#allocation32_spill] sm:$0xff] %v2969_v57  ;;  %v1316_v53 = vmul.f32 0.0, %v2969_v57  ;;  %v387_v57 = vmul.f32 %v2704_v61, %v2963_v55 }
 0x189   :  { %186 = vrot.lane.b32.xlu1 %v179_v29, %s2537_s16  ;;  %v2997_v29 = vpop.permute.xlu0 %1450 }
 0x18a   :  { %1321 = vrot.lane.b32.xlu0 %v1316_v53, %s2538_s17  ;;  %4200 = vst [vmem:[#allocation33_spill] sm:$0xff] %v2997_v29 }
 0x18c   :  { %v2978_v1 = vpop.permute.xlu1 %1747 }
 0x18d   :  { %211 = vrot.lane.b32.xlu1 %v204_v16, %s2538_s17  ;;  %v2487_v16 = vpop.eup %2486 }
 0x18e   :  { %323 = vrot.lane.b32.xlu0 %v316_v6, %s2537_s16  ;;  %v141_v6 = vmul.f32 %v2487_v16, %v131_v35  ;;  %v489_v35 = vmul.f32 %v2716_v4, %v2963_v55 }
 0x191   :  { %v2988_v37 = vpop.permute.xlu1 %1898  ;;  %454 = vrot.lane.b32.xlu1 %v447_v22, %s2537_s16  ;;  %v363_v22 = vmul.f32 %v2694_v56, %v2963_v55 }
 0x192   :  { %234 = vrot.lane.b32.xlu0 %v228_v20, %s2539_s18  ;;  %v143_v20 = vsub.f32 1.0, %v141_v6 }
 0x194   :  { %v147_v16 = vsub.f32 0.0, %v143_v20 }
 0x195   :  { %259 = vrot.lane.b32.xlu1 %v253_v3, %s2540_s19  ;;  %v3012_v3 = vpop.permute.xlu0 %1922 }
 0x196   :  { %v2999_v53 = vpop.permute.xlu1 %1620  ;;  %347 = vrot.lane.b32.xlu0 %v340_v7, %s2538_s17  ;;  %4203 = vst [vmem:[#allocation36_spill] sm:$0xff] %v3012_v3  ;;  %v575_v7 = vmul.f32 %v2700_v59, %v2963_v55 }
 0x197   :  { %4201 = vst [vmem:[#allocation34_spill] sm:$0xff] %v2999_v53 }
 0x199   :  { %604 = vrot.lane.b32.xlu1 %v598_v13, %s2538_s17  ;;  %v3025_v6 = vpop.permute.xlu0 %1795 }
 0x19a   :  { %369 = vrot.lane.b32.xlu0 %v363_v22, %s2539_s18  ;;  %v470_v22 = vmul.f32 %v2698_v58, %v2963_v55  ;;  %4205 = vst [vmem:[#allocation38_spill] sm:$0xff] %v3025_v6 }
 0x19b   :  { %v3008_v23 = vpop.permute.xlu1 %1771 }
 0x19c   :  { %4202 = vst [vmem:[#allocation35_spill] sm:$0xff] %v3008_v23 }
 0x19d   :  { %715 = vrot.lane.b32.xlu1 %v708_v19, %s2537_s16  ;;  %v731_v19 = vmul.f32 %v2718_v5, %v2963_v55 }
 0x19e   :  { %582 = vrot.lane.b32.xlu0 %v575_v7, %s2537_s16  ;;  %v149_v7 = vsel %vm145_vm2, %v147_v16, %v143_v20  ;;  %v101_v20 = vmul.f32 0.5, %v2886_v52  ;;  %vm812_vm2 = vcmask 244736  }
 0x1a0   :  { %v3020_v13 = vpop.permute.xlu1 %1474 }
 0x1a1   :  { %4204 = vst [vmem:[#allocation37_spill] sm:$0xff] %v3020_v13  ;;  %495 = vrot.lane.b32.xlu1 %v489_v35, %s2539_s18  ;;  %v151_v35 = vadd.f32 1.0, %v149_v7  ;;  %v513_v7 = vmul.f32 %v2728_v11, %v2963_v55 }
 0x1a2   :  { %474 = vrot.lane.b32.xlu0 %v470_v22, %s2538_s17  ;;  %v3039_v22 = vpop.permute.xlu0 %1970 }
 0x1a3   :  { %4207 = vst [vmem:[#allocation40_spill] sm:$0xff] %v3039_v22 }
 0x1a5   :  { %v3033_v18 = vpop.permute.xlu1 %1644  ;;  %737 = vrot.lane.b32.xlu1 %v731_v19, %s2538_s17  ;;  %v3048_v19 = vmul.f32 %v151_v35, %v101_v20  ;;  %v755_v35 = vmul.f32 %v2730_v12, %v2963_v55 }
 0x1a6   :  { %4206 = vst [vmem:[#allocation39_spill] sm:$0xff] %v3033_v18  ;;  %393 = vrot.lane.b32.xlu0 %v387_v57, %s2540_s19  ;;  %v779_v57 = vmul.f32 %v2742_v17, %v2963_v55  ;;  %v3055_v43 = vpop.permute.xlu0 %1011 }
 0x1a7   :  { %4209 = vst [vmem:[#allocation42_spill] sm:$0xff] %v3055_v43 }
 0x1a9   :  { %652 = vrot.lane.b32.xlu1 %v646_v24, %s2540_s19  ;;  %v317_v24 = vmul.f32 %v2676_v47, %v3048_v19  ;;  %v341_v47 = vmul.f32 %v2682_v50, %v3048_v19 }
 0x1aa   :  { %v3045_v16 = vpop.permute.xlu1 %1946  ;;  %628 = vrot.lane.b32.xlu0 %v622_v14, %s2539_s18  ;;  %v229_v14 = vmul.f32 %v2674_v46, %v3048_v19  ;;  %v3068_v20 = vpop.permute.xlu0 %850 }
 0x1ab   :  { %4208 = vst [vmem:[#allocation41_spill] sm:$0xff] %v3045_v16  ;;  %4211 = vst [vmem:[#allocation44_spill] sm:$0xff] %v3068_v20 }
 0x1ad   :  { %785 = vrot.lane.b32.xlu1 %v779_v57, %s2540_s19 }
 0x1ae   :  { %519 = vrot.lane.b32.xlu0 %v513_v7, %s2540_s19  ;;  %v180_v7 = vmul.f32 %v2664_v41, %v3048_v19  ;;  %v3083_v46 = vpop.permute.xlu0 %874  ;;  %v364_v41 = vmul.f32 %v2694_v56, %v3048_v19 }
 0x1af   :  { %v3058_v52 = vpop.permute.xlu1 %1819  ;;  %4214 = vst [vmem:[#allocation47_spill] sm:$0xff] %v3083_v46 }
 0x1b0   :  { %4210 = vst [vmem:[#allocation43_spill] sm:$0xff] %v3058_v52 }
 0x1b1   :  { %325 = vrot.lane.b32.xlu1 %v317_v24, %s2537_s16  ;;  %v205_v24 = vmul.f32 %v2670_v44, %v3048_v19  ;;  %v576_v44 = vmul.f32 %v2700_v59, %v3048_v19 }
 0x1b2   :  { %761 = vrot.lane.b32.xlu0 %v755_v35, %s2539_s18  ;;  %v3091_v50 = vpop.permute.xlu0 %1693 }
 0x1b3   :  { %4215 = vst [vmem:[#allocation48_spill] sm:$0xff] %v3091_v50 }
 0x1b4   :  { %v3070_v57 = vpop.permute.xlu1 %1994 }
 0x1b5   :  { %4212 = vst [vmem:[#allocation45_spill] sm:$0xff] %v3070_v57  ;;  %236 = vrot.lane.b32.xlu1 %v229_v14, %s2539_s18  ;;  %v448_v14 = vmul.f32 %v2689_v54, %v3048_v19  ;;  %v471_v54 = vmul.f32 %v2698_v58, %v3048_v19  ;;  %v623_v58 = vmul.f32 %v2723_v9, %v3048_v19 }
 0x1b6   :  { %188 = vrot.lane.b32.xlu0 %v180_v7, %s2537_s16 }
 0x1b9   :  { %v3080_v35 = vpop.permute.xlu1 %835  ;;  %349 = vrot.lane.b32.xlu1 %v341_v47, %s2538_s17  ;;  %v254_v47 = vmul.f32 %v2684_v51, %v3048_v19  ;;  %v388_v51 = vmul.f32 %v2704_v61, %v3048_v19 }
 0x1ba   :  { %4213 = vst [vmem:[#allocation46_spill] sm:$0xff] %v3080_v35  ;;  %213 = vrot.lane.b32.xlu0 %v205_v24, %s2538_s17  ;;  %v3106_v24 = vpop.permute.xlu0 %1050 }
 0x1bb   :  { %4218 = vst [vmem:[#allocation51_spill] sm:$0xff] %v3106_v24  ;;  %v173_v24 = vmul.f32 %v2757_v30, %v3048_v19 }
 0x1bd   :  { %371 = vrot.lane.b32.xlu1 %v364_v41, %s2539_s18  ;;  %v599_v41 = vmul.f32 %v2711_v2, %v3048_v19 }
 0x1be   :  { %v3093_v7 = vpop.permute.xlu1 %1186  ;;  %456 = vrot.lane.b32.xlu0 %v448_v14, %s2537_s16  ;;  %v3114_v59 = vpop.permute.xlu0 %1868 }
 0x1bf   :  { %4216 = vst [vmem:[#allocation49_spill] sm:$0xff] %v3093_v7  ;;  %4219 = vst [vmem:[#allocation52_spill] sm:$0xff] %v3114_v59 }
 0x1c1   :  { %584 = vrot.lane.b32.xlu1 %v576_v44, %s2537_s16  ;;  %v709_v44 = vmul.f32 %v2706_v62, %v3048_v19  ;;  %v514_v62 = vmul.f32 %v2728_v11, %v3048_v19 }
 0x1c2   :  { %261 = vrot.lane.b32.xlu0 %v254_v47, %s2540_s19  ;;  %v490_v47 = vmul.f32 %v2716_v4, %v3048_v19  ;;  %v3129_v61 = vpop.permute.xlu0 %1225  ;;  %v756_v4 = vmul.f32 %v2730_v12, %v3048_v19  ;;  %v780_v12 = vmul.f32 %v2742_v17, %v3048_v19  ;;  %v1455_v17 = vmul.f32 0.0, %v2997_v29 }
 0x1c3   :  { %v3102_v56 = vpop.permute.xlu1 %1353  ;;  %4222 = vst [vmem:[#allocation55_spill] sm:$0xff] %v3129_v61 }
 0x1c4   :  { %4217 = vst [vmem:[#allocation50_spill] sm:$0xff] %v3102_v56 }
 0x1c5   :  { %476 = vrot.lane.b32.xlu1 %v471_v54, %s2538_s17 }
 0x1c6   :  { %606 = vrot.lane.b32.xlu0 %v599_v41, %s2538_s17  ;;  %v732_v41 = vmul.f32 %v2718_v5, %v3048_v19  ;;  %v3142_v9 = vpop.permute.xlu0 %1368  ;;  %v1901_v5 = vmul.f32 0.0, %v2988_v37 }
 0x1c7   :  { %4224 = vst [vmem:[#allocation57_spill] sm:$0xff] %v3142_v9  ;;  %v308_v9 = vmul.f32 0.0, %v2773_v45 }
 0x1c8   :  { %v3116_v14 = vpop.permute.xlu1 %1518 }
 0x1c9   :  { %4220 = vst [vmem:[#allocation53_spill] sm:$0xff] %v3116_v14  ;;  %395 = vrot.lane.b32.xlu1 %v388_v51, %s2540_s19 }
 0x1ca   :  { %717 = vrot.lane.b32.xlu0 %v709_v44, %s2537_s16  ;;  %v647_v44 = vmul.f32 %v2735_v15, %v3048_v19  ;;  %v3151_v11 = vpop.permute.xlu0 %1102  ;;  %v1752_v15 = vmul.f32 0.0, %v2978_v1 }
 0x1cb   :  { %4226 = vst [vmem:[#allocation59_spill] sm:$0xff] %v3151_v11 }
 0x1cc   :  { %v3124_v2 = vpop.permute.xlu1 %1026 }
 0x1cd   :  { %4221 = vst [vmem:[#allocation54_spill] sm:$0xff] %v3124_v2  ;;  %630 = vrot.lane.b32.xlu1 %v623_v58, %s2539_s18 }
 0x1ce   :  { %497 = vrot.lane.b32.xlu0 %v490_v47, %s2539_s18  ;;  %v1625_v47 = vmul.f32 0.0, %v2999_v53 }
 0x1d0   :  { %v3134_v54 = vpop.permute.xlu1 %1201 }
 0x1d1   :  { %4223 = vst [vmem:[#allocation56_spill] sm:$0xff] %v3134_v54  ;;  %521 = vrot.lane.b32.xlu1 %v514_v62, %s2540_s19 }
 0x1d2   :  { %739 = vrot.lane.b32.xlu0 %v732_v41, %s2538_s17  ;;  %v3164_v41 = vpop.permute.xlu0 %1249 }
 0x1d3   :  { %4229 = vst [vmem:[#allocation62_spill] sm:$0xff] %v3164_v41  ;;  %v1800_v41 = vmul.f32 0.0, %v3025_v6 }
 0x1d4   :  { %v3144_v51 = vpop.permute.xlu1 %898 }
 0x1d5   :  { %4225 = vst [vmem:[#allocation58_spill] sm:$0xff] %v3144_v51  ;;  %763 = vrot.lane.b32.xlu1 %v756_v4, %s2539_s18  ;;  %v1927_v4 = vmul.f32 0.0, %v3012_v3 }
 0x1d6   :  { %654 = vrot.lane.b32.xlu0 %v647_v44, %s2540_s19 }
 0x1d8   :  { %v3153_v58 = vpop.permute.xlu1 %926 }
 0x1d9   :  { %4227 = vst [vmem:[#allocation60_spill] sm:$0xff] %v3153_v58  ;;  %1907 = vrot.lane.b32.xlu1 %v1901_v5, %s2567_s20  ;;  %v3172_v5 = vpop.permute.xlu0 %1126 }
 0x1da   :  { %787 = vrot.lane.b32.xlu0 %v780_v12, %s2540_s19  ;;  %4231 = vst [vmem:[#allocation64_spill] sm:$0xff] %v3172_v5  ;;  %v1478_v12 = vmul.f32 0.0, %v3020_v13 }
 0x1dc   :  { %v3161_v62 = vpop.permute.xlu1 %1074 }
 0x1dd   :  { %4228 = vst [vmem:[#allocation61_spill] sm:$0xff] %v3161_v62  ;;  %1633 = vrot.lane.b32.xlu1 %v1625_v47, %s2582_s21  ;;  %v1776_v47 = vmul.f32 0.0, %v3008_v23 }
 0x1de   :  { %1760 = vrot.lane.b32.xlu0 %v1752_v15, %s2537_s16  ;;  %v1648_v15 = vmul.f32 0.0, %v3033_v18  ;;  %v3183_v50 = vpop.permute.xlu0 %1557 }
 0x1df   :  { %4233 = vst [vmem:[#allocation66_spill] sm:$0xff] %v3183_v50 }
 0x1e0   :  { %v3169_v44 = vpop.permute.xlu1 %950 }
 0x1e1   :  { %4230 = vst [vmem:[#allocation63_spill] sm:$0xff] %v3169_v44  ;;  %1935 = vrot.lane.b32.xlu1 %v1927_v4, %s2537_s16 }
 0x1e2   :  { %1463 = vrot.lane.b32.xlu0 %v1455_v17, %s2582_s21  ;;  %v1951_v17 = vmul.f32 0.0, %v3045_v16 }
 0x1e4   :  { %v3177_v59 = vpop.permute.xlu1 %1533 }
 0x1e5   :  { %4232 = vst [vmem:[#allocation65_spill] sm:$0xff] %v3177_v59  ;;  %1483 = vrot.lane.b32.xlu1 %v1478_v12, %s2538_s17  ;;  %v1975_v59 = vmul.f32 0.0, %v3039_v22  ;;  %v3193_v12 = vpop.permute.xlu0 %1301 }
 0x1e6   :  { %1784 = vrot.lane.b32.xlu0 %v1776_v47, %s2540_s19  ;;  %4236 = vst [vmem:[#allocation69_spill] sm:$0xff] %v3193_v12  ;;  %v1823_v47 = vmul.f32 0.0, %v3058_v52  ;;  %v439_v52 = vmul.f32 0.0, %v2761_v34 }
 0x1e8   :  { %v3185_v4 = vpop.permute.xlu1 %1392 }
 0x1e9   :  { %4234 = vst [vmem:[#allocation67_spill] sm:$0xff] %v3185_v4  ;;  %1653 = vrot.lane.b32.xlu1 %v1648_v15, %s2538_s17 }
 0x1ea   :  { %1808 = vrot.lane.b32.xlu0 %v1800_v41, %s2582_s21 }
 0x1ec   :  { %v3191_v5 = vpop.permute.xlu1 %971 }
 0x1ed   :  { %4235 = vst [vmem:[#allocation68_spill] sm:$0xff] %v3191_v5  ;;  %1959 = vrot.lane.b32.xlu1 %v1951_v17, %s2540_s19 }
 0x1ee   :  { %1983 = vrot.lane.b32.xlu0 %v1975_v59, %s2582_s21 }
 0x1f0   :  { %v3198_v50 = vpop.permute.xlu1 %1277 }
 0x1f1   :  { %4237 = vst [vmem:[#allocation70_spill] sm:$0xff] %v3198_v50  ;;  %1828 = vrot.lane.b32.xlu1 %v1823_v47, %s2538_s17 }
 0x1f2   :  { %v3201_v15 = vpop.permute.xlu0 %1732 }
 0x1f3   :  { %4238 = vst [vmem:[#allocation71_spill] sm:$0xff] %v3201_v15 }
 0x1f4   :  { %v3203_v41 = vpop.permute.xlu1 %1708 }
 0x1f5   :  { %4239 = vst [vmem:[#allocation72_spill] sm:$0xff] %v3203_v41  ;;  %v171_v41 = vmul.f32 0.0, %v2757_v30 }
 0x1f7   :  { %v3205_v14 = vpop.permute.xlu0 %1439 }
 0x1f8   :  { %4240 = vst [vmem:[#allocation73_spill] sm:$0xff] %v3205_v14  ;;  %v3207_v4 = vpop.permute.xlu1 %1146 }
 0x1f9   :  { %4241 = vst [vmem:[#allocation74_spill] sm:$0xff] %v3207_v4 }
 0x1fc   :  { %v3209_v5 = vpop.permute.xlu1 %1585  ;;  %v3211_v12 = vpop.permute.xlu0 %1321 }
 0x1fd   :  { %4242 = vst [vmem:[#allocation75_spill] sm:$0xff] %v3209_v5  ;;  %4243 = vst [vmem:[#allocation76_spill] sm:$0xff] %v3211_v12 }
 0x200   :  { %v3213_v17 = vpop.permute.xlu1 %1883  ;;  %v3215_v59 = vpop.permute.xlu0 %323 }
 0x201   :  { %4244 = vst [vmem:[#allocation77_spill] sm:$0xff] %v3213_v17  ;;  %v327_v4 = vsel %vm190_vm3, %v2812_v26, %v3215_v59 }
 0x204   :  { %v3217_v11 = vpop.permute.xlu1 %1609  ;;  %v3219_v50 = vpop.permute.xlu0 %234 }
 0x205   :  { %4245 = vst [vmem:[#allocation78_spill] sm:$0xff] %v3217_v11 }
 0x208   :  { %v3221_v47 = vpop.permute.xlu0 %347  ;;  %v3223_v15 = vpop.permute.xlu1 %186 }
 0x209   :  { %v191_v14 = vsel %vm190_vm3, %v2803_v21, %v3223_v15  ;;  %v351_v21 = vsel %vm215_vm4, %v2817_v31, %v3221_v47 }
 0x20a   :  { %v196_v5 = vadd.f32 %v191_v14, %v171_v41  ;;  %v332_v14 = vadd.f32 %v327_v4, %v308_v9 }
 0x20c   :  { %v3229_v12 = vpop.permute.xlu0 %369  ;;  %v3231_v17 = vpop.permute.xlu1 %211  ;;  %v356_v41 = vadd.f32 %v351_v21, %v332_v14 }
 0x20d   :  { %v216_v11 = vsel %vm215_vm4, %v2809_v25, %v3231_v17 }
 0x20e   :  { %v221_v56 = vadd.f32 %v216_v11, %v196_v5  ;;  %v380_v11 = vadd.f32 %v3229_v12, %v356_v41 }
 0x210   :  { %v3243_v51 = vpop.permute.xlu0 %582  ;;  %v3245_v61 = vpop.permute.xlu1 %454  ;;  %v246_v44 = vadd.f32 %v3219_v50, %v221_v56 }
 0x214   :  { %v3248_v25 = vpop.permute.xlu0 %474  ;;  %v3250_v62 = vpop.permute.xlu1 %259 }
 0x215   :  { %v271_v26 = vadd.f32 %v3250_v62, %v246_v44 }
 0x217   :  { %281 = vrot.lane.b32.xlu1 %v271_v26, %s2583_s22 }
 0x218   :  { %v3255_v31 = vpop.permute.xlu0 %393  ;;  %v3257_v5 = vpop.permute.xlu1 %604 }
 0x219   :  { %v404_v9 = vadd.f32 %v3255_v31, %v380_v11 }
 0x21b   :  { %414 = vrot.lane.b32.xlu1 %v404_v9, %s2584_s23  ;;  %v458_v9 = vsel %vm190_vm3, %v2819_v32, %v3245_v61 }
 0x21c   :  { %v3261_v56 = vpop.permute.xlu0 %628  ;;  %v3263_v4 = vpop.permute.xlu1 %715  ;;  %v463_v16 = vadd.f32 %v458_v9, %v439_v52 }
 0x21e   :  { %v482_v32 = vadd.f32 %v3248_v25, %v463_v16 }
 0x220   :  { %v3265_v21 = vpop.permute.xlu0 %519  ;;  %v3267_v44 = vpop.permute.xlu1 %495 }
 0x221   :  { %v506_v13 = vadd.f32 %v3267_v44, %v482_v32 }
 0x223   :  { %v530_v52 = vadd.f32 %v3265_v21, %v506_v13 }
 0x224   :  { %v3269_v14 = vpop.permute.xlu0 %761  ;;  %v3271_v41 = vpop.permute.xlu1 %737 }
 0x228   :  { %v189_v26 = vpop.permute.xlu0 %188  ;;  %v3273_v54 = vpop.permute.xlu1 %652 }
 0x229   :  { %v198_v7 = vadd.f32 %v189_v26, %v173_v24  ;;  %v192_v9 = vsel %vm190_vm3, %v3223_v15, %v189_v26 }
 0x22c   :  { %v214_v57 = vpop.permute.xlu0 %213  ;;  %v3275_v11 = vpop.permute.xlu1 %785 }
 0x22d   :  { %v223_v46 = vadd.f32 %v214_v57, %v198_v7  ;;  %v217_v23 = vsel %vm215_vm4, %v3231_v17, %v214_v57 }
 0x230   :  { %v457_v22 = vpop.permute.xlu0 %456  ;;  %v3283_v2 = vpop.permute.xlu1 %325 }
 0x234   :  { %v262_v20 = vpop.permute.xlu0 %261  ;;  %v237_v58 = vpop.permute.xlu1 %236 }
 0x235   :  { %v242_v6 = vsel %vm240_vm5, %v237_v58, %v2814_v27  ;;  %v267_v43 = vsel %vm265_vm6, %v262_v20, %v2822_v33  ;;  %v719_v33 = vsel %vm190_vm3, %v2834_v49, %v3263_v4  ;;  %v241_v57 = vsel %vm240_vm5, %v3219_v50, %v237_v58 }
 0x236   :  { %v248_v18 = vadd.f32 %v242_v6, %v223_v46  ;;  %v310_v6 = vmul.f32 %v2773_v45, %v3048_v19 }
 0x238   :  { %v273_v3 = vadd.f32 %v267_v43, %v248_v18  ;;  %v3291_v35 = vpop.permute.xlu1 %349  ;;  %v607_v7 = vpop.permute.xlu0 %606  ;;  %v700_v43 = vmul.f32 0.0, %v2771_v42  ;;  %v334_v18 = vadd.f32 %v3283_v2, %v310_v6  ;;  %v441_v6 = vmul.f32 %v2761_v34, %v3048_v19 }
 0x23a   :  { %285 = vrot.lane.b32.xlu0 %v273_v3, %s2583_s22  ;;  %v724_v46 = vadd.f32 %v719_v33, %v700_v43  ;;  %v358_v32 = vadd.f32 %v3291_v35, %v334_v18  ;;  %v465_v26 = vadd.f32 %v457_v22, %v441_v6  ;;  %v567_v43 = vmul.f32 0.0, %v2766_v38 }
 0x23b   :  { %v266_v6 = vsel %vm265_vm6, %v3250_v62, %v262_v20  ;;  %v702_v20 = vmul.f32 %v2771_v42, %v3048_v19 }
 0x23c   :  { %v3295_v24 = vpop.permute.xlu1 %371  ;;  %v3300_v16 = vpop.permute.xlu0 %717  ;;  %v748_v49 = vadd.f32 %v3271_v41, %v724_v46 }
 0x23d   :  { %v376_v13 = vsel %vm240_vm5, %v3295_v24, %v2825_v36 }
 0x23e   :  { %540 = vrot.lane.b32.xlu0 %v530_v52, %s2567_s20  ;;  %v172_v52 = vmul.f32 %v2757_v30, %v2963_v55  ;;  %v382_v53 = vadd.f32 %v376_v13, %v358_v32  ;;  %v586_v30 = vsel %vm190_vm3, %v2827_v39, %v3243_v51  ;;  %v459_v13 = vsel %vm190_vm3, %v3245_v61, %v457_v22 }
 0x23f   :  { %v772_v46 = vadd.f32 %v3269_v14, %v748_v49  ;;  %v591_v32 = vadd.f32 %v586_v30, %v567_v43  ;;  %v568_v61 = vmul.f32 %v2766_v38, %v2963_v55 }
 0x240   :  { %v585_v27 = vpop.permute.xlu1 %584  ;;  %v498_v29 = vpop.permute.xlu0 %497  ;;  %v197_v33 = vadd.f32 %v192_v9, %v172_v52 }
 0x241   :  { %v796_v50 = vadd.f32 %v3275_v11, %v772_v46  ;;  %v615_v49 = vadd.f32 %v3257_v5, %v591_v32 }
 0x242   :  { %v222_v18 = vadd.f32 %v217_v23, %v197_v33 }
 0x244   :  { %v477_v3 = vpop.permute.xlu1 %476  ;;  %v247_v52 = vadd.f32 %v241_v57, %v222_v18  ;;  %v740_v58 = vpop.permute.xlu0 %739  ;;  %v501_v18 = vsel %vm240_vm5, %v3267_v44, %v498_v29  ;;  %v726_v44 = vadd.f32 %v3300_v16, %v702_v20 }
 0x245   :  { %v484_v9 = vadd.f32 %v477_v3, %v465_v26  ;;  %v478_v23 = vsel %vm215_vm4, %v3248_v25, %v477_v3  ;;  %v502_v25 = vsel %vm240_vm5, %v498_v29, %v2837_v60  ;;  %v639_v26 = vadd.f32 %v3261_v56, %v615_v49 }
 0x246   :  { %v272_v57 = vadd.f32 %v266_v6, %v247_v52  ;;  %v610_v60 = vsel %vm215_vm4, %v3257_v5, %v607_v7  ;;  %v4247_v52 = vld [vmem:[#allocation12_spill] sm:$0xff] }
 0x247   :  { %v508_v30 = vadd.f32 %v502_v25, %v484_v9  ;;  %v663_v29 = vadd.f32 %v3273_v54, %v639_v26  ;;  %v352_v25 = vsel %vm215_vm4, %v3221_v47, %v3291_v35 }
 0x248   :  { %v3320_v36 = vpop.permute.xlu1 %395 }
 0x249   :  { %v400_v15 = vsel %vm265_vm6, %v3320_v36, %v2829_v40  ;;  %v440_v40 = vmul.f32 %v2761_v34, %v2963_v55  ;;  %v569_v34 = vmul.f32 %v2766_v38, %v3048_v19  ;;  %v399_v35 = vsel %vm265_vm6, %v3255_v31, %v3320_v36 }
 0x24a   :  { %v406_v17 = vadd.f32 %v400_v15, %v382_v53  ;;  %v587_v53 = vsel %vm190_vm3, %v3243_v51, %v585_v27  ;;  %v701_v51 = vmul.f32 %v2771_v42, %v2963_v55 }
 0x24b   :  { %v464_v22 = vadd.f32 %v459_v13, %v440_v40  ;;  %v592_v3 = vadd.f32 %v587_v53, %v568_v61  ;;  %v593_v33 = vadd.f32 %v585_v27, %v569_v34  ;;  %v611_v27 = vsel %vm215_vm4, %v607_v7, %v2832_v48  ;;  %v655_v13 = vpop.permute.xlu0 %654 }
 0x24c   :  { %418 = vrot.lane.b32.xlu1 %v406_v17, %s2584_s23  ;;  %v631_v39 = vpop.permute.xlu1 %630  ;;  %v720_v17 = vsel %vm190_vm3, %v3263_v4, %v3300_v16  ;;  %v328_v16 = vsel %vm190_vm3, %v3215_v59, %v3283_v2 }
 0x24d   :  { %v483_v15 = vadd.f32 %v478_v23, %v464_v22  ;;  %v634_v42 = vsel %vm240_vm5, %v3261_v56, %v631_v39  ;;  %v617_v5 = vadd.f32 %v611_v27, %v593_v33  ;;  %v616_v48 = vadd.f32 %v610_v60, %v592_v3 }
 0x24e   :  { %v743_v56 = vsel %vm215_vm4, %v3271_v41, %v740_v58  ;;  %v309_v41 = vmul.f32 %v2773_v45, %v2963_v55  ;;  %v658_v22 = vsel %vm265_vm6, %v3273_v54, %v655_v13  ;;  %v375_v55 = vsel %vm240_vm5, %v3229_v12, %v3295_v24  ;;  %v4249_v54 = vld [vmem:[#allocation16_spill] sm:$0xff] }
 0x24f   :  { %v507_v7 = vadd.f32 %v501_v18, %v483_v15  ;;  %v640_v40 = vadd.f32 %v634_v42, %v616_v48  ;;  %v788_v34 = vpop.permute.xlu0 %787  ;;  %v14_v42 = vlaneseq }
 0x250   :  { %806 = vrot.lane.b32.xlu1 %v796_v50, %s2585_s24  ;;  %v522_v38 = vpop.permute.xlu1 %521  ;;  %v333_v45 = vadd.f32 %v328_v16, %v309_v41  ;;  %v791_v2 = vsel %vm265_vm6, %v3275_v11, %v788_v34  ;;  %v792_v59 = vsel %vm265_vm6, %v788_v34, %v4249_v54 }
 0x251   :  { %v526_v62 = vsel %vm265_vm6, %v522_v38, %v2845_v10  ;;  %v635_v10 = vsel %vm240_vm5, %v631_v39, %v2839_v0  ;;  %v525_v19 = vsel %vm265_vm6, %v3265_v21, %v522_v38  ;;  %v4246_v0 = vld [vmem:[#allocation10_spill] sm:$0xff]  ;;  %v725_v21 = vadd.f32 %v720_v17, %v701_v51 }
 0x252   :  { %v532_v43 = vadd.f32 %v526_v62, %v508_v30  ;;  %v744_v46 = vsel %vm215_vm4, %v740_v58, %v4246_v0  ;;  %v641_v9 = vadd.f32 %v635_v10, %v617_v5  ;;  %v531_v39 = vadd.f32 %v525_v19, %v507_v7 }
 0x253   :  { %v749_v23 = vadd.f32 %v743_v56, %v725_v21  ;;  %v750_v50 = vadd.f32 %v744_v46, %v726_v44  ;;  %v664_v58 = vadd.f32 %v658_v22, %v640_v40  ;;  %v357_v3 = vadd.f32 %v352_v25, %v333_v45  ;;  %v3420_v26 = vpop.permute.xlu0 %1760 }
 0x254   :  { %544 = vrot.lane.b32.xlu0 %v532_v43, %s2567_s20  ;;  %v764_v4 = vpop.permute.xlu1 %763  ;;  %283 = vrot.lane.b32.xlu1 %v272_v57, %s2583_s22  ;;  %v15_v19 = vand.u32 127, %v14_v42 }
 0x255   :  { %v767_v32 = vsel %vm240_vm5, %v3269_v14, %v764_v4  ;;  %v768_v53 = vsel %vm240_vm5, %v764_v4, %v4247_v52  ;;  %v4248_v14 = vld [vmem:[#allocation11_spill] sm:$0xff]  ;;  %v381_v47 = vadd.f32 %v375_v55, %v357_v3 }
 0x256   :  { %v659_v61 = vsel %vm265_vm6, %v655_v13, %v4248_v14  ;;  %v773_v6 = vadd.f32 %v767_v32, %v749_v23  ;;  %v774_v51 = vadd.f32 %v768_v53, %v750_v50  ;;  %v16_v48 = vadd.s32 128, %v15_v19 }
 0x257   :  { %v665_v49 = vadd.f32 %v659_v61, %v641_v9  ;;  %v405_v30 = vadd.f32 %v399_v35, %v381_v47  ;;  %v3424_v31 = vpop.permute.xlu0 %1463 }
 0x258   :  { %673 = vrot.lane.b32.xlu0 %v663_v29, %s2586_s25  ;;  %542 = vrot.lane.b32.xlu1 %v531_v39, %s2567_s20  ;;  %v797_v33 = vadd.f32 %v791_v2, %v773_v6  ;;  %v798_v15 = vadd.f32 %v792_v59, %v774_v51  ;;  %v3412_v12 = vpop.permute.xlu1 %1907  ;;  %v3436_v29 = vand.u32 15, %v15_v19  ;;  %v3438_v44 = vand.u32 15, %v16_v48 }
 0x25a   :  { %4254 = vst [vmem:[#allocation79_spill] sm:$0xff] %v3436_v29  ;;  %4255 = vst [vmem:[#allocation80_spill] sm:$0xff] %v3438_v44  ;;  %v159_v0 = vadd.s32 4294967294, %v3436_v29  ;;  %v160_v46 = vadd.s32 4294967294, %v3438_v44  ;;  %v296_v32 = vadd.s32 4294967295, %v3436_v29  ;;  %v297_v52 = vadd.s32 4294967295, %v3438_v44 }
 0x25b   :  { %v3428_v20 = vpop.permute.xlu0 %1784  ;;  %v555_v53 = vadd.s32 1, %v3436_v29  ;;  %v556_v22 = vadd.s32 1, %v3438_v44  ;;  %v688_v14 = vadd.s32 2, %v3436_v29  ;;  %v689_v61 = vadd.s32 2, %v3438_v44 }
 0x25c   :  { %677 = vrot.lane.b32.xlu0 %v665_v49, %s2586_s25  ;;  %675 = vrot.lane.b32.xlu1 %v664_v58, %s2586_s25  ;;  %v3414_v11 = vpop.permute.xlu1 %1633  ;;  %vm161_vm8 = vcmp.ge.s32.totalorder %v159_v0, 0  ;;  %vm162_vm9 = vcmp.ge.s32.totalorder %v160_v46, 0  ;;  %vm298_vm12 = vcmp.ge.s32.totalorder %v296_v32, 0  ;;  %vm299_vm13 = vcmp.ge.s32.totalorder %v297_v52, 0  ;;  %v4256_v58 = vld [vmem:[#allocation3_spill] sm:$0xff]  ;;  %v4258_v46 = vld [vmem:[#allocation4_spill] sm:$0xff] }
 0x25d   :  { %vm559_vm14 = vcmp.lt.s32.totalorder %v555_v53, 16  ;;  %vm560_vm1 = vcmp.lt.s32.totalorder %v556_v22, 16  ;;  %v4260_v52 = vld [vmem:[#allocation7_spill] sm:$0xff] }
 0x25f   :  { %v3432_v60 = vpop.permute.xlu0 %1808 }
 0x260   :  { %810 = vrot.lane.b32.xlu0 %v798_v15, %s2585_s24  ;;  %808 = vrot.lane.b32.xlu1 %v797_v33, %s2585_s24  ;;  %v3416_v24 = vpop.permute.xlu1 %1935 }
 0x261   :  { %4250 = vst [vmem:[#allocation10_spill] sm:$0xff] %v3416_v24 }
 0x263   :  { %v3434_v17 = vpop.permute.xlu0 %1983 }
 0x264   :  { %416 = vrot.lane.b32.xlu0 %v405_v30, %s2584_s23  ;;  %v3418_v38 = vpop.permute.xlu1 %1483  ;;  %4253 = vst [vmem:[#allocation16_spill] sm:$0xff] %v3434_v17 }
 0x268   :  { %v3422_v57 = vpop.permute.xlu1 %1653 }
 0x26c   :  { %v3426_v36 = vpop.permute.xlu1 %1959 }
 0x26d   :  { %4251 = vst [vmem:[#allocation12_spill] sm:$0xff] %v3426_v36 }
 0x270   :  { %v3430_v62 = vpop.permute.xlu1 %1828 }
 0x271   :  { %4252 = vst [vmem:[#allocation11_spill] sm:$0xff] %v3430_v62 }
 0x289   :  { %v282_v27 = vpop.permute.xlu1 %281 }
 0x28d   :  { %v415_v43 = vpop.permute.xlu1 %414 }
 0x2ac   :  { %v286_v18 = vpop.permute.xlu0 %285 }
 0x2b0   :  { %v541_v5 = vpop.permute.xlu0 %540 }
 0x2be   :  { %v419_v10 = vpop.permute.xlu1 %418 }
 0x2c2   :  { %v807_v13 = vpop.permute.xlu1 %806 }
 0x2c6   :  { %v545_v7 = vpop.permute.xlu0 %544  ;;  %v284_v4 = vpop.permute.xlu1 %283 }
 0x2c7   :  { %v288_v9 = vsel %vm287_vm7, %v282_v27, %v284_v4  ;;  %v289_v39 = vsel %vm287_vm7, %v284_v4, %v286_v18  ;;  %vm692_vm7 = vcmp.lt.s32.totalorder %v688_v14, 16  ;;  %v4263_v14 = vld [vmem:[#allocation9_spill] sm:$0xff] }
 0x2c8   :  { %v292_v41 = vsel %vm161_vm8, %v288_v9, 0.0  ;;  %v293_v16 = vsel %vm162_vm9, %v289_v39, 0.0  ;;  %vm693_vm8 = vcmp.lt.s32.totalorder %v689_v61, 16  ;;  %v4259_v9 = vld [vmem:[#allocation5_spill] sm:$0xff]  ;;  %vm952_vm9 = vcmask 130048  }
 0x2c9   :  { %v294_v49 = vadd.f32 %v292_v41, %v4256_v58  ;;  %v295_v6 = vadd.f32 %v293_v16, %v4256_v58  ;;  %v4262_v41 = vld [vmem:[#allocation8_spill] sm:$0xff]  ;;  %v4264_v58 = vld [vmem:[#allocation14_spill] sm:$0xff] }
 0x2ca   :  { %v674_v56 = vpop.permute.xlu0 %673  ;;  %v543_v21 = vpop.permute.xlu1 %542 }
 0x2cb   :  { %v547_v15 = vsel %vm546_vm11, %v541_v5, %v543_v21  ;;  %v548_v35 = vsel %vm546_vm11, %v543_v21, %v545_v7  ;;  %v4257_v5 = vld [vmem:[#allocation2_spill] sm:$0xff] }
 0x2ce   :  { %v678_v40 = vpop.permute.xlu0 %677  ;;  %v676_v23 = vpop.permute.xlu1 %675 }
 0x2cf   :  { %v680_v54 = vsel %vm679_vm15, %v674_v56, %v676_v23  ;;  %v681_v59 = vsel %vm679_vm15, %v676_v23, %v678_v40  ;;  %v4261_v23 = vld [vmem:[#allocation6_spill] sm:$0xff]  ;;  %vm1675_vm15 = vcmask 105472  }
 0x2d0   :  { %v684_v18 = vsel %vm559_vm14, %v680_v54, 0.0  ;;  %v685_v42 = vsel %vm560_vm1, %v681_v59, 0.0 }
 0x2d2   :  { %v811_v50 = vpop.permute.xlu0 %810  ;;  %v809_v45 = vpop.permute.xlu1 %808 }
 0x2d3   :  { %v813_v47 = vsel %vm812_vm2, %v807_v13, %v809_v45  ;;  %v814_v30 = vsel %vm812_vm2, %v809_v45, %v811_v50 }
 0x2d4   :  { %v817_v48 = vsel %vm692_vm7, %v813_v47, 0.0  ;;  %v818_v4 = vsel %vm693_vm8, %v814_v30, 0.0  ;;  %v4268_v47 = vld [vmem:[#allocation18_spill] sm:$0xff]  ;;  %vm1850_vm7 = vcmask 80896  }
 0x2d6   :  { %v417_v34 = vpop.permute.xlu0 %416 }
 0x2d7   :  { %v421_v51 = vsel %vm420_vm10, %v415_v43, %v417_v34  ;;  %v422_v25 = vsel %vm420_vm10, %v417_v34, %v419_v10 }
 0x2d8   :  { %v425_v55 = vsel %vm298_vm12, %v421_v51, 0.0  ;;  %v426_v2 = vsel %vm299_vm13, %v422_v25, 0.0  ;;  %v4265_v51 = vld [vmem:[#allocation13_spill] sm:$0xff] }
 0x2d9   :  { %v427_v3 = vadd.f32 %v425_v55, %v294_v49  ;;  %v428_v33 = vadd.f32 %v426_v2, %v295_v6  ;;  %v4266_v55 = vld [vmem:[#allocation15_spill] sm:$0xff] }
 0x2db   :  { %v553_v27 = vadd.f32 %v547_v15, %v427_v3  ;;  %v554_v43 = vadd.f32 %v548_v35, %v428_v33  ;;  %v4267_v33 = vld [vmem:[#allocation17_spill] sm:$0xff] }
 0x2dd   :  { %v686_v10 = vadd.f32 %v684_v18, %v553_v27  ;;  %v687_v19 = vadd.f32 %v685_v42, %v554_v43 }
 0x2df   :  { %v3454_v56 = vadd.f32 %v817_v48, %v686_v10  ;;  %v3456_v0 = vadd.f32 %v818_v4, %v687_v19  ;;  %v4269_v10 = vld [vmem:[#allocation20_spill] sm:$0xff]  ;;  %v4270_v4 = vld [vmem:[#allocation19_spill] sm:$0xff] }
 0x2e1   :  { %v845_v7 = vmul.f32 %v4257_v5, %v3454_v56  ;;  %v846_v13 = vmul.f32 %v4257_v5, %v3456_v0  ;;  %v870_v21 = vmul.f32 %v4258_v46, %v3456_v0  ;;  %v869_v40 = vmul.f32 %v4258_v46, %v3454_v56 }
 0x2e2   :  { %v1021_v39 = vmul.f32 %v4259_v9, %v3454_v56  ;;  %v1022_v32 = vmul.f32 %v4259_v9, %v3456_v0  ;;  %v1046_v53 = vmul.f32 %v4260_v52, %v3456_v0  ;;  %v893_v50 = vmul.f32 %v4261_v23, %v3454_v56  ;;  %v4273_v9 = vld [vmem:[#allocation22_spill] sm:$0xff] }
 0x2e3   :  { %854 = vrot.lane.b32.xlu0 %v846_v13, %s2539_s18  ;;  %852 = vrot.lane.b32.xlu1 %v845_v7, %s2539_s18  ;;  %v1196_v16 = vmul.f32 %v4262_v41, %v3454_v56  ;;  %v894_v22 = vmul.f32 %v4261_v23, %v3456_v0  ;;  %v917_v61 = vmul.f32 %v4263_v14, %v3456_v0  ;;  %v4271_v13 = vld [vmem:[#allocation21_spill] sm:$0xff] }
 0x2e4   :  { %v1045_v34 = vmul.f32 %v4260_v52, %v3454_v56  ;;  %v1069_v49 = vmul.f32 %v4264_v58, %v3454_v56  ;;  %v1197_v6 = vmul.f32 %v4262_v41, %v3456_v0  ;;  %v1221_v25 = vmul.f32 %v4265_v51, %v3456_v0  ;;  %v4274_v52 = vld [vmem:[#allocation25_spill] sm:$0xff] }
 0x2e5   :  { %v916_v45 = vmul.f32 %v4263_v14, %v3454_v56  ;;  %v1364_v2 = vmul.f32 %v4266_v55, %v3456_v0  ;;  %v1070_v54 = vmul.f32 %v4264_v58, %v3456_v0  ;;  %v941_v59 = vmul.f32 %v2871_v28, %v3456_v0 }
 0x2e6   :  { %v1220_v3 = vmul.f32 %v4265_v51, %v3454_v56  ;;  %v1092_v15 = vmul.f32 %v4267_v33, %v3454_v56  ;;  %v1363_v35 = vmul.f32 %v4266_v55, %v3454_v56  ;;  %v1245_v30 = vmul.f32 %v4268_v47, %v3456_v0 }
 0x2e7   :  { %878 = vrot.lane.b32.xlu0 %v870_v21, %s2567_s20  ;;  %876 = vrot.lane.b32.xlu1 %v869_v40, %s2567_s20  ;;  %v940_v27 = vmul.f32 %v2871_v28, %v3454_v56  ;;  %v1528_v43 = vmul.f32 %v2882_v63, %v3454_v56  ;;  %v1093_v18 = vmul.f32 %v4267_v33, %v3456_v0  ;;  %v4272_v21 = vld [vmem:[#allocation23_spill] sm:$0xff]  ;;  %v4281_v33 = vld [vmem:[#allocation30_spill] sm:$0xff] }
 0x2e8   :  { %v1387_v42 = vmul.f32 %v2903_v8, %v3454_v56  ;;  %v1244_v28 = vmul.f32 %v4268_v47, %v3454_v56  ;;  %v965_v19 = vmul.f32 %v4269_v10, %v3456_v0  ;;  %v1529_v48 = vmul.f32 %v2882_v63, %v3456_v0 }
 0x2e9   :  { %v1116_v5 = vmul.f32 %v4270_v4, %v3454_v56  ;;  %v1388_v7 = vmul.f32 %v2903_v8, %v3456_v0  ;;  %v1268_v46 = vmul.f32 %v4271_v13, %v3456_v0  ;;  %v1117_v63 = vmul.f32 %v4270_v4, %v3456_v0 }
 0x2ea   :  { %v1553_v40 = vmul.f32 %v4272_v21, %v3456_v0  ;;  %v1267_v8 = vmul.f32 %v4271_v13, %v3454_v56  ;;  %v1704_v23 = vmul.f32 %v4273_v9, %v3456_v0 }
 0x2eb   :  { %1028 = vrot.lane.b32.xlu0 %v1021_v39, %s2539_s18  ;;  %1030 = vrot.lane.b32.xlu1 %v1022_v32, %s2539_s18  ;;  %v1703_v39 = vmul.f32 %v4273_v9, %v3454_v56  ;;  %v1552_v32 = vmul.f32 %v4272_v21, %v3454_v56 }
 0x2ef   :  { %1054 = vrot.lane.b32.xlu0 %v1046_v53, %s2567_s20  ;;  %900 = vrot.lane.b32.xlu1 %v893_v50, %s2537_s16  ;;  %v1410_v53 = vmul.f32 %v4274_v52, %v3454_v56  ;;  %v4275_v50 = vld [vmem:[#allocation26_spill] sm:$0xff] }
 0x2f0   :  { %v1140_v41 = vmul.f32 %v4275_v50, %v3456_v0 }
 0x2f3   :  { %1203 = vrot.lane.b32.xlu0 %v1196_v16, %s2539_s18  ;;  %902 = vrot.lane.b32.xlu1 %v894_v22, %s2537_s16  ;;  %v1411_v16 = vmul.f32 %v4274_v52, %v3456_v0  ;;  %v4276_v22 = vld [vmem:[#allocation24_spill] sm:$0xff] }
 0x2f4   :  { %v1291_v14 = vmul.f32 %v4276_v22, %v3454_v56  ;;  %v4287_v52 = vld [vmem:[#allocation36_spill] sm:$0xff] }
 0x2f7   :  { %924 = vrot.lane.b32.xlu0 %v917_v61, %s2540_s19  ;;  %1052 = vrot.lane.b32.xlu1 %v1045_v34, %s2567_s20  ;;  %v1292_v61 = vmul.f32 %v4276_v22, %v3456_v0  ;;  %v4277_v34 = vld [vmem:[#allocation27_spill] sm:$0xff] }
 0x2f8   :  { %v1576_v58 = vmul.f32 %v4277_v34, %v3456_v0 }
 0x2fb   :  { %1076 = vrot.lane.b32.xlu0 %v1069_v49, %s2537_s16  ;;  %1205 = vrot.lane.b32.xlu1 %v1197_v6, %s2539_s18  ;;  %v1575_v49 = vmul.f32 %v4277_v34, %v3454_v56  ;;  %v4278_v6 = vld [vmem:[#allocation29_spill] sm:$0xff] }
 0x2fc   :  { %v1728_v51 = vmul.f32 %v4278_v6, %v3456_v0 }
 0x2ff   :  { %1229 = vrot.lane.b32.xlu0 %v1221_v25, %s2567_s20  ;;  %922 = vrot.lane.b32.xlu1 %v916_v45, %s2540_s19  ;;  %v1727_v25 = vmul.f32 %v4278_v6, %v3454_v56  ;;  %v4279_v45 = vld [vmem:[#allocation28_spill] sm:$0xff] }
 0x300   :  { %v1878_v55 = vmul.f32 %v4279_v45, %v3454_v56 }
 0x303   :  { %1372 = vrot.lane.b32.xlu0 %v1364_v2, %s2539_s18  ;;  %1078 = vrot.lane.b32.xlu1 %v1070_v54, %s2537_s16  ;;  %v1879_v2 = vmul.f32 %v4279_v45, %v3456_v0  ;;  %v4280_v54 = vld [vmem:[#allocation31_spill] sm:$0xff]  ;;  %v4289_v45 = vld [vmem:[#allocation42_spill] sm:$0xff] }
 0x307   :  { %948 = vrot.lane.b32.xlu0 %v941_v59, %s2582_s21  ;;  %1227 = vrot.lane.b32.xlu1 %v1220_v3, %s2567_s20  ;;  %v1429_v59 = vmul.f32 %v4280_v54, %v3454_v56  ;;  %v1430_v3 = vmul.f32 %v4280_v54, %v3456_v0 }
 0x30b   :  { %1098 = vrot.lane.b32.xlu0 %v1092_v15, %s2540_s19  ;;  %1370 = vrot.lane.b32.xlu1 %v1363_v35, %s2539_s18  ;;  %v1600_v15 = vmul.f32 %v4281_v33, %v3456_v0  ;;  %v4282_v35 = vld [vmem:[#allocation32_spill] sm:$0xff] }
 0x30c   :  { %v1315_v47 = vmul.f32 %v4282_v35, %v3456_v0  ;;  %v4292_v35 = vld [vmem:[#allocation60_spill] sm:$0xff] }
 0x30f   :  { %1253 = vrot.lane.b32.xlu0 %v1245_v30, %s2537_s16  ;;  %946 = vrot.lane.b32.xlu1 %v940_v27, %s2582_s21  ;;  %v1750_v30 = vmul.f32 %v2978_v1, %v3454_v56  ;;  %v2587_v27 = vmov 108  }
 0x310   :  { %2475 = vset.pattern.permute.xlu1 %v2587_v27  ;;  %v4293_v27 = vld [vmem:[#allocation44_spill] sm:$0xff] }
 0x313   :  { %1535 = vrot.lane.b32.xlu0 %v1528_v43, %s2539_s18  ;;  %1100 = vrot.lane.b32.xlu1 %v1093_v18, %s2540_s19  ;;  %v1599_v43 = vmul.f32 %v4281_v33, %v3454_v56  ;;  %v1902_v18 = vmul.f32 %v2988_v37, %v3454_v56 }
 0x317   :  { %1394 = vrot.lane.b32.xlu0 %v1387_v42, %s2567_s20  ;;  %1251 = vrot.lane.b32.xlu1 %v1244_v28, %s2537_s16  ;;  %v1751_v42 = vmul.f32 %v2978_v1, %v3456_v0  ;;  %v4283_v28 = vld [vmem:[#allocation33_spill] sm:$0xff] }
 0x318   :  { %v1453_v10 = vmul.f32 %v4283_v28, %v3454_v56  ;;  %v1454_v13 = vmul.f32 %v4283_v28, %v3456_v0 }
 0x31b   :  { %969 = vrot.lane.b32.xlu0 %v965_v19, %s2538_s17  ;;  %1537 = vrot.lane.b32.xlu1 %v1529_v48, %s2539_s18  ;;  %v1903_v48 = vmul.f32 %v2988_v37, %v3456_v0 }
 0x31f   :  { %1122 = vrot.lane.b32.xlu0 %v1116_v5, %s2582_s21  ;;  %1396 = vrot.lane.b32.xlu1 %v1388_v7, %s2567_s20  ;;  %v4284_v5 = vld [vmem:[#allocation34_spill] sm:$0xff] }
 0x320   :  { %v1624_v7 = vmul.f32 %v4284_v5, %v3456_v0 }
 0x323   :  { %1275 = vrot.lane.b32.xlu0 %v1268_v46, %s2540_s19  ;;  %1124 = vrot.lane.b32.xlu1 %v1117_v63, %s2582_s21  ;;  %v4285_v63 = vld [vmem:[#allocation35_spill] sm:$0xff] }
 0x324   :  { %v1774_v37 = vmul.f32 %v4285_v63, %v3454_v56  ;;  %v1775_v50 = vmul.f32 %v4285_v63, %v3456_v0 }
 0x327   :  { %1561 = vrot.lane.b32.xlu0 %v1553_v40, %s2567_s20  ;;  %1273 = vrot.lane.b32.xlu1 %v1267_v8, %s2540_s19  ;;  %v1623_v40 = vmul.f32 %v4284_v5, %v3454_v56 }
 0x32b   :  { %1710 = vrot.lane.b32.xlu0 %v1703_v39, %s2539_s18  ;;  %1559 = vrot.lane.b32.xlu1 %v1552_v32, %s2567_s20  ;;  %v4286_v39 = vld [vmem:[#allocation46_spill] sm:$0xff] }
 0x32c   :  { %v839_v32 = vmul.f32 %v4286_v39, %v3454_v56  ;;  %v838_v28 = vmul.f32 0.0, %v4286_v39 }
 0x32f   :  { %1414 = vrot.lane.b32.xlu0 %v1410_v53, %s2537_s16  ;;  %1712 = vrot.lane.b32.xlu1 %v1704_v23, %s2539_s18  ;;  %v1926_v53 = vmul.f32 %v4287_v52, %v3456_v0 }
 0x333   :  { %1144 = vrot.lane.b32.xlu0 %v1140_v41, %s2538_s17  ;;  %1416 = vrot.lane.b32.xlu1 %v1411_v16, %s2537_s16 }
 0x337   :  { %1297 = vrot.lane.b32.xlu0 %v1291_v14, %s2582_s21  ;;  %1299 = vrot.lane.b32.xlu1 %v1292_v61, %s2582_s21  ;;  %v4288_v14 = vld [vmem:[#allocation37_spill] sm:$0xff] }
 0x338   :  { %v1477_v61 = vmul.f32 %v4288_v14, %v3456_v0 }
 0x33b   :  { %1583 = vrot.lane.b32.xlu0 %v1576_v58, %s2537_s16  ;;  %1581 = vrot.lane.b32.xlu1 %v1575_v49, %s2537_s16  ;;  %v1925_v49 = vmul.f32 %v4287_v52, %v3454_v56  ;;  %v4297_v52 = vld [vmem:[#allocation54_spill] sm:$0xff] }
 0x33f   :  { %1736 = vrot.lane.b32.xlu0 %v1728_v51, %s2567_s20  ;;  %1734 = vrot.lane.b32.xlu1 %v1727_v25, %s2567_s20 }
 0x343   :  { %1885 = vrot.lane.b32.xlu0 %v1878_v55, %s2539_s18  ;;  %1887 = vrot.lane.b32.xlu1 %v1879_v2, %s2539_s18  ;;  %v1015_v55 = vmul.f32 %v4289_v45, %v3454_v56  ;;  %v4290_v2 = vld [vmem:[#allocation39_spill] sm:$0xff] }
 0x344   :  { %v1647_v54 = vmul.f32 %v4290_v2, %v3456_v0 }
 0x347   :  { %1435 = vrot.lane.b32.xlu0 %v1429_v59, %s2540_s19  ;;  %1437 = vrot.lane.b32.xlu1 %v1430_v3, %s2540_s19  ;;  %v4291_v3 = vld [vmem:[#allocation38_spill] sm:$0xff] }
 0x348   :  { %v1799_v33 = vmul.f32 %v4291_v3, %v3456_v0 }
 0x34b   :  { %1607 = vrot.lane.b32.xlu0 %v1600_v15, %s2540_s19  ;;  %1319 = vrot.lane.b32.xlu1 %v1315_v47, %s2538_s17 }
 0x34f   :  { %1756 = vrot.lane.b32.xlu0 %v1750_v30, %s2537_s16  ;;  %1605 = vrot.lane.b32.xlu1 %v1599_v43, %s2540_s19 }
 0x353   :  { %1909 = vrot.lane.b32.xlu0 %v1902_v18, %s2567_s20  ;;  %1758 = vrot.lane.b32.xlu1 %v1751_v42, %s2537_s16 }
 0x355   :  { %v855_v19 = vpop.permute.xlu0 %854  ;;  %v853_v4 = vpop.permute.xlu1 %852 }
 0x356   :  { %v857_v9 = vsel %vm240_vm5, %v853_v4, %v855_v19  ;;  %v856_v43 = vsel %vm240_vm5, %v4293_v27, %v853_v4  ;;  %v1798_v19 = vmul.f32 %v4291_v3, %v3454_v56 }
 0x357   :  { %1459 = vrot.lane.b32.xlu0 %v1453_v10, %s2582_s21  ;;  %1911 = vrot.lane.b32.xlu1 %v1903_v48, %s2567_s20  ;;  %v863_v22 = vadd.f32 %v857_v9, %v839_v32  ;;  %v4294_v48 = vld [vmem:[#allocation47_spill] sm:$0xff] }
 0x359   :  { %v879_v1 = vpop.permute.xlu0 %878  ;;  %v877_v46 = vpop.permute.xlu1 %876 }
 0x35a   :  { %v881_v41 = vsel %vm546_vm11, %v877_v46, %v879_v1  ;;  %v880_v5 = vsel %vm546_vm11, %v4294_v48, %v877_v46  ;;  %v4295_v1 = vld [vmem:[#allocation49_spill] sm:$0xff] }
 0x35b   :  { %1631 = vrot.lane.b32.xlu0 %v1624_v7, %s2582_s21  ;;  %1461 = vrot.lane.b32.xlu1 %v1454_v13, %s2582_s21  ;;  %v887_v58 = vadd.f32 %v881_v41, %v863_v22  ;;  %v1190_v4 = vmul.f32 %v4295_v1, %v3454_v56  ;;  %v4296_v13 = vld [vmem:[#allocation41_spill] sm:$0xff]  ;;  %v4298_v41 = vld [vmem:[#allocation40_spill] sm:$0xff] }
 0x35c   :  { %v1949_v63 = vmul.f32 %v4296_v13, %v3454_v56  ;;  %v1950_v46 = vmul.f32 %v4296_v13, %v3456_v0  ;;  %v1974_v22 = vmul.f32 %v4298_v41, %v3456_v0 }
 0x35d   :  { %v1029_v21 = vpop.permute.xlu0 %1028  ;;  %v1031_v8 = vpop.permute.xlu1 %1030 }
 0x35e   :  { %v1033_v51 = vsel %vm240_vm5, %v1029_v21, %v1031_v8 }
 0x35f   :  { %1780 = vrot.lane.b32.xlu0 %v1774_v37, %s2540_s19  ;;  %1629 = vrot.lane.b32.xlu1 %v1623_v40, %s2582_s21  ;;  %v1039_v15 = vadd.f32 %v1033_v51, %v1015_v55  ;;  %v862_v37 = vadd.f32 %v856_v43, %v838_v28  ;;  %v3718_v43 = vmul.f32 0.0, %v4295_v1 }
 0x361   :  { %v1055_v23 = vpop.permute.xlu0 %1054  ;;  %v3658_v16 = vpop.permute.xlu1 %900  ;;  %v886_v39 = vadd.f32 %v880_v5, %v862_v37  ;;  %v4303_v5 = vld [vmem:[#allocation61_spill] sm:$0xff] }
 0x363   :  { %1933 = vrot.lane.b32.xlu0 %v1926_v53, %s2537_s16  ;;  %1782 = vrot.lane.b32.xlu1 %v1775_v50, %s2540_s19  ;;  %v1032_v53 = vsel %vm240_vm5, %v4297_v52, %v1029_v21  ;;  %v1014_v50 = vmul.f32 0.0, %v4289_v45  ;;  %v4300_v21 = vld [vmem:[#allocation43_spill] sm:$0xff] }
 0x364   :  { %v1822_v55 = vmul.f32 %v4300_v21, %v3456_v0 }
 0x365   :  { %v1204_v34 = vpop.permute.xlu0 %1203  ;;  %v903_v6 = vpop.permute.xlu1 %902  ;;  %v1038_v51 = vadd.f32 %v1032_v53, %v1014_v50  ;;  %v1037_v2 = vadd.f32 %v4297_v52, %v1014_v50  ;;  %v3742_v53 = vld [vmem:[%s4068_s1] sm:$0xff]  ;;  %s2588_s1 = smov 13  }
 0x366   :  { %v911_v25 = vadd.f32 %v903_v6, %v887_v58  ;;  %v905_v8 = vsel %vm190_vm3, %v3658_v16, %v903_v6  ;;  %v4299_v58 = vld [vmem:[#allocation51_spill] sm:$0xff]  ;;  %4307 = vst [vmem:[#allocation3_spill] sm:$0xff] %v3742_v53 }
 0x367   :  { %1481 = vrot.lane.b32.xlu0 %v1477_v61, %s2538_s17  ;;  %1931 = vrot.lane.b32.xlu1 %v1925_v49, %s2537_s16  ;;  %v910_v14 = vadd.f32 %v905_v8, %v886_v39  ;;  %v1061_v13 = vadd.f32 %v4299_v58, %v1037_v2  ;;  %v4305_v8 = vld [vmem:[#allocation55_spill] sm:$0xff] }
 0x369   :  { %v925_v59 = vpop.permute.xlu0 %924  ;;  %v1053_v30 = vpop.permute.xlu1 %1052 }
 0x36a   :  { %v929_v47 = vsel %vm265_vm6, %v925_v59, %v4292_v35  ;;  %v1057_v42 = vsel %vm546_vm11, %v1053_v30, %v1055_v23  ;;  %v1056_v49 = vsel %vm546_vm11, %v4299_v58, %v1053_v30  ;;  %v4302_v35 = vld [vmem:[#allocation56_spill] sm:$0xff] }
 0x36b   :  { %v935_v18 = vadd.f32 %v929_v47, %v911_v25  ;;  %1651 = vrot.lane.b32.xlu0 %v1647_v54, %s2538_s17  ;;  %v1063_v10 = vadd.f32 %v1057_v42, %v1039_v15  ;;  %1806 = vrot.lane.b32.xlu1 %v1799_v33, %s2582_s21  ;;  %v4301_v54 = vld [vmem:[#allocation45_spill] sm:$0xff]  ;;  %v1062_v33 = vadd.f32 %v1056_v49, %v1038_v51 }
 0x36c   :  { %v1997_v3 = vmul.f32 %v4301_v54, %v3456_v0  ;;  %v1973_v0 = vmul.f32 %v4298_v41, %v3454_v56  ;;  %v4308_v41 = vld [vmem:[#allocation50_spill] sm:$0xff] }
 0x36d   :  { %v1077_v7 = vpop.permute.xlu0 %1076  ;;  %v1206_v40 = vpop.permute.xlu1 %1205 }
 0x36e   :  { %v1208_v9 = vsel %vm240_vm5, %v1204_v34, %v1206_v40 }
 0x36f   :  { %1804 = vrot.lane.b32.xlu0 %v1798_v19, %s2582_s21  ;;  %v1214_v32 = vadd.f32 %v1208_v9, %v1190_v4  ;;  %1955 = vrot.lane.b32.xlu1 %v1949_v63, %s2540_s19  ;;  %v861_v19 = vadd.f32 %v4293_v27, %v838_v28  ;;  %v4304_v63 = vld [vmem:[#allocation63_spill] sm:$0xff] }
 0x371   :  { %v1230_v23 = vpop.permute.xlu0 %1229  ;;  %v923_v61 = vpop.permute.xlu1 %922 }
 0x372   :  { %v928_v6 = vsel %vm265_vm6, %v923_v61, %v925_v59  ;;  %v1207_v59 = vsel %vm240_vm5, %v4302_v35, %v1204_v34  ;;  %v1080_v34 = vsel %vm190_vm3, %v4303_v5, %v1077_v7 }
 0x373   :  { %1957 = vrot.lane.b32.xlu0 %v1950_v46, %s2540_s19  ;;  %v934_v25 = vadd.f32 %v928_v6, %v910_v14  ;;  %1981 = vrot.lane.b32.xlu1 %v1974_v22, %s2582_s21  ;;  %v1085_v39 = vadd.f32 %v1080_v34, %v1061_v13  ;;  %v1357_v22 = vmul.f32 %v4308_v41, %v3454_v56 }
 0x375   :  { %v1373_v45 = vpop.permute.xlu0 %1372  ;;  %v1079_v15 = vpop.permute.xlu1 %1078 }
 0x376   :  { %v1081_v47 = vsel %vm190_vm3, %v1077_v7, %v1079_v15  ;;  %v1087_v30 = vadd.f32 %v1079_v15, %v1063_v10  ;;  %v1213_v10 = vadd.f32 %v1207_v59, %v3718_v43  ;;  %v4306_v7 = vld [vmem:[#allocation58_spill] sm:$0xff] }
 0x377   :  { %1826 = vrot.lane.b32.xlu0 %v1822_v55, %s2538_s17  ;;  %v1086_v42 = vadd.f32 %v1081_v47, %v1062_v33  ;;  %2001 = vrot.lane.b32.xlu1 %v1997_v3, %s2538_s17  ;;  %v904_v9 = vsel %vm190_vm3, %v4306_v7, %v3658_v16  ;;  %v4309_v33 = vld [vmem:[#allocation57_spill] sm:$0xff]  ;;  %v3755_v47 = vmul.f32 0.0, %v4308_v41 }
 0x379   :  { %v949_v4 = vpop.permute.xlu0 %948  ;;  %v1228_v37 = vpop.permute.xlu1 %1227 }
 0x37a   :  { %v954_v1 = vsel %vm952_vm9, %v949_v4, %v4304_v63  ;;  %v1231_v27 = vsel %vm546_vm11, %v4305_v8, %v1228_v37  ;;  %v1232_v28 = vsel %vm546_vm11, %v1228_v37, %v1230_v23  ;;  %v885_v23 = vadd.f32 %v4294_v48, %v861_v19  ;;  %v4310_v19 = vld [vmem:[#allocation59_spill] sm:$0xff] }
 0x37b   :  { %v3730_v40 = vadd.f32 %v954_v1, %v935_v18  ;;  %1979 = vrot.lane.b32.xlu0 %v1973_v0, %s2582_s21  ;;  %v1237_v46 = vadd.f32 %v1231_v27, %v1213_v10  ;;  %v1238_v52 = vadd.f32 %v1232_v28, %v1214_v32  ;;  %822 = vperm.xlu1 %2475, %v3742_v53   ;;  %v1998_v18 = vmul.f32 0.0, %v4301_v54  ;;  %v4311_v10 = vld [vmem:[#allocation67_spill] sm:$0xff]  ;;  %v4312_v28 = vld [vmem:[#allocation53_spill] sm:$0xff] }
 0x37c   :  { %v909_v58 = vadd.f32 %v904_v9, %v885_v23  ;;  %v1522_v7 = vmul.f32 %v4312_v28, %v3454_v56  ;;  %v4313_v9 = vld [vmem:[#allocation68_spill] sm:$0xff] }
 0x37d   :  { %v1099_v50 = vpop.permute.xlu0 %1098  ;;  %v1371_v16 = vpop.permute.xlu1 %1370 }
 0x37e   :  { %v1109_v14 = vadd.f32 %v1099_v50, %v1085_v39  ;;  %v1375_v32 = vsel %vm240_vm5, %v1371_v16, %v1373_v45  ;;  %v933_v6 = vadd.f32 %v923_v61, %v909_v58  ;;  %v1374_v15 = vsel %vm240_vm5, %v4309_v33, %v1371_v16 }
 0x37f   :  { %2003 = vrot.lane.b32.xlu0 %v1998_v18, %s2538_s17  ;;  %v1381_v49 = vadd.f32 %v1375_v32, %v1357_v22  ;;  %v1380_v34 = vadd.f32 %v1374_v15, %v3755_v47  ;;  %v4314_v32 = vld [vmem:[#allocation70_spill] sm:$0xff] }
 0x381   :  { %v1254_v51 = vpop.permute.xlu0 %1253  ;;  %v947_v55 = vpop.permute.xlu1 %946 }
 0x382   :  { %v1262_v21 = vadd.f32 %v1254_v51, %v1238_v52  ;;  %v953_v2 = vsel %vm952_vm9, %v947_v55, %v949_v4  ;;  %v958_v54 = vadd.f32 %v947_v55, %v933_v6 }
 0x383   :  { %v959_v48 = vadd.f32 %v953_v2, %v934_v25 }
 0x385   :  { %v1536_v3 = vpop.permute.xlu0 %1535  ;;  %v1101_v59 = vpop.permute.xlu1 %1100 }
 0x386   :  { %v1104_v45 = vsel %vm265_vm6, %v1099_v50, %v1101_v59  ;;  %v1105_v61 = vsel %vm265_vm6, %v1101_v59, %v4310_v19  ;;  %v4316_v19 = vld [vmem:[#allocation65_spill] sm:$0xff] }
 0x387   :  { %v1110_v0 = vadd.f32 %v1104_v45, %v1086_v42  ;;  %v1111_v5 = vadd.f32 %v1105_v61, %v1087_v30 }
 0x389   :  { %v1395_v4 = vpop.permute.xlu0 %1394  ;;  %v3763_v13 = vpop.permute.xlu1 %1251 }
 0x38a   :  { %v1398_v25 = vsel %vm546_vm11, %v4311_v10, %v1395_v4  ;;  %v1256_v1 = vsel %vm190_vm3, %v3763_v13, %v1254_v51 }
 0x38b   :  { %v1404_v63 = vadd.f32 %v1398_v25, %v1380_v34  ;;  %v1261_v37 = vadd.f32 %v1256_v1, %v1237_v46  ;;  %v1521_v34 = vmul.f32 0.0, %v4312_v28 }
 0x38d   :  { %v970_v27 = vpop.permute.xlu0 %969  ;;  %v1538_v39 = vpop.permute.xlu1 %1537  ;;  %v1544_v44 = vadd.f32 %v4316_v19, %v1521_v34 }
 0x38e   :  { %v973_v30 = vsel %vm215_vm4, %v970_v27, %v4313_v9  ;;  %v3771_v42 = vadd.f32 %v970_v27, %v958_v54  ;;  %v1540_v18 = vsel %vm240_vm5, %v1536_v3, %v1538_v39  ;;  %v4315_v54 = vld [vmem:[#allocation64_spill] sm:$0xff]  ;;  %v4317_v27 = vld [vmem:[#allocation66_spill] sm:$0xff] }
 0x38f   :  { %v3773_v52 = vadd.f32 %v973_v30, %v959_v48  ;;  %v1546_v23 = vadd.f32 %v1540_v18, %v1522_v7  ;;  %v4318_v18 = vld [vmem:[#allocation48_spill] sm:$0xff] }
 0x391   :  { %v1123_v50 = vpop.permute.xlu0 %1122  ;;  %v1397_v22 = vpop.permute.xlu1 %1396 }
 0x392   :  { %v1133_v41 = vadd.f32 %v1123_v50, %v1109_v14  ;;  %v1399_v46 = vsel %vm546_vm11, %v1395_v4, %v1397_v22 }
 0x393   :  { %v1405_v16 = vadd.f32 %v1399_v46, %v1381_v49  ;;  %v1539_v49 = vsel %vm240_vm5, %v4316_v19, %v1536_v3  ;;  %v1697_v3 = vmul.f32 %v4318_v18, %v3454_v56 }
 0x394   :  { %v1545_v25 = vadd.f32 %v1539_v49, %v1521_v34 }
 0x395   :  { %v1276_v58 = vpop.permute.xlu0 %1275  ;;  %v1125_v51 = vpop.permute.xlu1 %1124 }
 0x396   :  { %v1280_v6 = vsel %vm265_vm6, %v1276_v58, %v4314_v32  ;;  %v1128_v2 = vsel %vm952_vm9, %v1123_v50, %v1125_v51  ;;  %v1129_v48 = vsel %vm952_vm9, %v1125_v51, %v4315_v54 }
 0x397   :  { %v1286_v55 = vadd.f32 %v1280_v6, %v1262_v21  ;;  %v1134_v15 = vadd.f32 %v1128_v2, %v1110_v0  ;;  %v3782_v59 = vadd.f32 %v1129_v48, %v1111_v5 }
 0x399   :  { %v1562_v45 = vpop.permute.xlu0 %1561  ;;  %v3784_v14 = vpop.permute.xlu1 %1273 }
 0x39a   :  { %v1279_v61 = vsel %vm265_vm6, %v3784_v14, %v1276_v58 }
 0x39b   :  { %v1285_v21 = vadd.f32 %v1279_v61, %v1261_v37  ;;  %v4319_v37 = vld [vmem:[#allocation74_spill] sm:$0xff]  ;;  %v4320_v61 = vld [vmem:[#allocation69_spill] sm:$0xff] }
 0x39d   :  { %v1711_v4 = vpop.permute.xlu0 %1710  ;;  %v1560_v1 = vpop.permute.xlu1 %1559 }
 0x39e   :  { %v1563_v0 = vsel %vm546_vm11, %v4317_v27, %v1560_v1  ;;  %v1564_v5 = vsel %vm546_vm11, %v1560_v1, %v1562_v45 }
 0x39f   :  { %v1569_v7 = vadd.f32 %v1563_v0, %v1545_v25  ;;  %v1570_v30 = vadd.f32 %v1564_v5, %v1546_v23  ;;  %v4321_v0 = vld [vmem:[#allocation75_spill] sm:$0xff] }
 0x3a1   :  { %v1415_v39 = vpop.permute.xlu0 %1414  ;;  %v1713_v50 = vpop.permute.xlu1 %1712 }
 0x3a2   :  { %v1715_v22 = vsel %vm240_vm5, %v1711_v4, %v1713_v50 }
 0x3a3   :  { %v1721_v46 = vadd.f32 %v1715_v22, %v1697_v3 }
 0x3a5   :  { %v1145_v28 = vpop.permute.xlu0 %1144  ;;  %v1417_v6 = vpop.permute.xlu1 %1416 }
 0x3a6   :  { %v1148_v58 = vsel %vm215_vm4, %v1145_v28, %v4319_v37  ;;  %v3799_v32 = vadd.f32 %v1145_v28, %v1133_v41  ;;  %v1418_v2 = vsel %vm190_vm3, %v1415_v39, %v1417_v6  ;;  %v3804_v23 = vadd.f32 %v1417_v6, %v1405_v16 }
 0x3a7   :  { %v3801_v51 = vadd.f32 %v1148_v58, %v1134_v15  ;;  %v3806_v54 = vadd.f32 %v1418_v2, %v1404_v63  ;;  %v4322_v63 = vld [vmem:[#allocation72_spill] sm:$0xff]  ;;  %v1696_v28 = vmul.f32 0.0, %v4318_v18  ;;  %v4323_v2 = vld [vmem:[#allocation71_spill] sm:$0xff] }
 0x3a8   :  { %v1714_v3 = vsel %vm240_vm5, %v4322_v63, %v1711_v4 }
 0x3a9   :  { %v3808_v48 = vpop.permute.xlu0 %1297  ;;  %v1300_v45 = vpop.permute.xlu1 %1299  ;;  %v1720_v6 = vadd.f32 %v1714_v3, %v1696_v28 }
 0x3aa   :  { %v1303_v49 = vsel %vm952_vm9, %v3808_v48, %v1300_v45  ;;  %v1304_v25 = vsel %vm952_vm9, %v1300_v45, %v4320_v61 }
 0x3ab   :  { %v3814_v41 = vadd.f32 %v1303_v49, %v1285_v21  ;;  %v3816_v1 = vadd.f32 %v1304_v25, %v1286_v55 }
 0x3ad   :  { %v1584_v15 = vpop.permute.xlu0 %1583  ;;  %v1582_v5 = vpop.permute.xlu1 %1581 }
 0x3ae   :  { %v1588_v16 = vsel %vm190_vm3, %v1584_v15, %v4321_v0  ;;  %v1587_v22 = vsel %vm190_vm3, %v1582_v5, %v1584_v15 }
 0x3af   :  { %v3822_v50 = vadd.f32 %v1588_v16, %v1570_v30  ;;  %v3826_v58 = vadd.f32 %v1587_v22, %v1569_v7  ;;  %v4325_v30 = vld [vmem:[#allocation52_spill] sm:$0xff] }
 0x3b0   :  { %v1872_v15 = vmul.f32 %v4325_v30, %v3454_v56 }
 0x3b1   :  { %v1737_v21 = vpop.permute.xlu0 %1736  ;;  %v1735_v55 = vpop.permute.xlu1 %1734 }
 0x3b2   :  { %v1738_v45 = vsel %vm546_vm11, %v4323_v2, %v1735_v55  ;;  %v1739_v49 = vsel %vm546_vm11, %v1735_v55, %v1737_v21 }
 0x3b3   :  { %v3831_v61 = vadd.f32 %v1738_v45, %v1720_v6  ;;  %v3833_v25 = vadd.f32 %v1739_v49, %v1721_v46 }
 0x3b5   :  { %4324 = vst [vmem:[#allocation2_spill] sm:$0xff] %v3831_v61  ;;  %v3835_v4 = vpop.permute.xlu0 %1885  ;;  %v1888_v18 = vpop.permute.xlu1 %1887 }
 0x3b6   :  { %v1890_v7 = vsel %vm240_vm5, %v3835_v4, %v1888_v18  ;;  %v1379_v18 = vadd.f32 %v4309_v33, %v3755_v47  ;;  %v1212_v47 = vadd.f32 %v4302_v35, %v3718_v43 }
 0x3b7   :  { %v3841_v0 = vadd.f32 %v1890_v7, %v1872_v15 }
 0x3b8   :  { %v1403_v29 = vadd.f32 %v4311_v10, %v1379_v18 }
 0x3b9   :  { %4326 = vst [vmem:[#allocation4_spill] sm:$0xff] %v3841_v0  ;;  %v3843_v16 = vpop.permute.xlu0 %1435  ;;  %v3845_v3 = vpop.permute.xlu1 %1437  ;;  %v1568_v0 = vadd.f32 %v4317_v27, %v1544_v44  ;;  %v4328_v44 = vld [vmem:[#allocation62_spill] sm:$0xff]  ;;  %v1236_v27 = vadd.f32 %v4305_v8, %v1212_v47 }
 0x3ba   :  { %v1422_v17 = vadd.f32 %v1415_v39, %v1403_v29 }
 0x3bb   :  { %v1592_v61 = vadd.f32 %v1582_v5, %v1568_v0 }
 0x3bc   :  { %v1446_v24 = vadd.f32 %v3843_v16, %v1422_v17  ;;  %v1255_v17 = vsel %vm190_vm3, %v4328_v44, %v3763_v13 }
 0x3bd   :  { %v3847_v22 = vpop.permute.xlu0 %1607  ;;  %v1320_v21 = vpop.permute.xlu1 %1319  ;;  %v1260_v5 = vadd.f32 %v1255_v17, %v1236_v27 }
 0x3bf   :  { %v1284_v35 = vadd.f32 %v3784_v14, %v1260_v5 }
 0x3c1   :  { %v3849_v46 = vpop.permute.xlu0 %1756  ;;  %v3851_v6 = vpop.permute.xlu1 %1605  ;;  %v1308_v13 = vadd.f32 %v3808_v48, %v1284_v35 }
 0x3c2   :  { %v1616_v10 = vadd.f32 %v3851_v6, %v1592_v61 }
 0x3c5   :  { %v3853_v55 = vpop.permute.xlu0 %1909  ;;  %v3855_v56 = vpop.permute.xlu1 %1758 }
 0x3c9   :  { %v3857_v45 = vpop.permute.xlu0 %1459  ;;  %v3859_v49 = vpop.permute.xlu1 %1911 }
 0x3ca   :  { %4327 = vst [vmem:[#allocation5_spill] sm:$0xff] %v3859_v49  ;;  %v1470_v62 = vadd.f32 %v3857_v45, %v1446_v24  ;;  %v1719_v24 = vadd.f32 %v4322_v63, %v1696_v28  ;;  %v1327_v63 = vadd.f32 %v1320_v21, %v1308_v13 }
 0x3cc   :  { %v1743_v43 = vadd.f32 %v4323_v2, %v1719_v24 }
 0x3cd   :  { %v3861_v15 = vpop.permute.xlu0 %1631  ;;  %v3869_v53 = vpop.permute.xlu1 %1461 }
 0x3ce   :  { %v1767_v61 = vadd.f32 %v3849_v46, %v1743_v43  ;;  %v1466_v17 = vsel %vm952_vm9, %v3869_v53, %v3424_v31  ;;  %v1611_v31 = vsel %vm265_vm6, %v3851_v6, %v3847_v22 }
 0x3d1   :  { %v3865_v7 = vpop.permute.xlu0 %1780  ;;  %v1630_v49 = vpop.permute.xlu1 %1629 }
 0x3d2   :  { %v1640_v29 = vadd.f32 %v1630_v49, %v1616_v10  ;;  %v1791_v28 = vadd.f32 %v3865_v7, %v1767_v61 }
 0x3d5   :  { %v3871_v36 = vpop.permute.xlu0 %1933  ;;  %v3888_v0 = vpop.permute.xlu1 %1782 }
 0x3d9   :  { %v3876_v33 = vpop.permute.xlu0 %1481  ;;  %v3902_v18 = vpop.permute.xlu1 %1931 }
 0x3da   :  { %v1489_v19 = vadd.f32 %v3876_v33, %v1470_v62 }
 0x3dc   :  { %1495 = vrot.lane.b32.xlu1 %v1489_v19, %s2582_s21  ;;  %v1154_v19 = vadd.f32 %v4319_v37, %v3782_v59 }
 0x3dd   :  { %v1652_v34 = vpop.permute.xlu0 %1651  ;;  %v3909_v2 = vpop.permute.xlu1 %1806 }
 0x3de   :  { %v1659_v39 = vadd.f32 %v1652_v34, %v1640_v29  ;;  %v4330_v29 = vld [vmem:[#allocation76_spill] sm:$0xff]  ;;  %v1655_v43 = vsel %vm215_vm4, %v1652_v34, %v3422_v57 }
 0x3df   :  { %v1323_v44 = vsel %vm215_vm4, %v1320_v21, %v4330_v29  ;;  %v1871_v21 = vmul.f32 0.0, %v4325_v30  ;;  %v1617_v30 = vadd.f32 %v1611_v31, %v3826_v58  ;;  %v1329_v61 = vadd.f32 %v4330_v29, %v3816_v1  ;;  %v4334_v29 = vld [vmem:[#allocation11_spill] sm:$0xff] }
 0x3e0   :  { %1669 = vrot.lane.b32.xlu0 %v1659_v39, %s2588_s1  ;;  %v1328_v59 = vadd.f32 %v1323_v44, %v3814_v41  ;;  %v1787_v41 = vsel %vm265_vm6, %v3888_v0, %v3428_v20  ;;  %v1811_v20 = vsel %vm952_vm9, %v3909_v2, %v3432_v60  ;;  %v1465_v60 = vsel %vm952_vm9, %v3857_v45, %v3869_v53 }
 0x3e1   :  { %v3891_v62 = vpop.permute.xlu0 %1804  ;;  %v1956_v27 = vpop.permute.xlu1 %1955  ;;  %v1762_v45 = vsel %vm190_vm3, %v3849_v46, %v3855_v56 }
 0x3e2   :  { %v1815_v47 = vadd.f32 %v3891_v62, %v1791_v28  ;;  %v1636_v28 = vsel %vm952_vm9, %v3861_v15, %v3414_v11 }
 0x3e4   :  { %987 = vrot.lane.b32.xlu0 %v3771_v42, %s2589_s28  ;;  %v4329_v42 = vld [vmem:[#allocation73_spill] sm:$0xff] }
 0x3e5   :  { %v3899_v8 = vpop.permute.xlu0 %1957  ;;  %v1442_v10 = vsel %vm265_vm6, %v3845_v3, %v4329_v42  ;;  %v1982_v13 = vpop.permute.xlu1 %1981 }
 0x3e6   :  { %v1448_v24 = vadd.f32 %v1442_v10, %v3804_v23  ;;  %v1763_v23 = vsel %vm190_vm3, %v3855_v56, %v3420_v26  ;;  %v1441_v26 = vsel %vm265_vm6, %v3843_v16, %v3845_v3  ;;  %v4332_v16 = vld [vmem:[#allocation78_spill] sm:$0xff]  ;;  %v1961_v53 = vsel %vm265_vm6, %v1956_v27, %v3899_v8 }
 0x3e7   :  { %v1612_v58 = vsel %vm265_vm6, %v3847_v22, %v4332_v16  ;;  %v1447_v34 = vadd.f32 %v1441_v26, %v3806_v54  ;;  %v1937_v22 = vsel %vm190_vm3, %v3902_v18, %v3871_v36  ;;  %v1485_v54 = vsel %vm215_vm4, %v3876_v33, %v3418_v38 }
 0x3e8   :  { %1337 = vrot.lane.b32.xlu0 %v1327_v63, %s2590_s29  ;;  %v1472_v37 = vadd.f32 %v1466_v17, %v1448_v24  ;;  %v1618_v1 = vadd.f32 %v1612_v58, %v3822_v50  ;;  %v4335_v17 = vld [vmem:[#allocation2_spill] sm:$0xff] }
 0x3e9   :  { %v3906_v14 = vpop.permute.xlu0 %1826  ;;  %v1471_v42 = vadd.f32 %v1465_v60, %v1447_v34  ;;  %v2002_v56 = vpop.permute.xlu1 %2001  ;;  %v1768_v24 = vadd.f32 %v1762_v45, %v4335_v17  ;;  %v4341_v34 = vld [vmem:[#allocation79_spill] sm:$0xff] }
 0x3ea   :  { %v1834_v48 = vadd.f32 %v3906_v14, %v1815_v47  ;;  %v1491_v6 = vadd.f32 %v3418_v38, %v1472_v37  ;;  %v826_v60 = vadd.s32 4294967287, %v4341_v34 }
 0x3eb   :  { %v1490_v33 = vadd.f32 %v1485_v54, %v1471_v42 }
 0x3ec   :  { %1844 = vrot.lane.b32.xlu1 %v1834_v48, %s2591_s30  ;;  %989 = vrot.lane.b32.xlu0 %v3773_v52, %s2589_s28  ;;  %v979_v52 = vadd.f32 %v4313_v9, %v3730_v40  ;;  %v1635_v9 = vsel %vm952_vm9, %v1630_v49, %v3861_v15  ;;  %v1913_v49 = vsel %vm546_vm11, %v3412_v12, %v3853_v55 }
 0x3ed   :  { %v1980_v5 = vpop.permute.xlu0 %1979  ;;  %v1642_v15 = vadd.f32 %v1636_v28, %v1618_v1  ;;  %v1002_v28 = vadd.s32 4294967290, %v4341_v34 }
 0x3ee   :  { %v1985_v38 = vsel %vm952_vm9, %v1980_v5, %v1982_v13 }
 0x3f0   :  { %1162 = vrot.lane.b32.xlu1 %v3799_v32, %s2592_s3  ;;  %1166 = vrot.lane.b32.xlu0 %v1154_v19, %s2592_s3  ;;  %v4331_v32 = vld [vmem:[#allocation77_spill] sm:$0xff] }
 0x3f1   :  { %v1889_v39 = vsel %vm240_vm5, %v4331_v32, %v3835_v4  ;;  %v1894_v40 = vadd.f32 %v4331_v32, %v1871_v21  ;;  %v1769_v4 = vadd.f32 %v1763_v23, %v3833_v25  ;;  %v1641_v25 = vadd.f32 %v1635_v9, %v1617_v30  ;;  %v2004_v11 = vpop.permute.xlu0 %2003 }
 0x3f2   :  { %v1895_v35 = vadd.f32 %v1889_v39, %v1871_v21  ;;  %v2005_v37 = vsel %vm215_vm4, %v2002_v56, %v2004_v11  ;;  %v4337_v21 = vld [vmem:[#allocation4_spill] sm:$0xff]  ;;  %v1661_v32 = vadd.f32 %v3422_v57, %v1642_v15  ;;  %vm828_vm5 = vcmp.ge.s32.totalorder %v826_v60, 0 }
 0x3f3   :  { %v1793_v3 = vadd.f32 %v1787_v41, %v1769_v4  ;;  %v1660_v47 = vadd.f32 %v1655_v43, %v1641_v25  ;;  %v1918_v48 = vadd.f32 %v3412_v12, %v1894_v40  ;;  %v4333_v12 = vld [vmem:[#allocation5_spill] sm:$0xff]  ;;  %v4338_v39 = vld [vmem:[#allocation12_spill] sm:$0xff]  ;;  %v2595_v4 = vmov 109  }
 0x3f4   :  { %1339 = vrot.lane.b32.xlu0 %v1328_v59, %s2590_s29  ;;  %991 = vrot.lane.b32.xlu1 %v979_v52, %s2589_s28  ;;  %v1919_v63 = vadd.f32 %v1913_v49, %v1895_v35  ;;  %v1914_v50 = vsel %vm546_vm11, %v3853_v55, %v4333_v12  ;;  %v4336_v52 = vld [vmem:[#allocation10_spill] sm:$0xff]  ;;  %v1786_v55 = vsel %vm265_vm6, %v3865_v7, %v3888_v0  ;;  %v4340_v35 = vld [vmem:[#allocation3_spill] sm:$0xff]  ;;  %v1177_v12 = vadd.s32 4294967293, %v4341_v34 }
 0x3f5   :  { %v1942_v19 = vadd.f32 %v3902_v18, %v1918_v48  ;;  %v1938_v59 = vsel %vm190_vm3, %v3871_v36, %v4336_v52  ;;  %v1920_v31 = vadd.f32 %v1914_v50, %v4337_v21  ;;  %v1810_v36 = vsel %vm952_vm9, %v3891_v62, %v3909_v2  ;;  %2477 = vset.pattern.permute.xlu0 %v2595_v4 }
 0x3f6   :  { %v1943_v10 = vadd.f32 %v1937_v22, %v1919_v63  ;;  %v1962_v7 = vsel %vm265_vm6, %v3899_v8, %v4338_v39  ;;  %v1792_v40 = vadd.f32 %v1786_v55, %v1768_v24  ;;  %v2594_v2 = vmov 110   ;;  %v4339_v8 = vld [vmem:[#allocation16_spill] sm:$0xff] }
 0x3f7   :  { %v1966_v23 = vadd.f32 %v1956_v27, %v1942_v19  ;;  %v1944_v0 = vadd.f32 %v1938_v59, %v1920_v31  ;;  %v1830_v27 = vsel %vm215_vm4, %v3906_v14, %v4334_v29  ;;  %2476 = vset.pattern.permute.xlu1 %v2594_v2  ;;  %vm993_vm3 = vcmask 203776  }
 0x3f8   :  { %1499 = vrot.lane.b32.xlu0 %v1491_v6, %s2582_s21  ;;  %1164 = vrot.lane.b32.xlu1 %v3801_v51, %s2592_s3  ;;  %v1817_v51 = vadd.f32 %v1811_v20, %v1793_v3  ;;  %v1967_v46 = vadd.f32 %v1961_v53, %v1943_v10  ;;  %v1816_v26 = vadd.f32 %v1810_v36, %v1792_v40  ;;  %vm1168_vm4 = vcmask 179200  }
 0x3f9   :  { %v1990_v9 = vadd.f32 %v1980_v5, %v1966_v23  ;;  %v1968_v30 = vadd.f32 %v1962_v7, %v1944_v0  ;;  %v1986_v6 = vsel %vm952_vm9, %v1982_v13, %v4339_v8  ;;  %vm1004_vm6 = vcmp.ge.s32.totalorder %v1002_v28, 0 }
 0x3fa   :  { %v1836_v44 = vadd.f32 %v4334_v29, %v1817_v51  ;;  %v1991_v18 = vadd.f32 %v1985_v38, %v1967_v46  ;;  %v1835_v57 = vadd.f32 %v1830_v27, %v1816_v26  ;;  %v823_v43 = vpop.permute.xlu1 %822  ;;  %vm1343_vm11 = vcmask 154624  }
 0x3fb   :  { %v2009_v62 = vadd.f32 %v2002_v56, %v1990_v9  ;;  %v1992_v5 = vadd.f32 %v1986_v6, %v1968_v30  ;;  %vm1179_vm14 = vcmp.ge.s32.totalorder %v1177_v12, 0  ;;  %v1509_v55 = vadd.s32 3, %v4341_v34 }
 0x3fc   :  { %1671 = vrot.lane.b32.xlu0 %v1660_v47, %s2588_s1  ;;  %1341 = vrot.lane.b32.xlu1 %v1329_v61, %s2590_s29  ;;  %v2010_v41 = vadd.f32 %v2005_v37, %v1991_v18  ;;  %v4342_v47 = vld [vmem:[#allocation80_spill] sm:$0xff]  ;;  %v1684_v31 = vadd.s32 6, %v4341_v34  ;;  %v1859_v2 = vadd.s32 9, %v4341_v34 }
 0x3fd   :  { %v2011_v14 = vadd.f32 %v2004_v11, %v1992_v5  ;;  %v827_v51 = vadd.s32 4294967287, %v4342_v47  ;;  %v1003_v53 = vadd.s32 4294967290, %v4342_v47  ;;  %v1178_v11 = vadd.s32 4294967293, %v4342_v47 }
 0x3fe   :  { %v1510_v37 = vadd.s32 3, %v4342_v47  ;;  %v1685_v36 = vadd.s32 6, %v4342_v47  ;;  %vm1513_vm1 = vcmp.lt.s32.totalorder %v1509_v55, 16  ;;  %vm1688_vm8 = vcmp.lt.s32.totalorder %v1684_v31, 16 }
 0x3ff   :  { %vm829_vm10 = vcmp.ge.s32.totalorder %v827_v51, 0  ;;  %vm1005_vm12 = vcmp.ge.s32.totalorder %v1003_v53, 0  ;;  %vm1180_vm13 = vcmp.ge.s32.totalorder %v1178_v11, 0  ;;  %v1860_v30 = vadd.s32 9, %v4342_v47 }
 0x400   :  { %1848 = vrot.lane.b32.xlu0 %v1836_v44, %s2591_s30  ;;  %1497 = vrot.lane.b32.xlu1 %v1490_v33, %s2582_s21  ;;  %vm1514_vm2 = vcmp.lt.s32.totalorder %v1510_v37, 16  ;;  %v4343_v51 = vmov 0.0  }
 0x404   :  { %2021 = vrot.lane.b32.xlu0 %v2010_v41, %s2593_s4  ;;  %1673 = vrot.lane.b32.xlu1 %v1661_v32, %s2588_s1 }
 0x408   :  { %2019 = vrot.lane.b32.xlu0 %v2009_v62, %s2593_s4  ;;  %1846 = vrot.lane.b32.xlu1 %v1835_v57, %s2591_s30 }
 0x40c   :  { %2023 = vrot.lane.b32.xlu1 %v2011_v14, %s2593_s4  ;;  %2038 = vrot.lane.b32.xlu0 %v4340_v35, %s2596_s5 }
 0x410   :  { %2117 = vrot.lane.b32.xlu1 %v4340_v35, %s2597_s6  ;;  %2035 = vperm.xlu0 %2477, %v4340_v35  }
 0x414   :  { %2114 = vperm.xlu1 %2476, %v4340_v35  }
 0x418   :  { %2210 = vrot.lane.b32.xlu1 %v4340_v35, %s2585_s24 }
 0x44e   :  { %v1496_v16 = vpop.permute.xlu1 %1495 }
 0x452   :  { %v1670_v49 = vpop.permute.xlu0 %1669 }
 0x456   :  { %v988_v20 = vpop.permute.xlu0 %987 }
 0x45a   :  { %v1338_v58 = vpop.permute.xlu0 %1337 }
 0x45e   :  { %v990_v25 = vpop.permute.xlu0 %989  ;;  %v4030_v3 = vpop.permute.xlu1 %1844 }
 0x45f   :  { %v994_v48 = vsel %vm993_vm3, %v988_v20, %v990_v25 }
 0x460   :  { %v998_v42 = vsel %vm828_vm5, %v994_v48, 0.0  ;;  %vm1863_vm5 = vcmp.lt.s32.totalorder %v1859_v2, 16  ;;  %v2598_v48 = vmov 111  }
 0x461   :  { %v1000_v19 = vadd.f32 %v998_v42, %v823_v43  ;;  %2478 = vset.pattern.permute.xlu1 %v2598_v48  ;;  %2479 = vset.pattern.permute.xlu0 %v2598_v48 }
 0x462   :  { %v1167_v13 = vpop.permute.xlu0 %1166  ;;  %v1163_v61 = vpop.permute.xlu1 %1162  ;;  %2207 = vperm.xlu1 %2478, %v4340_v35  }
 0x466   :  { %v1340_v22 = vpop.permute.xlu0 %1339  ;;  %v992_v63 = vpop.permute.xlu1 %991 }
 0x467   :  { %v995_v10 = vsel %vm993_vm3, %v990_v25, %v992_v63  ;;  %v1344_v46 = vsel %vm1343_vm11, %v1338_v58, %v1340_v22  ;;  %vm1689_vm3 = vcmp.lt.s32.totalorder %v1685_v36, 16 }
 0x468   :  { %v999_v29 = vsel %vm829_vm10, %v995_v10, 0.0  ;;  %v1348_v23 = vsel %vm1179_vm14, %v1344_v46, 0.0 }
 0x469   :  { %v1001_v59 = vadd.f32 %v999_v29, %v823_v43 }
 0x46a   :  { %v1500_v1 = vpop.permute.xlu0 %1499  ;;  %v1165_v54 = vpop.permute.xlu1 %1164 }
 0x46b   :  { %v1169_v45 = vsel %vm1168_vm4, %v1163_v61, %v1165_v54  ;;  %v1170_v38 = vsel %vm1168_vm4, %v1165_v54, %v1167_v13  ;;  %vm2025_vm4 = vcmask 56320  }
 0x46c   :  { %v1173_v33 = vsel %vm1004_vm6, %v1169_v45, 0.0  ;;  %v1174_v56 = vsel %vm1005_vm12, %v1170_v38, 0.0 }
 0x46d   :  { %v1175_v17 = vadd.f32 %v1173_v33, %v1000_v19  ;;  %v1176_v18 = vadd.f32 %v1174_v56, %v1001_v59 }
 0x46e   :  { %v1672_v50 = vpop.permute.xlu0 %1671  ;;  %v1342_v15 = vpop.permute.xlu1 %1341 }
 0x46f   :  { %v1345_v44 = vsel %vm1343_vm11, %v1340_v22, %v1342_v15  ;;  %v1350_v39 = vadd.f32 %v1348_v23, %v1175_v17  ;;  %v1676_v41 = vsel %vm1675_vm15, %v1670_v49, %v1672_v50  ;;  %v2497_v23 = vld [vmem:[%s4069_s0] sm:$0xff] }
 0x470   :  { %v1349_v21 = vsel %vm1180_vm13, %v1345_v44, 0.0  ;;  %v1680_v4 = vsel %vm1513_vm1, %v1676_v41, 0.0 }
 0x471   :  { %v1351_v40 = vadd.f32 %v1349_v21, %v1176_v18 }
 0x472   :  { %v1849_v24 = vpop.permute.xlu0 %1848  ;;  %v1498_v52 = vpop.permute.xlu1 %1497 }
 0x473   :  { %v1501_v32 = vsel %vm952_vm9, %v1496_v16, %v1498_v52  ;;  %v1502_v27 = vsel %vm952_vm9, %v1498_v52, %v1500_v1  ;;  %vm1864_vm9 = vcmp.lt.s32.totalorder %v1860_v30, 16 }
 0x474   :  { %v1507_v26 = vadd.f32 %v1501_v32, %v1350_v39  ;;  %v1508_v8 = vadd.f32 %v1502_v27, %v1351_v40  ;;  %v2498_v32 = vld [vmem:[%s4069_s0 + $0x8] sm:$0xff] }
 0x476   :  { %v2022_v7 = vpop.permute.xlu0 %2021  ;;  %v1674_v0 = vpop.permute.xlu1 %1673  ;;  %v1682_v49 = vadd.f32 %v1680_v4, %v1507_v26 }
 0x477   :  { %v1677_v9 = vsel %vm1675_vm15, %v1672_v50, %v1674_v0 }
 0x478   :  { %v1681_v57 = vsel %vm1514_vm2, %v1677_v9, 0.0 }
 0x479   :  { %v1683_v16 = vadd.f32 %v1681_v57, %v1508_v8 }
 0x47a   :  { %v1847_v62 = vpop.permute.xlu1 %1846  ;;  %v2020_v6 = vpop.permute.xlu0 %2019 }
 0x47b   :  { %v1851_v5 = vsel %vm1850_vm7, %v4030_v3, %v1847_v62  ;;  %v1852_v14 = vsel %vm1850_vm7, %v1847_v62, %v1849_v24  ;;  %v2026_v58 = vsel %vm2025_vm4, %v2020_v6, %v2022_v7 }
 0x47c   :  { %v1855_v43 = vsel %vm1688_vm8, %v1851_v5, 0.0  ;;  %v1856_v20 = vsel %vm1689_vm3, %v1852_v14, 0.0  ;;  %v2030_v63 = vsel %vm1863_vm5, %v2026_v58, 0.0 }
 0x47d   :  { %v1857_v13 = vadd.f32 %v1855_v43, %v1682_v49  ;;  %v1858_v60 = vadd.f32 %v1856_v20, %v1683_v16 }
 0x47e   :  { %v2024_v25 = vpop.permute.xlu1 %2023  ;;  %v2039_v3 = vpop.permute.xlu0 %2038 }
 0x47f   :  { %v2027_v61 = vsel %vm2025_vm4, %v2022_v7, %v2024_v25  ;;  %v2032_v28 = vadd.f32 %v2030_v63, %v1857_v13 }
 0x480   :  { %v2031_v34 = vsel %vm1864_vm9, %v2027_v61, 0.0 }
 0x481   :  { %v2033_v22 = vadd.f32 %v2031_v34, %v1858_v60 }
 0x482   :  { %v2118_v47 = vpop.permute.xlu1 %2117 }
 0x483   :  { %2042 = vmatprep.subr.mxu1 %v2033_v22  ;;  %2121 = vmatprep.subr.mxu0 %v2033_v22 }
 0x484   :  { %2043 = vmatpush1.msra.mxu1 %v2032_v28  ;;  %2122 = vmatpush1.msra.mxu0 %v2032_v28 }
 0x485   :  { %2295 = vmatmul.mubr.msk.f32.vlgmr.msra.gmra.mrb[2].mxu0 %vm26_vm0, %v2118_v47  ;;  %2294 = vmatmul.mubr.msk.f32.vlgmr.msra.gmra.mrb[0].mxu1 %vm26_vm0, %v2039_v3 }
 0x486   :  { %2278 = vmatprep.mubr.f32.mxu1 %v4343_v51 }
 0x48f   :  { %v2036_v29 = vpop.permute.xlu0 %2035 }
 0x493   :  { %v2115_v1 = vpop.permute.xlu1 %2114 }
 0x497   :  { %v2211_v52 = vpop.permute.xlu1 %2210 }
 0x4e1   :  { %v2208_v59 = vpop.permute.xlu1 %2207 }
 0x558   :  { %v2187_v54 = vpop.f32.mrb[2].mxu0  ;;  %v2108_v53 = vpop.f32.mrb[0].mxu1 }
 0x559   :  { %v2188_v45 = vadd.f32 %v2187_v54, %v2115_v1  ;;  %v2189_v42 = vpop.f32.mrb[3].mxu0  ;;  %v2110_v10 = vpop.f32.mrb[1].mxu1  ;;  %v2109_v44 = vadd.f32 %v2108_v53, %v2036_v29 }
 0x55a   :  { %v2190_v11 = vadd.f32 %v2189_v42, %v2115_v1  ;;  %v2111_v35 = vadd.f32 %v2110_v10, %v2036_v29 }
 0x55b   :  { %v2296_v12 = vmul.f32 -1.442695, %v2188_v45 }
 0x55c   :  { %v2297_v50 = vmul.f32 -1.442695, %v2190_v11 }
 0x55d   :  { %2488 = vpow2.f32 %v2296_v12 }
 0x55e   :  { %2490 = vpow2.f32 %v2297_v50 }
 0x567   :  { %v2489_v15 = vpop.eup %2488 }
 0x568   :  { %v2491_v38 = vpop.eup %2490  ;;  %v2198_v33 = vadd.f32 1.0, %v2489_v15 }
 0x569   :  { %v2199_v19 = vadd.f32 1.0, %v2491_v38 }
 0x56a   :  { %2492 = vrcp.f32 %v2198_v33 }
 0x56b   :  { %2494 = vrcp.f32 %v2199_v19 }
 0x574   :  { %v2493_v46 = vpop.eup %2492 }
 0x575   :  { %v2495_v56 = vpop.eup %2494  ;;  %v2204_v17 = vmul.f32 %v2493_v46, %v2109_v44 }
 0x576   :  { %v2205_v24 = vmul.f32 %v2495_v56, %v2111_v35 }
 0x578   :  { %2214 = vmatprep.subr.mxu1 %v2205_v24 }
 0x579   :  { %2215 = vmatpush1.msra.mxu1 %v2204_v17 }
 0x57a   :  { %2298 = vmatmul.mubr.msk.f32.vlgmr.msra.gmra.mrb[2].mxu1 %vm26_vm0, %v2211_v52 }
 0x64d   :  { %v2280_v55 = vpop.f32.mrb[2].mxu1 }
 0x64e   :  { %v2282_v37 = vpop.f32.mrb[3].mxu1  ;;  %v2281_v21 = vadd.f32 %v2280_v55, %v2208_v59 }
 0x64f   :  { %v2283_v31 = vadd.f32 %v2282_v37, %v2208_v59 }
 0x650   :  { %v2285_v18 = vadd.f32 %v2497_v23, %v2281_v21 }
 0x651   :  { %v2286_v36 = vadd.f32 %v2498_v32, %v2283_v31 }
 0x652   :  { %2287 = vst [vmem:[%s4070_s2] sm:$0xff] %v2285_v18 }
 0x653   :  { %2288 = vst [vmem:[%s4070_s2 + $0x8] sm:$0xff] %v2286_v36 }

</bundles_post_ra>
